<compile_context>
chip_gen: v7x
topology: tpu7x:2x2x1
jax: 0.10.0
libtpu: 0.0.40
codegen_flags: <defaults>
</compile_context>

<pallas_src>
import functools
import itertools

import jax
import jax.numpy as jnp
from jax.experimental import pallas as pl
from jax.experimental.pallas import tpu as pltpu

EPS = 1e-5          # nn.GroupNorm default
NUM_GROUPS = 16     # hard-coded in the module


# ----------------------------- Pallas kernel ------------------------------ #
def _gn_scale_shift(y, agg_ref, group_size, n_spatial):
    """Per-channel (mean, rsqrt(var+eps)) of GroupNorm(NUM_GROUPS) for y laid out as (C, M)."""
    s = jnp.sum(y, axis=-1, keepdims=True)          # (C, 1) f32
    q = jnp.sum(y * y, axis=-1, keepdims=True)      # (C, 1) f32
    if group_size == 1:
        # one channel per group: no aggregation matmul needed
        inv_n = 1.0 / n_spatial
        mean = s * inv_n
        ex2 = q * inv_n
    else:
        # block-diagonal ones matrix broadcasts the group sums back to every member channel
        inv_n = 1.0 / (group_size * n_spatial)
        mean = jnp.dot(agg_ref[...], s, preferred_element_type=jnp.float32) * inv_n
        ex2 = jnp.dot(agg_ref[...], q, preferred_element_type=jnp.float32) * inv_n
    var = jnp.maximum(ex2 - mean * mean, 0.0)       # biased variance; clamp cancellation
    return mean, jax.lax.rsqrt(var + EPS)


def _bottleneck_kernel(x_ref, w1_ref, w2_ref, w3_ref,
                       g1_ref, b1_ref, g2_ref, b2_ref, g3_ref, b3_ref,
                       a12_ref, a3_ref, mask_ref, o_ref,
                       *, planes, T, H, W):
    M = T * H * W
    HW = H * W
    gs12 = planes // NUM_GROUPS
    gs3 = (4 * planes) // NUM_GROUPS

    x = x_ref[0]                                                       # (4*planes, M) f32

    # -------- stage 1: conv1 (1x1x1) + GN + ReLU --------
    y = jnp.dot(w1_ref[...], x.astype(jnp.bfloat16),
                preferred_element_type=jnp.float32)                    # (planes, M) f32
    mean, inv = _gn_scale_shift(y, a12_ref, gs12, M)
    y1 = jnp.maximum((y - mean) * (inv * g1_ref[...]) + b1_ref[...], 0.0)

    # -------- stage 2: conv2 (3x3x3, stride 1, pad 1) + GN + ReLU --------
    # 27 accumulated matmuls over lane-shifted, boundary-masked views of y1 (in-kernel "im2col").
    acc = jnp.zeros((planes, M), jnp.float32)
    for k, (dt, dh, dw) in enumerate(itertools.product(range(3), repeat=3)):
        off = (dt - 1) * HW + (dh - 1) * W + (dw - 1)
        shifted = y1 if off == 0 else pltpu.roll(y1, shift=(-off) % M, axis=1)
        tap_in = (shifted * mask_ref[k]).astype(jnp.bfloat16)          # zero the padded-border reads
        acc = acc + jnp.dot(w2_ref[k], tap_in, preferred_element_type=jnp.float32)
    mean, inv = _gn_scale_shift(acc, a12_ref, gs12, M)
    y2 = jnp.maximum((acc - mean) * (inv * g2_ref[...]) + b2_ref[...], 0.0)

    # -------- stage 3: conv3 (1x1x1) + GN + residual + ReLU --------
    y = jnp.dot(w3_ref[...], y2.astype(jnp.bfloat16),
                preferred_element_type=jnp.float32)                    # (4*planes, M) f32
    mean, inv = _gn_scale_shift(y, a3_ref, gs3, M)
    out = (y - mean) * (inv * g3_ref[...]) + b3_ref[...] + x           # residual add in f32
    o_ref[0] = jnp.maximum(out, 0.0).astype(o_ref.dtype)


# ------------------------------ JAX glue ---------------------------------- #
def spectral_normalize(w, u0, n_iter=1, eps=1e-12):
    """torch.nn.utils.spectral_norm training-mode semantics (one power iteration)."""
    w_mat = w.reshape(w.shape[0], -1)
    u = u0 / (jnp.linalg.norm(u0) + eps)
    v = None
    for _ in range(n_iter):
        v = w_mat.T @ u
        v = v / (jnp.linalg.norm(v) + eps)
        u = w_mat @ v
        u = u / (jnp.linalg.norm(u) + eps)
    sigma = jnp.dot(u, w_mat @ v)
    return w / sigma


def group_ones_matrix(C):
    """(C, C) f32: 1 where two channels share a GroupNorm group, else 0."""
    gid = jnp.arange(C) // (C // NUM_GROUPS)
    return (gid[:, None] == gid[None, :]).astype(jnp.float32)


def conv3_tap_masks(T, H, W):
    """(27, 1, T*H*W) f32; mask[k, 0, m] == 1 iff output position m reads an in-bounds input
    element for tap k of a 3x3x3 / pad-1 / stride-1 conv (i.e. not a zero-padding read)."""
    t = jnp.arange(T).reshape(T, 1, 1)
    h = jnp.arange(H).reshape(1, H, 1)
    w = jnp.arange(W).reshape(1, 1, W)
    masks = []
    for dt, dh, dw in itertools.product(range(3), repeat=3):
        ok = ((t + dt - 1 >= 0) & (t + dt - 1 < T) &
              (h + dh - 1 >= 0) & (h + dh - 1 < H) &
              (w + dw - 1 >= 0) & (w + dw - 1 < W))
        masks.append(jnp.broadcast_to(ok, (T, H, W)).reshape(1, T * H * W))
    return jnp.stack(masks, axis=0).astype(jnp.float32)


def bottleneck_forward(x, params):
    """x: (N, inplanes, T, H, W) f32 NCDHW.  Returns (N, planes*4, T, H, W) f32."""
    (w1, u1, g1, b1, w2, u2, g2, b2, w3, u3, g3, b3) = params
    N, Cin, T, H, W = x.shape
    P = w1.shape[0]
    M = T * H * W
    assert Cin == 4 * P, "residual add requires inplanes == planes * expansion"
    assert P % NUM_GROUPS == 0, "GroupNorm(16, planes) requires planes % 16 == 0"

    # spectral-norm the conv weights, then cast the matmul operands to bf16 (MXU-native)
    w1n = spectral_normalize(w1, u1)
    w2n = spectral_normalize(w2, u2)
    w3n = spectral_normalize(w3, u3)
    w1_mat = w1n.reshape(P, Cin).astype(jnp.bfloat16)                              # (P, Cin)
    w2_taps = jnp.transpose(w2n, (2, 3, 4, 0, 1)).reshape(27, P, P).astype(jnp.bfloat16)
    w3_mat = w3n.reshape(4 * P, P).astype(jnp.bfloat16)                            # (4P, P)

    # channel-first (C, M) per sample: NCDHW needs only a reshape (no transpose), stays f32
    # because it doubles as the stage-3 residual.
    x_cm = x.reshape(N, Cin, M)

    a12 = group_ones_matrix(P)          # only read when planes > 16 (group size > 1)
    a3 = group_ones_matrix(4 * P)
    masks = conv3_tap_masks(T, H, W)    # (27, 1, M)

    kernel = functools.partial(_bottleneck_kernel, planes=P, T=T, H=H, W=W)

    rep2 = lambda i: (0, 0)             # parameter blocks: same block every grid step
    rep3 = lambda i: (0, 0, 0)

    out = pl.pallas_call(
        kernel,
        out_shape=jax.ShapeDtypeStruct((N, 4 * P, M), jnp.float32),
        grid_spec=pltpu.PrefetchScalarGridSpec(
            num_scalar_prefetch=0,
            grid=(N,),                                                 # one sample per grid step
            in_specs=[
                pl.BlockSpec((1, Cin, M), lambda i: (i, 0, 0)),        # x (matmul input + residual)
                pl.BlockSpec((P, Cin), rep2),                          # conv1 weight
                pl.BlockSpec((27, P, P), rep3),                        # conv2 weight, one (P,P) per tap
                pl.BlockSpec((4 * P, P), rep2),                        # conv3 weight
                pl.BlockSpec((P, 1), rep2),                            # gamma1
                pl.BlockSpec((P, 1), rep2),                            # beta1
                pl.BlockSpec((P, 1), rep2),                            # gamma2
                pl.BlockSpec((P, 1), rep2),                            # beta2
                pl.BlockSpec((4 * P, 1), rep2),                        # gamma3
                pl.BlockSpec((4 * P, 1), rep2),                        # beta3
                pl.BlockSpec((P, P), rep2),                            # GN group matrix (stages 1-2)
                pl.BlockSpec((4 * P, 4 * P), rep2),                    # GN group matrix (stage 3)
                pl.BlockSpec((27, 1, M), rep3),                        # conv2 boundary masks
            ],
            out_specs=pl.BlockSpec((1, 4 * P, M), lambda i: (i, 0, 0)),
        ),
        # batch axis is independent -> megacore-shardable (one sample per TensorCore on v7x)
        compiler_params=pltpu.CompilerParams(dimension_semantics=("parallel",)),
    )(x_cm, w1_mat, w2_taps, w3_mat,
      g1.reshape(P, 1), b1.reshape(P, 1), g2.reshape(P, 1), b2.reshape(P, 1),
      g3.reshape(4 * P, 1), b3.reshape(4 * P, 1), a12, a3, masks)

    return out.reshape(N, 4 * P, T, H, W)


# --------------------------- pure-JAX reference ---------------------------- #
def _groupnorm_ref(x, num_groups, gamma, beta):
    N, C, T, H, W = x.shape
    xg = x.reshape(N, num_groups, C // num_groups, T, H, W)
    mean = xg.mean(axis=(2, 3, 4, 5), keepdims=True)
    var = xg.var(axis=(2, 3, 4, 5), keepdims=True)
    xn = ((xg - mean) / jnp.sqrt(var + EPS)).reshape(N, C, T, H, W)
    return xn * gamma.reshape(1, C, 1, 1, 1) + beta.reshape(1, C, 1, 1, 1)


def _conv3d_ref(x, w, pad):
    return jax.lax.conv_general_dilated(
        x, w, window_strides=(1, 1, 1), padding=[(pad, pad)] * 3,
        dimension_numbers=("NCDHW", "OIDHW", "NCDHW"),
        precision=jax.lax.Precision.HIGHEST)


def bottleneck_ref(x, params):
    (w1, u1, g1, b1, w2, u2, g2, b2, w3, u3, g3, b3) = params
    w1n, w2n, w3n = (spectral_normalize(w, u) for w, u in ((w1, u1), (w2, u2), (w3, u3)))
    out = jax.nn.relu(_groupnorm_ref(_conv3d_ref(x, w1n, 0), NUM_GROUPS, g1, b1))
    out = jax.nn.relu(_groupnorm_ref(_conv3d_ref(out, w2n, 1), NUM_GROUPS, g2, b2))
    out = _groupnorm_ref(_conv3d_ref(out, w3n, 0), NUM_GROUPS, g3, b3)
    return jax.nn.relu(out + x)


# --------------------------------- main ------------------------------------ #
if __name__ == "__main__":
    key = jax.random.PRNGKey(0)
    N, inplanes, planes = 2, 64, 16          # inplanes = planes * expansion(4)
    T, H, W = 4, 8, 8

    ks = jax.random.split(key, 7)
    x = jax.random.normal(ks[0], (N, inplanes, T, H, W), jnp.float32)
    w1 = 0.1 * jax.random.normal(ks[1], (planes, inplanes, 1, 1, 1), jnp.float32)
    w2 = 0.1 * jax.random.normal(ks[2], (planes, planes, 3, 3, 3), jnp.float32)
    w3 = 0.1 * jax.random.normal(ks[3], (planes * 4, planes, 1, 1, 1), jnp.float32)
    u1 = jax.random.normal(ks[4], (planes,), jnp.float32)
    u2 = jax.random.normal(ks[5], (planes,), jnp.float32)
    u3 = jax.random.normal(ks[6], (planes * 4,), jnp.float32)
    # GroupNorm affine params (PyTorch default init: weight=1, bias=0)
    g1, b1 = jnp.ones((planes,), jnp.float32), jnp.zeros((planes,), jnp.float32)
    g2, b2 = jnp.ones((planes,), jnp.float32), jnp.zeros((planes,), jnp.float32)
    g3, b3 = jnp.ones((planes * 4,), jnp.float32), jnp.zeros((planes * 4,), jnp.float32)

    params = (w1, u1, g1, b1, w2, u2, g2, b2, w3, u3, g3, b3)

    out = jax.block_until_ready(bottleneck_forward(x, params))
    ref = jax.block_until_ready(bottleneck_ref(x, params))

    assert out.shape == (N, planes * 4, T, H, W)
    # bf16 matmul operands (with f32 accumulation and f32 GroupNorm stats) vs an f32
    # HIGHEST-precision reference: three GroupNorms re-amplify the operand-rounding noise,
    # so deviations of O(1e-2) are expected; structural bugs would show up as O(1) errors.
    err = float(jnp.max(jnp.abs(out - ref)))
    assert jnp.allclose(out, ref, atol=3e-2, rtol=3e-2), f"max abs err {err}"

    print("KERNEL_OK")
</pallas_src>

<mosaic_0001>
module attributes {stable_mosaic.version = 11 : i64} {
  func.func @_bottleneck_kernel(%arg0: i32, %arg1: memref<1x64x256xf32, #tpu.memory_space<vmem>>, %arg2: memref<16x64xbf16, #tpu.memory_space<vmem>>, %arg3: memref<27x16x16xbf16, #tpu.memory_space<vmem>>, %arg4: memref<64x16xbf16, #tpu.memory_space<vmem>>, %arg5: memref<16x1xf32, #tpu.memory_space<vmem>>, %arg6: memref<16x1xf32, #tpu.memory_space<vmem>>, %arg7: memref<16x1xf32, #tpu.memory_space<vmem>>, %arg8: memref<16x1xf32, #tpu.memory_space<vmem>>, %arg9: memref<64x1xf32, #tpu.memory_space<vmem>>, %arg10: memref<64x1xf32, #tpu.memory_space<vmem>>, %arg11: memref<16x16xf32, #tpu.memory_space<vmem>>, %arg12: memref<64x64xf32, #tpu.memory_space<vmem>>, %arg13: memref<27x1x256xf32, #tpu.memory_space<vmem>>, %arg14: memref<1x64x256xf32, #tpu.memory_space<vmem>>) attributes {dimension_semantics = [#tpu.dimension_semantics<parallel>], iteration_bounds = array<i64: 2>, scalar_prefetch = 0 : i64, scratch_operands = 0 : i64, tpu.core_type = #tpu.core_type<tc>, window_params = [{transform_indices = @transform_0, window_bounds = array<i64: 1, 64, 256>}, {pipeline_mode = #tpu.pipeline_mode<synchronous>, transform_indices = @transform_1, window_bounds = array<i64: 16, 64>}, {pipeline_mode = #tpu.pipeline_mode<synchronous>, transform_indices = @transform_2, window_bounds = array<i64: 27, 16, 16>}, {pipeline_mode = #tpu.pipeline_mode<synchronous>, transform_indices = @transform_3, window_bounds = array<i64: 64, 16>}, {pipeline_mode = #tpu.pipeline_mode<synchronous>, transform_indices = @transform_4, window_bounds = array<i64: 16, 1>}, {pipeline_mode = #tpu.pipeline_mode<synchronous>, transform_indices = @transform_5, window_bounds = array<i64: 16, 1>}, {pipeline_mode = #tpu.pipeline_mode<synchronous>, transform_indices = @transform_6, window_bounds = array<i64: 16, 1>}, {pipeline_mode = #tpu.pipeline_mode<synchronous>, transform_indices = @transform_7, window_bounds = array<i64: 16, 1>}, {pipeline_mode = #tpu.pipeline_mode<synchronous>, transform_indices = @transform_8, window_bounds = array<i64: 64, 1>}, {pipeline_mode = #tpu.pipeline_mode<synchronous>, transform_indices = @transform_9, window_bounds = array<i64: 64, 1>}, {pipeline_mode = #tpu.pipeline_mode<synchronous>, transform_indices = @transform_10, window_bounds = array<i64: 16, 16>}, {pipeline_mode = #tpu.pipeline_mode<synchronous>, transform_indices = @transform_11, window_bounds = array<i64: 64, 64>}, {pipeline_mode = #tpu.pipeline_mode<synchronous>, transform_indices = @transform_12, window_bounds = array<i64: 27, 1, 256>}, {transform_indices = @transform_13, window_bounds = array<i64: 1, 64, 256>}]} {
    %c0 = arith.constant 0 : index
    %c0_0 = arith.constant 0 : index
    %c0_1 = arith.constant 0 : index
    %0 = vector.load %arg1[%c0, %c0_0, %c0_1] : memref<1x64x256xf32, #tpu.memory_space<vmem>>, vector<1x64x256xf32>
    %1 = vector.shape_cast %0 : vector<1x64x256xf32> to vector<64x256xf32>
    %c0_2 = arith.constant 0 : index
    %c0_3 = arith.constant 0 : index
    %2 = vector.load %arg2[%c0_2, %c0_3] : memref<16x64xbf16, #tpu.memory_space<vmem>>, vector<16x64xbf16>
    %3 = arith.truncf %1 : vector<64x256xf32> to vector<64x256xbf16>
    %cst = arith.constant dense<0.000000e+00> : vector<16x256xf32>
    %4 = tpu.matmul %2, %3, %cst {dimension_numbers = #tpu.dot_dimension_numbers<[1], [0], [0], [1], [0, 0, 1, 1], [], []>} : vector<16x64xbf16>, vector<64x256xbf16>, vector<16x256xf32> -> vector<16x256xf32>
    %cst_4 = arith.constant dense<0.000000e+00> : vector<16xf32>
    %5 = vector.multi_reduction <add>, %4, %cst_4 [1] : vector<16x256xf32> to vector<16xf32>
    %6 = vector.shape_cast %5 : vector<16xf32> to vector<16x1xf32>
    %7 = arith.mulf %4, %4 : vector<16x256xf32>
    %cst_5 = arith.constant dense<0.000000e+00> : vector<16xf32>
    %8 = vector.multi_reduction <add>, %7, %cst_5 [1] : vector<16x256xf32> to vector<16xf32>
    %9 = vector.shape_cast %8 : vector<16xf32> to vector<16x1xf32>
    %cst_6 = arith.constant 3.906250e-03 : f32
    %10 = vector.broadcast %cst_6 : f32 to vector<16x1xf32>
    %11 = arith.mulf %6, %10 : vector<16x1xf32>
    %cst_7 = arith.constant 3.906250e-03 : f32
    %12 = vector.broadcast %cst_7 : f32 to vector<16x1xf32>
    %13 = arith.mulf %9, %12 : vector<16x1xf32>
    %14 = arith.mulf %11, %11 : vector<16x1xf32>
    %15 = arith.subf %13, %14 : vector<16x1xf32>
    %cst_8 = arith.constant 0.000000e+00 : f32
    %16 = vector.broadcast %cst_8 : f32 to vector<16x1xf32>
    %17 = arith.maximumf %15, %16 : vector<16x1xf32>
    %cst_9 = arith.constant 9.99999974E-6 : f32
    %18 = vector.broadcast %cst_9 : f32 to vector<16x1xf32>
    %19 = arith.addf %17, %18 : vector<16x1xf32>
    %20 = math.rsqrt %19 : vector<16x1xf32>
    %21 = vector.broadcast %11 : vector<16x1xf32> to vector<16x256xf32>
    %22 = arith.subf %4, %21 : vector<16x256xf32>
    %c0_10 = arith.constant 0 : index
    %c0_11 = arith.constant 0 : index
    %23 = vector.load %arg5[%c0_10, %c0_11] : memref<16x1xf32, #tpu.memory_space<vmem>>, vector<16x1xf32>
    %24 = arith.mulf %20, %23 : vector<16x1xf32>
    %25 = vector.broadcast %24 : vector<16x1xf32> to vector<16x256xf32>
    %26 = arith.mulf %22, %25 : vector<16x256xf32>
    %c0_12 = arith.constant 0 : index
    %c0_13 = arith.constant 0 : index
    %27 = vector.load %arg6[%c0_12, %c0_13] : memref<16x1xf32, #tpu.memory_space<vmem>>, vector<16x1xf32>
    %28 = vector.broadcast %27 : vector<16x1xf32> to vector<16x256xf32>
    %29 = arith.addf %26, %28 : vector<16x256xf32>
    %cst_14 = arith.constant 0.000000e+00 : f32
    %30 = vector.broadcast %cst_14 : f32 to vector<16x256xf32>
    %31 = arith.maximumf %29, %30 : vector<16x256xf32>
    %cst_15 = arith.constant 0.000000e+00 : f32
    %32 = vector.broadcast %cst_15 : f32 to vector<16x256xf32>
    %c73_i32 = arith.constant 73 : i32
    %33 = tpu.dynamic_rotate %31 by %c73_i32 dim 1 : vector<16x256xf32>, i32 -> vector<16x256xf32>
    %c0_16 = arith.constant 0 : index
    %c0_17 = arith.constant 0 : index
    %c0_18 = arith.constant 0 : index
    %34 = vector.load %arg13[%c0_16, %c0_17, %c0_18] : memref<27x1x256xf32, #tpu.memory_space<vmem>>, vector<1x1x256xf32>
    %35 = vector.shape_cast %34 : vector<1x1x256xf32> to vector<1x256xf32>
    %36 = vector.broadcast %35 : vector<1x256xf32> to vector<16x256xf32>
    %37 = arith.mulf %33, %36 : vector<16x256xf32>
    %38 = arith.truncf %37 : vector<16x256xf32> to vector<16x256xbf16>
    %c0_19 = arith.constant 0 : index
    %c0_20 = arith.constant 0 : index
    %c0_21 = arith.constant 0 : index
    %39 = vector.load %arg3[%c0_19, %c0_20, %c0_21] : memref<27x16x16xbf16, #tpu.memory_space<vmem>>, vector<1x16x16xbf16>
    %40 = vector.shape_cast %39 : vector<1x16x16xbf16> to vector<16x16xbf16>
    %cst_22 = arith.constant dense<0.000000e+00> : vector<16x256xf32>
    %41 = tpu.matmul %40, %38, %cst_22 {dimension_numbers = #tpu.dot_dimension_numbers<[1], [0], [0], [1], [0, 0, 1, 1], [], []>} : vector<16x16xbf16>, vector<16x256xbf16>, vector<16x256xf32> -> vector<16x256xf32>
    %42 = arith.addf %32, %41 : vector<16x256xf32>
    %c72_i32 = arith.constant 72 : i32
    %43 = tpu.dynamic_rotate %31 by %c72_i32 dim 1 : vector<16x256xf32>, i32 -> vector<16x256xf32>
    %c1 = arith.constant 1 : index
    %c0_23 = arith.constant 0 : index
    %c0_24 = arith.constant 0 : index
    %44 = vector.load %arg13[%c1, %c0_23, %c0_24] : memref<27x1x256xf32, #tpu.memory_space<vmem>>, vector<1x1x256xf32>
    %45 = vector.shape_cast %44 : vector<1x1x256xf32> to vector<1x256xf32>
    %46 = vector.broadcast %45 : vector<1x256xf32> to vector<16x256xf32>
    %47 = arith.mulf %43, %46 : vector<16x256xf32>
    %48 = arith.truncf %47 : vector<16x256xf32> to vector<16x256xbf16>
    %c1_25 = arith.constant 1 : index
    %c0_26 = arith.constant 0 : index
    %c0_27 = arith.constant 0 : index
    %49 = vector.load %arg3[%c1_25, %c0_26, %c0_27] : memref<27x16x16xbf16, #tpu.memory_space<vmem>>, vector<1x16x16xbf16>
    %50 = vector.shape_cast %49 : vector<1x16x16xbf16> to vector<16x16xbf16>
    %cst_28 = arith.constant dense<0.000000e+00> : vector<16x256xf32>
    %51 = tpu.matmul %50, %48, %cst_28 {dimension_numbers = #tpu.dot_dimension_numbers<[1], [0], [0], [1], [0, 0, 1, 1], [], []>} : vector<16x16xbf16>, vector<16x256xbf16>, vector<16x256xf32> -> vector<16x256xf32>
    %52 = arith.addf %42, %51 : vector<16x256xf32>
    %c71_i32 = arith.constant 71 : i32
    %53 = tpu.dynamic_rotate %31 by %c71_i32 dim 1 : vector<16x256xf32>, i32 -> vector<16x256xf32>
    %c2 = arith.constant 2 : index
    %c0_29 = arith.constant 0 : index
    %c0_30 = arith.constant 0 : index
    %54 = vector.load %arg13[%c2, %c0_29, %c0_30] : memref<27x1x256xf32, #tpu.memory_space<vmem>>, vector<1x1x256xf32>
    %55 = vector.shape_cast %54 : vector<1x1x256xf32> to vector<1x256xf32>
    %56 = vector.broadcast %55 : vector<1x256xf32> to vector<16x256xf32>
    %57 = arith.mulf %53, %56 : vector<16x256xf32>
    %58 = arith.truncf %57 : vector<16x256xf32> to vector<16x256xbf16>
    %c2_31 = arith.constant 2 : index
    %c0_32 = arith.constant 0 : index
    %c0_33 = arith.constant 0 : index
    %59 = vector.load %arg3[%c2_31, %c0_32, %c0_33] : memref<27x16x16xbf16, #tpu.memory_space<vmem>>, vector<1x16x16xbf16>
    %60 = vector.shape_cast %59 : vector<1x16x16xbf16> to vector<16x16xbf16>
    %cst_34 = arith.constant dense<0.000000e+00> : vector<16x256xf32>
    %61 = tpu.matmul %60, %58, %cst_34 {dimension_numbers = #tpu.dot_dimension_numbers<[1], [0], [0], [1], [0, 0, 1, 1], [], []>} : vector<16x16xbf16>, vector<16x256xbf16>, vector<16x256xf32> -> vector<16x256xf32>
    %62 = arith.addf %52, %61 : vector<16x256xf32>
    %c65_i32 = arith.constant 65 : i32
    %63 = tpu.dynamic_rotate %31 by %c65_i32 dim 1 : vector<16x256xf32>, i32 -> vector<16x256xf32>
    %c3 = arith.constant 3 : index
    %c0_35 = arith.constant 0 : index
    %c0_36 = arith.constant 0 : index
    %64 = vector.load %arg13[%c3, %c0_35, %c0_36] : memref<27x1x256xf32, #tpu.memory_space<vmem>>, vector<1x1x256xf32>
    %65 = vector.shape_cast %64 : vector<1x1x256xf32> to vector<1x256xf32>
    %66 = vector.broadcast %65 : vector<1x256xf32> to vector<16x256xf32>
    %67 = arith.mulf %63, %66 : vector<16x256xf32>
    %68 = arith.truncf %67 : vector<16x256xf32> to vector<16x256xbf16>
    %c3_37 = arith.constant 3 : index
    %c0_38 = arith.constant 0 : index
    %c0_39 = arith.constant 0 : index
    %69 = vector.load %arg3[%c3_37, %c0_38, %c0_39] : memref<27x16x16xbf16, #tpu.memory_space<vmem>>, vector<1x16x16xbf16>
    %70 = vector.shape_cast %69 : vector<1x16x16xbf16> to vector<16x16xbf16>
    %cst_40 = arith.constant dense<0.000000e+00> : vector<16x256xf32>
    %71 = tpu.matmul %70, %68, %cst_40 {dimension_numbers = #tpu.dot_dimension_numbers<[1], [0], [0], [1], [0, 0, 1, 1], [], []>} : vector<16x16xbf16>, vector<16x256xbf16>, vector<16x256xf32> -> vector<16x256xf32>
    %72 = arith.addf %62, %71 : vector<16x256xf32>
    %c64_i32 = arith.constant 64 : i32
    %73 = tpu.dynamic_rotate %31 by %c64_i32 dim 1 : vector<16x256xf32>, i32 -> vector<16x256xf32>
    %c4 = arith.constant 4 : index
    %c0_41 = arith.constant 0 : index
    %c0_42 = arith.constant 0 : index
    %74 = vector.load %arg13[%c4, %c0_41, %c0_42] : memref<27x1x256xf32, #tpu.memory_space<vmem>>, vector<1x1x256xf32>
    %75 = vector.shape_cast %74 : vector<1x1x256xf32> to vector<1x256xf32>
    %76 = vector.broadcast %75 : vector<1x256xf32> to vector<16x256xf32>
    %77 = arith.mulf %73, %76 : vector<16x256xf32>
    %78 = arith.truncf %77 : vector<16x256xf32> to vector<16x256xbf16>
    %c4_43 = arith.constant 4 : index
    %c0_44 = arith.constant 0 : index
    %c0_45 = arith.constant 0 : index
    %79 = vector.load %arg3[%c4_43, %c0_44, %c0_45] : memref<27x16x16xbf16, #tpu.memory_space<vmem>>, vector<1x16x16xbf16>
    %80 = vector.shape_cast %79 : vector<1x16x16xbf16> to vector<16x16xbf16>
    %cst_46 = arith.constant dense<0.000000e+00> : vector<16x256xf32>
    %81 = tpu.matmul %80, %78, %cst_46 {dimension_numbers = #tpu.dot_dimension_numbers<[1], [0], [0], [1], [0, 0, 1, 1], [], []>} : vector<16x16xbf16>, vector<16x256xbf16>, vector<16x256xf32> -> vector<16x256xf32>
    %82 = arith.addf %72, %81 : vector<16x256xf32>
    %c63_i32 = arith.constant 63 : i32
    %83 = tpu.dynamic_rotate %31 by %c63_i32 dim 1 : vector<16x256xf32>, i32 -> vector<16x256xf32>
    %c5 = arith.constant 5 : index
    %c0_47 = arith.constant 0 : index
    %c0_48 = arith.constant 0 : index
    %84 = vector.load %arg13[%c5, %c0_47, %c0_48] : memref<27x1x256xf32, #tpu.memory_space<vmem>>, vector<1x1x256xf32>
    %85 = vector.shape_cast %84 : vector<1x1x256xf32> to vector<1x256xf32>
    %86 = vector.broadcast %85 : vector<1x256xf32> to vector<16x256xf32>
    %87 = arith.mulf %83, %86 : vector<16x256xf32>
    %88 = arith.truncf %87 : vector<16x256xf32> to vector<16x256xbf16>
    %c5_49 = arith.constant 5 : index
    %c0_50 = arith.constant 0 : index
    %c0_51 = arith.constant 0 : index
    %89 = vector.load %arg3[%c5_49, %c0_50, %c0_51] : memref<27x16x16xbf16, #tpu.memory_space<vmem>>, vector<1x16x16xbf16>
    %90 = vector.shape_cast %89 : vector<1x16x16xbf16> to vector<16x16xbf16>
    %cst_52 = arith.constant dense<0.000000e+00> : vector<16x256xf32>
    %91 = tpu.matmul %90, %88, %cst_52 {dimension_numbers = #tpu.dot_dimension_numbers<[1], [0], [0], [1], [0, 0, 1, 1], [], []>} : vector<16x16xbf16>, vector<16x256xbf16>, vector<16x256xf32> -> vector<16x256xf32>
    %92 = arith.addf %82, %91 : vector<16x256xf32>
    %c57_i32 = arith.constant 57 : i32
    %93 = tpu.dynamic_rotate %31 by %c57_i32 dim 1 : vector<16x256xf32>, i32 -> vector<16x256xf32>
    %c6 = arith.constant 6 : index
    %c0_53 = arith.constant 0 : index
    %c0_54 = arith.constant 0 : index
    %94 = vector.load %arg13[%c6, %c0_53, %c0_54] : memref<27x1x256xf32, #tpu.memory_space<vmem>>, vector<1x1x256xf32>
    %95 = vector.shape_cast %94 : vector<1x1x256xf32> to vector<1x256xf32>
    %96 = vector.broadcast %95 : vector<1x256xf32> to vector<16x256xf32>
    %97 = arith.mulf %93, %96 : vector<16x256xf32>
    %98 = arith.truncf %97 : vector<16x256xf32> to vector<16x256xbf16>
    %c6_55 = arith.constant 6 : index
    %c0_56 = arith.constant 0 : index
    %c0_57 = arith.constant 0 : index
    %99 = vector.load %arg3[%c6_55, %c0_56, %c0_57] : memref<27x16x16xbf16, #tpu.memory_space<vmem>>, vector<1x16x16xbf16>
    %100 = vector.shape_cast %99 : vector<1x16x16xbf16> to vector<16x16xbf16>
    %cst_58 = arith.constant dense<0.000000e+00> : vector<16x256xf32>
    %101 = tpu.matmul %100, %98, %cst_58 {dimension_numbers = #tpu.dot_dimension_numbers<[1], [0], [0], [1], [0, 0, 1, 1], [], []>} : vector<16x16xbf16>, vector<16x256xbf16>, vector<16x256xf32> -> vector<16x256xf32>
    %102 = arith.addf %92, %101 : vector<16x256xf32>
    %c56_i32 = arith.constant 56 : i32
    %103 = tpu.dynamic_rotate %31 by %c56_i32 dim 1 : vector<16x256xf32>, i32 -> vector<16x256xf32>
    %c7 = arith.constant 7 : index
    %c0_59 = arith.constant 0 : index
    %c0_60 = arith.constant 0 : index
    %104 = vector.load %arg13[%c7, %c0_59, %c0_60] : memref<27x1x256xf32, #tpu.memory_space<vmem>>, vector<1x1x256xf32>
    %105 = vector.shape_cast %104 : vector<1x1x256xf32> to vector<1x256xf32>
    %106 = vector.broadcast %105 : vector<1x256xf32> to vector<16x256xf32>
    %107 = arith.mulf %103, %106 : vector<16x256xf32>
    %108 = arith.truncf %107 : vector<16x256xf32> to vector<16x256xbf16>
    %c7_61 = arith.constant 7 : index
    %c0_62 = arith.constant 0 : index
    %c0_63 = arith.constant 0 : index
    %109 = vector.load %arg3[%c7_61, %c0_62, %c0_63] : memref<27x16x16xbf16, #tpu.memory_space<vmem>>, vector<1x16x16xbf16>
    %110 = vector.shape_cast %109 : vector<1x16x16xbf16> to vector<16x16xbf16>
    %cst_64 = arith.constant dense<0.000000e+00> : vector<16x256xf32>
    %111 = tpu.matmul %110, %108, %cst_64 {dimension_numbers = #tpu.dot_dimension_numbers<[1], [0], [0], [1], [0, 0, 1, 1], [], []>} : vector<16x16xbf16>, vector<16x256xbf16>, vector<16x256xf32> -> vector<16x256xf32>
    %112 = arith.addf %102, %111 : vector<16x256xf32>
    %c55_i32 = arith.constant 55 : i32
    %113 = tpu.dynamic_rotate %31 by %c55_i32 dim 1 : vector<16x256xf32>, i32 -> vector<16x256xf32>
    %c8 = arith.constant 8 : index
    %c0_65 = arith.constant 0 : index
    %c0_66 = arith.constant 0 : index
    %114 = vector.load %arg13[%c8, %c0_65, %c0_66] : memref<27x1x256xf32, #tpu.memory_space<vmem>>, vector<1x1x256xf32>
    %115 = vector.shape_cast %114 : vector<1x1x256xf32> to vector<1x256xf32>
    %116 = vector.broadcast %115 : vector<1x256xf32> to vector<16x256xf32>
    %117 = arith.mulf %113, %116 : vector<16x256xf32>
    %118 = arith.truncf %117 : vector<16x256xf32> to vector<16x256xbf16>
    %c8_67 = arith.constant 8 : index
    %c0_68 = arith.constant 0 : index
    %c0_69 = arith.constant 0 : index
    %119 = vector.load %arg3[%c8_67, %c0_68, %c0_69] : memref<27x16x16xbf16, #tpu.memory_space<vmem>>, vector<1x16x16xbf16>
    %120 = vector.shape_cast %119 : vector<1x16x16xbf16> to vector<16x16xbf16>
    %cst_70 = arith.constant dense<0.000000e+00> : vector<16x256xf32>
    %121 = tpu.matmul %120, %118, %cst_70 {dimension_numbers = #tpu.dot_dimension_numbers<[1], [0], [0], [1], [0, 0, 1, 1], [], []>} : vector<16x16xbf16>, vector<16x256xbf16>, vector<16x256xf32> -> vector<16x256xf32>
    %122 = arith.addf %112, %121 : vector<16x256xf32>
    %c9_i32 = arith.constant 9 : i32
    %123 = tpu.dynamic_rotate %31 by %c9_i32 dim 1 : vector<16x256xf32>, i32 -> vector<16x256xf32>
    %c9 = arith.constant 9 : index
    %c0_71 = arith.constant 0 : index
    %c0_72 = arith.constant 0 : index
    %124 = vector.load %arg13[%c9, %c0_71, %c0_72] : memref<27x1x256xf32, #tpu.memory_space<vmem>>, vector<1x1x256xf32>
    %125 = vector.shape_cast %124 : vector<1x1x256xf32> to vector<1x256xf32>
    %126 = vector.broadcast %125 : vector<1x256xf32> to vector<16x256xf32>
    %127 = arith.mulf %123, %126 : vector<16x256xf32>
    %128 = arith.truncf %127 : vector<16x256xf32> to vector<16x256xbf16>
    %c9_73 = arith.constant 9 : index
    %c0_74 = arith.constant 0 : index
    %c0_75 = arith.constant 0 : index
    %129 = vector.load %arg3[%c9_73, %c0_74, %c0_75] : memref<27x16x16xbf16, #tpu.memory_space<vmem>>, vector<1x16x16xbf16>
    %130 = vector.shape_cast %129 : vector<1x16x16xbf16> to vector<16x16xbf16>
    %cst_76 = arith.constant dense<0.000000e+00> : vector<16x256xf32>
    %131 = tpu.matmul %130, %128, %cst_76 {dimension_numbers = #tpu.dot_dimension_numbers<[1], [0], [0], [1], [0, 0, 1, 1], [], []>} : vector<16x16xbf16>, vector<16x256xbf16>, vector<16x256xf32> -> vector<16x256xf32>
    %132 = arith.addf %122, %131 : vector<16x256xf32>
    %c8_i32 = arith.constant 8 : i32
    %133 = tpu.dynamic_rotate %31 by %c8_i32 dim 1 : vector<16x256xf32>, i32 -> vector<16x256xf32>
    %c10 = arith.constant 10 : index
    %c0_77 = arith.constant 0 : index
    %c0_78 = arith.constant 0 : index
    %134 = vector.load %arg13[%c10, %c0_77, %c0_78] : memref<27x1x256xf32, #tpu.memory_space<vmem>>, vector<1x1x256xf32>
    %135 = vector.shape_cast %134 : vector<1x1x256xf32> to vector<1x256xf32>
    %136 = vector.broadcast %135 : vector<1x256xf32> to vector<16x256xf32>
    %137 = arith.mulf %133, %136 : vector<16x256xf32>
    %138 = arith.truncf %137 : vector<16x256xf32> to vector<16x256xbf16>
    %c10_79 = arith.constant 10 : index
    %c0_80 = arith.constant 0 : index
    %c0_81 = arith.constant 0 : index
    %139 = vector.load %arg3[%c10_79, %c0_80, %c0_81] : memref<27x16x16xbf16, #tpu.memory_space<vmem>>, vector<1x16x16xbf16>
    %140 = vector.shape_cast %139 : vector<1x16x16xbf16> to vector<16x16xbf16>
    %cst_82 = arith.constant dense<0.000000e+00> : vector<16x256xf32>
    %141 = tpu.matmul %140, %138, %cst_82 {dimension_numbers = #tpu.dot_dimension_numbers<[1], [0], [0], [1], [0, 0, 1, 1], [], []>} : vector<16x16xbf16>, vector<16x256xbf16>, vector<16x256xf32> -> vector<16x256xf32>
    %142 = arith.addf %132, %141 : vector<16x256xf32>
    %c7_i32 = arith.constant 7 : i32
    %143 = tpu.dynamic_rotate %31 by %c7_i32 dim 1 : vector<16x256xf32>, i32 -> vector<16x256xf32>
    %c11 = arith.constant 11 : index
    %c0_83 = arith.constant 0 : index
    %c0_84 = arith.constant 0 : index
    %144 = vector.load %arg13[%c11, %c0_83, %c0_84] : memref<27x1x256xf32, #tpu.memory_space<vmem>>, vector<1x1x256xf32>
    %145 = vector.shape_cast %144 : vector<1x1x256xf32> to vector<1x256xf32>
    %146 = vector.broadcast %145 : vector<1x256xf32> to vector<16x256xf32>
    %147 = arith.mulf %143, %146 : vector<16x256xf32>
    %148 = arith.truncf %147 : vector<16x256xf32> to vector<16x256xbf16>
    %c11_85 = arith.constant 11 : index
    %c0_86 = arith.constant 0 : index
    %c0_87 = arith.constant 0 : index
    %149 = vector.load %arg3[%c11_85, %c0_86, %c0_87] : memref<27x16x16xbf16, #tpu.memory_space<vmem>>, vector<1x16x16xbf16>
    %150 = vector.shape_cast %149 : vector<1x16x16xbf16> to vector<16x16xbf16>
    %cst_88 = arith.constant dense<0.000000e+00> : vector<16x256xf32>
    %151 = tpu.matmul %150, %148, %cst_88 {dimension_numbers = #tpu.dot_dimension_numbers<[1], [0], [0], [1], [0, 0, 1, 1], [], []>} : vector<16x16xbf16>, vector<16x256xbf16>, vector<16x256xf32> -> vector<16x256xf32>
    %152 = arith.addf %142, %151 : vector<16x256xf32>
    %c1_i32 = arith.constant 1 : i32
    %153 = tpu.dynamic_rotate %31 by %c1_i32 dim 1 : vector<16x256xf32>, i32 -> vector<16x256xf32>
    %c12 = arith.constant 12 : index
    %c0_89 = arith.constant 0 : index
    %c0_90 = arith.constant 0 : index
    %154 = vector.load %arg13[%c12, %c0_89, %c0_90] : memref<27x1x256xf32, #tpu.memory_space<vmem>>, vector<1x1x256xf32>
    %155 = vector.shape_cast %154 : vector<1x1x256xf32> to vector<1x256xf32>
    %156 = vector.broadcast %155 : vector<1x256xf32> to vector<16x256xf32>
    %157 = arith.mulf %153, %156 : vector<16x256xf32>
    %158 = arith.truncf %157 : vector<16x256xf32> to vector<16x256xbf16>
    %c12_91 = arith.constant 12 : index
    %c0_92 = arith.constant 0 : index
    %c0_93 = arith.constant 0 : index
    %159 = vector.load %arg3[%c12_91, %c0_92, %c0_93] : memref<27x16x16xbf16, #tpu.memory_space<vmem>>, vector<1x16x16xbf16>
    %160 = vector.shape_cast %159 : vector<1x16x16xbf16> to vector<16x16xbf16>
    %cst_94 = arith.constant dense<0.000000e+00> : vector<16x256xf32>
    %161 = tpu.matmul %160, %158, %cst_94 {dimension_numbers = #tpu.dot_dimension_numbers<[1], [0], [0], [1], [0, 0, 1, 1], [], []>} : vector<16x16xbf16>, vector<16x256xbf16>, vector<16x256xf32> -> vector<16x256xf32>
    %162 = arith.addf %152, %161 : vector<16x256xf32>
    %c13 = arith.constant 13 : index
    %c0_95 = arith.constant 0 : index
    %c0_96 = arith.constant 0 : index
    %163 = vector.load %arg13[%c13, %c0_95, %c0_96] : memref<27x1x256xf32, #tpu.memory_space<vmem>>, vector<1x1x256xf32>
    %164 = vector.shape_cast %163 : vector<1x1x256xf32> to vector<1x256xf32>
    %165 = vector.broadcast %164 : vector<1x256xf32> to vector<16x256xf32>
    %166 = arith.mulf %31, %165 : vector<16x256xf32>
    %167 = arith.truncf %166 : vector<16x256xf32> to vector<16x256xbf16>
    %c13_97 = arith.constant 13 : index
    %c0_98 = arith.constant 0 : index
    %c0_99 = arith.constant 0 : index
    %168 = vector.load %arg3[%c13_97, %c0_98, %c0_99] : memref<27x16x16xbf16, #tpu.memory_space<vmem>>, vector<1x16x16xbf16>
    %169 = vector.shape_cast %168 : vector<1x16x16xbf16> to vector<16x16xbf16>
    %cst_100 = arith.constant dense<0.000000e+00> : vector<16x256xf32>
    %170 = tpu.matmul %169, %167, %cst_100 {dimension_numbers = #tpu.dot_dimension_numbers<[1], [0], [0], [1], [0, 0, 1, 1], [], []>} : vector<16x16xbf16>, vector<16x256xbf16>, vector<16x256xf32> -> vector<16x256xf32>
    %171 = arith.addf %162, %170 : vector<16x256xf32>
    %c255_i32 = arith.constant 255 : i32
    %172 = tpu.dynamic_rotate %31 by %c255_i32 dim 1 : vector<16x256xf32>, i32 -> vector<16x256xf32>
    %c14 = arith.constant 14 : index
    %c0_101 = arith.constant 0 : index
    %c0_102 = arith.constant 0 : index
    %173 = vector.load %arg13[%c14, %c0_101, %c0_102] : memref<27x1x256xf32, #tpu.memory_space<vmem>>, vector<1x1x256xf32>
    %174 = vector.shape_cast %173 : vector<1x1x256xf32> to vector<1x256xf32>
    %175 = vector.broadcast %174 : vector<1x256xf32> to vector<16x256xf32>
    %176 = arith.mulf %172, %175 : vector<16x256xf32>
    %177 = arith.truncf %176 : vector<16x256xf32> to vector<16x256xbf16>
    %c14_103 = arith.constant 14 : index
    %c0_104 = arith.constant 0 : index
    %c0_105 = arith.constant 0 : index
    %178 = vector.load %arg3[%c14_103, %c0_104, %c0_105] : memref<27x16x16xbf16, #tpu.memory_space<vmem>>, vector<1x16x16xbf16>
    %179 = vector.shape_cast %178 : vector<1x16x16xbf16> to vector<16x16xbf16>
    %cst_106 = arith.constant dense<0.000000e+00> : vector<16x256xf32>
    %180 = tpu.matmul %179, %177, %cst_106 {dimension_numbers = #tpu.dot_dimension_numbers<[1], [0], [0], [1], [0, 0, 1, 1], [], []>} : vector<16x16xbf16>, vector<16x256xbf16>, vector<16x256xf32> -> vector<16x256xf32>
    %181 = arith.addf %171, %180 : vector<16x256xf32>
    %c249_i32 = arith.constant 249 : i32
    %182 = tpu.dynamic_rotate %31 by %c249_i32 dim 1 : vector<16x256xf32>, i32 -> vector<16x256xf32>
    %c15 = arith.constant 15 : index
    %c0_107 = arith.constant 0 : index
    %c0_108 = arith.constant 0 : index
    %183 = vector.load %arg13[%c15, %c0_107, %c0_108] : memref<27x1x256xf32, #tpu.memory_space<vmem>>, vector<1x1x256xf32>
    %184 = vector.shape_cast %183 : vector<1x1x256xf32> to vector<1x256xf32>
    %185 = vector.broadcast %184 : vector<1x256xf32> to vector<16x256xf32>
    %186 = arith.mulf %182, %185 : vector<16x256xf32>
    %187 = arith.truncf %186 : vector<16x256xf32> to vector<16x256xbf16>
    %c15_109 = arith.constant 15 : index
    %c0_110 = arith.constant 0 : index
    %c0_111 = arith.constant 0 : index
    %188 = vector.load %arg3[%c15_109, %c0_110, %c0_111] : memref<27x16x16xbf16, #tpu.memory_space<vmem>>, vector<1x16x16xbf16>
    %189 = vector.shape_cast %188 : vector<1x16x16xbf16> to vector<16x16xbf16>
    %cst_112 = arith.constant dense<0.000000e+00> : vector<16x256xf32>
    %190 = tpu.matmul %189, %187, %cst_112 {dimension_numbers = #tpu.dot_dimension_numbers<[1], [0], [0], [1], [0, 0, 1, 1], [], []>} : vector<16x16xbf16>, vector<16x256xbf16>, vector<16x256xf32> -> vector<16x256xf32>
    %191 = arith.addf %181, %190 : vector<16x256xf32>
    %c248_i32 = arith.constant 248 : i32
    %192 = tpu.dynamic_rotate %31 by %c248_i32 dim 1 : vector<16x256xf32>, i32 -> vector<16x256xf32>
    %c16 = arith.constant 16 : index
    %c0_113 = arith.constant 0 : index
    %c0_114 = arith.constant 0 : index
    %193 = vector.load %arg13[%c16, %c0_113, %c0_114] : memref<27x1x256xf32, #tpu.memory_space<vmem>>, vector<1x1x256xf32>
    %194 = vector.shape_cast %193 : vector<1x1x256xf32> to vector<1x256xf32>
    %195 = vector.broadcast %194 : vector<1x256xf32> to vector<16x256xf32>
    %196 = arith.mulf %192, %195 : vector<16x256xf32>
    %197 = arith.truncf %196 : vector<16x256xf32> to vector<16x256xbf16>
    %c16_115 = arith.constant 16 : index
    %c0_116 = arith.constant 0 : index
    %c0_117 = arith.constant 0 : index
    %198 = vector.load %arg3[%c16_115, %c0_116, %c0_117] : memref<27x16x16xbf16, #tpu.memory_space<vmem>>, vector<1x16x16xbf16>
    %199 = vector.shape_cast %198 : vector<1x16x16xbf16> to vector<16x16xbf16>
    %cst_118 = arith.constant dense<0.000000e+00> : vector<16x256xf32>
    %200 = tpu.matmul %199, %197, %cst_118 {dimension_numbers = #tpu.dot_dimension_numbers<[1], [0], [0], [1], [0, 0, 1, 1], [], []>} : vector<16x16xbf16>, vector<16x256xbf16>, vector<16x256xf32> -> vector<16x256xf32>
    %201 = arith.addf %191, %200 : vector<16x256xf32>
    %c247_i32 = arith.constant 247 : i32
    %202 = tpu.dynamic_rotate %31 by %c247_i32 dim 1 : vector<16x256xf32>, i32 -> vector<16x256xf32>
    %c17 = arith.constant 17 : index
    %c0_119 = arith.constant 0 : index
    %c0_120 = arith.constant 0 : index
    %203 = vector.load %arg13[%c17, %c0_119, %c0_120] : memref<27x1x256xf32, #tpu.memory_space<vmem>>, vector<1x1x256xf32>
    %204 = vector.shape_cast %203 : vector<1x1x256xf32> to vector<1x256xf32>
    %205 = vector.broadcast %204 : vector<1x256xf32> to vector<16x256xf32>
    %206 = arith.mulf %202, %205 : vector<16x256xf32>
    %207 = arith.truncf %206 : vector<16x256xf32> to vector<16x256xbf16>
    %c17_121 = arith.constant 17 : index
    %c0_122 = arith.constant 0 : index
    %c0_123 = arith.constant 0 : index
    %208 = vector.load %arg3[%c17_121, %c0_122, %c0_123] : memref<27x16x16xbf16, #tpu.memory_space<vmem>>, vector<1x16x16xbf16>
    %209 = vector.shape_cast %208 : vector<1x16x16xbf16> to vector<16x16xbf16>
    %cst_124 = arith.constant dense<0.000000e+00> : vector<16x256xf32>
    %210 = tpu.matmul %209, %207, %cst_124 {dimension_numbers = #tpu.dot_dimension_numbers<[1], [0], [0], [1], [0, 0, 1, 1], [], []>} : vector<16x16xbf16>, vector<16x256xbf16>, vector<16x256xf32> -> vector<16x256xf32>
    %211 = arith.addf %201, %210 : vector<16x256xf32>
    %c201_i32 = arith.constant 201 : i32
    %212 = tpu.dynamic_rotate %31 by %c201_i32 dim 1 : vector<16x256xf32>, i32 -> vector<16x256xf32>
    %c18 = arith.constant 18 : index
    %c0_125 = arith.constant 0 : index
    %c0_126 = arith.constant 0 : index
    %213 = vector.load %arg13[%c18, %c0_125, %c0_126] : memref<27x1x256xf32, #tpu.memory_space<vmem>>, vector<1x1x256xf32>
    %214 = vector.shape_cast %213 : vector<1x1x256xf32> to vector<1x256xf32>
    %215 = vector.broadcast %214 : vector<1x256xf32> to vector<16x256xf32>
    %216 = arith.mulf %212, %215 : vector<16x256xf32>
    %217 = arith.truncf %216 : vector<16x256xf32> to vector<16x256xbf16>
    %c18_127 = arith.constant 18 : index
    %c0_128 = arith.constant 0 : index
    %c0_129 = arith.constant 0 : index
    %218 = vector.load %arg3[%c18_127, %c0_128, %c0_129] : memref<27x16x16xbf16, #tpu.memory_space<vmem>>, vector<1x16x16xbf16>
    %219 = vector.shape_cast %218 : vector<1x16x16xbf16> to vector<16x16xbf16>
    %cst_130 = arith.constant dense<0.000000e+00> : vector<16x256xf32>
    %220 = tpu.matmul %219, %217, %cst_130 {dimension_numbers = #tpu.dot_dimension_numbers<[1], [0], [0], [1], [0, 0, 1, 1], [], []>} : vector<16x16xbf16>, vector<16x256xbf16>, vector<16x256xf32> -> vector<16x256xf32>
    %221 = arith.addf %211, %220 : vector<16x256xf32>
    %c200_i32 = arith.constant 200 : i32
    %222 = tpu.dynamic_rotate %31 by %c200_i32 dim 1 : vector<16x256xf32>, i32 -> vector<16x256xf32>
    %c19 = arith.constant 19 : index
    %c0_131 = arith.constant 0 : index
    %c0_132 = arith.constant 0 : index
    %223 = vector.load %arg13[%c19, %c0_131, %c0_132] : memref<27x1x256xf32, #tpu.memory_space<vmem>>, vector<1x1x256xf32>
    %224 = vector.shape_cast %223 : vector<1x1x256xf32> to vector<1x256xf32>
    %225 = vector.broadcast %224 : vector<1x256xf32> to vector<16x256xf32>
    %226 = arith.mulf %222, %225 : vector<16x256xf32>
    %227 = arith.truncf %226 : vector<16x256xf32> to vector<16x256xbf16>
    %c19_133 = arith.constant 19 : index
    %c0_134 = arith.constant 0 : index
    %c0_135 = arith.constant 0 : index
    %228 = vector.load %arg3[%c19_133, %c0_134, %c0_135] : memref<27x16x16xbf16, #tpu.memory_space<vmem>>, vector<1x16x16xbf16>
    %229 = vector.shape_cast %228 : vector<1x16x16xbf16> to vector<16x16xbf16>
    %cst_136 = arith.constant dense<0.000000e+00> : vector<16x256xf32>
    %230 = tpu.matmul %229, %227, %cst_136 {dimension_numbers = #tpu.dot_dimension_numbers<[1], [0], [0], [1], [0, 0, 1, 1], [], []>} : vector<16x16xbf16>, vector<16x256xbf16>, vector<16x256xf32> -> vector<16x256xf32>
    %231 = arith.addf %221, %230 : vector<16x256xf32>
    %c199_i32 = arith.constant 199 : i32
    %232 = tpu.dynamic_rotate %31 by %c199_i32 dim 1 : vector<16x256xf32>, i32 -> vector<16x256xf32>
    %c20 = arith.constant 20 : index
    %c0_137 = arith.constant 0 : index
    %c0_138 = arith.constant 0 : index
    %233 = vector.load %arg13[%c20, %c0_137, %c0_138] : memref<27x1x256xf32, #tpu.memory_space<vmem>>, vector<1x1x256xf32>
    %234 = vector.shape_cast %233 : vector<1x1x256xf32> to vector<1x256xf32>
    %235 = vector.broadcast %234 : vector<1x256xf32> to vector<16x256xf32>
    %236 = arith.mulf %232, %235 : vector<16x256xf32>
    %237 = arith.truncf %236 : vector<16x256xf32> to vector<16x256xbf16>
    %c20_139 = arith.constant 20 : index
    %c0_140 = arith.constant 0 : index
    %c0_141 = arith.constant 0 : index
    %238 = vector.load %arg3[%c20_139, %c0_140, %c0_141] : memref<27x16x16xbf16, #tpu.memory_space<vmem>>, vector<1x16x16xbf16>
    %239 = vector.shape_cast %238 : vector<1x16x16xbf16> to vector<16x16xbf16>
    %cst_142 = arith.constant dense<0.000000e+00> : vector<16x256xf32>
    %240 = tpu.matmul %239, %237, %cst_142 {dimension_numbers = #tpu.dot_dimension_numbers<[1], [0], [0], [1], [0, 0, 1, 1], [], []>} : vector<16x16xbf16>, vector<16x256xbf16>, vector<16x256xf32> -> vector<16x256xf32>
    %241 = arith.addf %231, %240 : vector<16x256xf32>
    %c193_i32 = arith.constant 193 : i32
    %242 = tpu.dynamic_rotate %31 by %c193_i32 dim 1 : vector<16x256xf32>, i32 -> vector<16x256xf32>
    %c21 = arith.constant 21 : index
    %c0_143 = arith.constant 0 : index
    %c0_144 = arith.constant 0 : index
    %243 = vector.load %arg13[%c21, %c0_143, %c0_144] : memref<27x1x256xf32, #tpu.memory_space<vmem>>, vector<1x1x256xf32>
    %244 = vector.shape_cast %243 : vector<1x1x256xf32> to vector<1x256xf32>
    %245 = vector.broadcast %244 : vector<1x256xf32> to vector<16x256xf32>
    %246 = arith.mulf %242, %245 : vector<16x256xf32>
    %247 = arith.truncf %246 : vector<16x256xf32> to vector<16x256xbf16>
    %c21_145 = arith.constant 21 : index
    %c0_146 = arith.constant 0 : index
    %c0_147 = arith.constant 0 : index
    %248 = vector.load %arg3[%c21_145, %c0_146, %c0_147] : memref<27x16x16xbf16, #tpu.memory_space<vmem>>, vector<1x16x16xbf16>
    %249 = vector.shape_cast %248 : vector<1x16x16xbf16> to vector<16x16xbf16>
    %cst_148 = arith.constant dense<0.000000e+00> : vector<16x256xf32>
    %250 = tpu.matmul %249, %247, %cst_148 {dimension_numbers = #tpu.dot_dimension_numbers<[1], [0], [0], [1], [0, 0, 1, 1], [], []>} : vector<16x16xbf16>, vector<16x256xbf16>, vector<16x256xf32> -> vector<16x256xf32>
    %251 = arith.addf %241, %250 : vector<16x256xf32>
    %c192_i32 = arith.constant 192 : i32
    %252 = tpu.dynamic_rotate %31 by %c192_i32 dim 1 : vector<16x256xf32>, i32 -> vector<16x256xf32>
    %c22 = arith.constant 22 : index
    %c0_149 = arith.constant 0 : index
    %c0_150 = arith.constant 0 : index
    %253 = vector.load %arg13[%c22, %c0_149, %c0_150] : memref<27x1x256xf32, #tpu.memory_space<vmem>>, vector<1x1x256xf32>
    %254 = vector.shape_cast %253 : vector<1x1x256xf32> to vector<1x256xf32>
    %255 = vector.broadcast %254 : vector<1x256xf32> to vector<16x256xf32>
    %256 = arith.mulf %252, %255 : vector<16x256xf32>
    %257 = arith.truncf %256 : vector<16x256xf32> to vector<16x256xbf16>
    %c22_151 = arith.constant 22 : index
    %c0_152 = arith.constant 0 : index
    %c0_153 = arith.constant 0 : index
    %258 = vector.load %arg3[%c22_151, %c0_152, %c0_153] : memref<27x16x16xbf16, #tpu.memory_space<vmem>>, vector<1x16x16xbf16>
    %259 = vector.shape_cast %258 : vector<1x16x16xbf16> to vector<16x16xbf16>
    %cst_154 = arith.constant dense<0.000000e+00> : vector<16x256xf32>
    %260 = tpu.matmul %259, %257, %cst_154 {dimension_numbers = #tpu.dot_dimension_numbers<[1], [0], [0], [1], [0, 0, 1, 1], [], []>} : vector<16x16xbf16>, vector<16x256xbf16>, vector<16x256xf32> -> vector<16x256xf32>
    %261 = arith.addf %251, %260 : vector<16x256xf32>
    %c191_i32 = arith.constant 191 : i32
    %262 = tpu.dynamic_rotate %31 by %c191_i32 dim 1 : vector<16x256xf32>, i32 -> vector<16x256xf32>
    %c23 = arith.constant 23 : index
    %c0_155 = arith.constant 0 : index
    %c0_156 = arith.constant 0 : index
    %263 = vector.load %arg13[%c23, %c0_155, %c0_156] : memref<27x1x256xf32, #tpu.memory_space<vmem>>, vector<1x1x256xf32>
    %264 = vector.shape_cast %263 : vector<1x1x256xf32> to vector<1x256xf32>
    %265 = vector.broadcast %264 : vector<1x256xf32> to vector<16x256xf32>
    %266 = arith.mulf %262, %265 : vector<16x256xf32>
    %267 = arith.truncf %266 : vector<16x256xf32> to vector<16x256xbf16>
    %c23_157 = arith.constant 23 : index
    %c0_158 = arith.constant 0 : index
    %c0_159 = arith.constant 0 : index
    %268 = vector.load %arg3[%c23_157, %c0_158, %c0_159] : memref<27x16x16xbf16, #tpu.memory_space<vmem>>, vector<1x16x16xbf16>
    %269 = vector.shape_cast %268 : vector<1x16x16xbf16> to vector<16x16xbf16>
    %cst_160 = arith.constant dense<0.000000e+00> : vector<16x256xf32>
    %270 = tpu.matmul %269, %267, %cst_160 {dimension_numbers = #tpu.dot_dimension_numbers<[1], [0], [0], [1], [0, 0, 1, 1], [], []>} : vector<16x16xbf16>, vector<16x256xbf16>, vector<16x256xf32> -> vector<16x256xf32>
    %271 = arith.addf %261, %270 : vector<16x256xf32>
    %c185_i32 = arith.constant 185 : i32
    %272 = tpu.dynamic_rotate %31 by %c185_i32 dim 1 : vector<16x256xf32>, i32 -> vector<16x256xf32>
    %c24 = arith.constant 24 : index
    %c0_161 = arith.constant 0 : index
    %c0_162 = arith.constant 0 : index
    %273 = vector.load %arg13[%c24, %c0_161, %c0_162] : memref<27x1x256xf32, #tpu.memory_space<vmem>>, vector<1x1x256xf32>
    %274 = vector.shape_cast %273 : vector<1x1x256xf32> to vector<1x256xf32>
    %275 = vector.broadcast %274 : vector<1x256xf32> to vector<16x256xf32>
    %276 = arith.mulf %272, %275 : vector<16x256xf32>
    %277 = arith.truncf %276 : vector<16x256xf32> to vector<16x256xbf16>
    %c24_163 = arith.constant 24 : index
    %c0_164 = arith.constant 0 : index
    %c0_165 = arith.constant 0 : index
    %278 = vector.load %arg3[%c24_163, %c0_164, %c0_165] : memref<27x16x16xbf16, #tpu.memory_space<vmem>>, vector<1x16x16xbf16>
    %279 = vector.shape_cast %278 : vector<1x16x16xbf16> to vector<16x16xbf16>
    %cst_166 = arith.constant dense<0.000000e+00> : vector<16x256xf32>
    %280 = tpu.matmul %279, %277, %cst_166 {dimension_numbers = #tpu.dot_dimension_numbers<[1], [0], [0], [1], [0, 0, 1, 1], [], []>} : vector<16x16xbf16>, vector<16x256xbf16>, vector<16x256xf32> -> vector<16x256xf32>
    %281 = arith.addf %271, %280 : vector<16x256xf32>
    %c184_i32 = arith.constant 184 : i32
    %282 = tpu.dynamic_rotate %31 by %c184_i32 dim 1 : vector<16x256xf32>, i32 -> vector<16x256xf32>
    %c25 = arith.constant 25 : index
    %c0_167 = arith.constant 0 : index
    %c0_168 = arith.constant 0 : index
    %283 = vector.load %arg13[%c25, %c0_167, %c0_168] : memref<27x1x256xf32, #tpu.memory_space<vmem>>, vector<1x1x256xf32>
    %284 = vector.shape_cast %283 : vector<1x1x256xf32> to vector<1x256xf32>
    %285 = vector.broadcast %284 : vector<1x256xf32> to vector<16x256xf32>
    %286 = arith.mulf %282, %285 : vector<16x256xf32>
    %287 = arith.truncf %286 : vector<16x256xf32> to vector<16x256xbf16>
    %c25_169 = arith.constant 25 : index
    %c0_170 = arith.constant 0 : index
    %c0_171 = arith.constant 0 : index
    %288 = vector.load %arg3[%c25_169, %c0_170, %c0_171] : memref<27x16x16xbf16, #tpu.memory_space<vmem>>, vector<1x16x16xbf16>
    %289 = vector.shape_cast %288 : vector<1x16x16xbf16> to vector<16x16xbf16>
    %cst_172 = arith.constant dense<0.000000e+00> : vector<16x256xf32>
    %290 = tpu.matmul %289, %287, %cst_172 {dimension_numbers = #tpu.dot_dimension_numbers<[1], [0], [0], [1], [0, 0, 1, 1], [], []>} : vector<16x16xbf16>, vector<16x256xbf16>, vector<16x256xf32> -> vector<16x256xf32>
    %291 = arith.addf %281, %290 : vector<16x256xf32>
    %c183_i32 = arith.constant 183 : i32
    %292 = tpu.dynamic_rotate %31 by %c183_i32 dim 1 : vector<16x256xf32>, i32 -> vector<16x256xf32>
    %c26 = arith.constant 26 : index
    %c0_173 = arith.constant 0 : index
    %c0_174 = arith.constant 0 : index
    %293 = vector.load %arg13[%c26, %c0_173, %c0_174] : memref<27x1x256xf32, #tpu.memory_space<vmem>>, vector<1x1x256xf32>
    %294 = vector.shape_cast %293 : vector<1x1x256xf32> to vector<1x256xf32>
    %295 = vector.broadcast %294 : vector<1x256xf32> to vector<16x256xf32>
    %296 = arith.mulf %292, %295 : vector<16x256xf32>
    %297 = arith.truncf %296 : vector<16x256xf32> to vector<16x256xbf16>
    %c26_175 = arith.constant 26 : index
    %c0_176 = arith.constant 0 : index
    %c0_177 = arith.constant 0 : index
    %298 = vector.load %arg3[%c26_175, %c0_176, %c0_177] : memref<27x16x16xbf16, #tpu.memory_space<vmem>>, vector<1x16x16xbf16>
    %299 = vector.shape_cast %298 : vector<1x16x16xbf16> to vector<16x16xbf16>
    %cst_178 = arith.constant dense<0.000000e+00> : vector<16x256xf32>
    %300 = tpu.matmul %299, %297, %cst_178 {dimension_numbers = #tpu.dot_dimension_numbers<[1], [0], [0], [1], [0, 0, 1, 1], [], []>} : vector<16x16xbf16>, vector<16x256xbf16>, vector<16x256xf32> -> vector<16x256xf32>
    %301 = arith.addf %291, %300 : vector<16x256xf32>
    %cst_179 = arith.constant dense<0.000000e+00> : vector<16xf32>
    %302 = vector.multi_reduction <add>, %301, %cst_179 [1] : vector<16x256xf32> to vector<16xf32>
    %303 = vector.shape_cast %302 : vector<16xf32> to vector<16x1xf32>
    %304 = arith.mulf %301, %301 : vector<16x256xf32>
    %cst_180 = arith.constant dense<0.000000e+00> : vector<16xf32>
    %305 = vector.multi_reduction <add>, %304, %cst_180 [1] : vector<16x256xf32> to vector<16xf32>
    %306 = vector.shape_cast %305 : vector<16xf32> to vector<16x1xf32>
    %cst_181 = arith.constant 3.906250e-03 : f32
    %307 = vector.broadcast %cst_181 : f32 to vector<16x1xf32>
    %308 = arith.mulf %303, %307 : vector<16x1xf32>
    %cst_182 = arith.constant 3.906250e-03 : f32
    %309 = vector.broadcast %cst_182 : f32 to vector<16x1xf32>
    %310 = arith.mulf %306, %309 : vector<16x1xf32>
    %311 = arith.mulf %308, %308 : vector<16x1xf32>
    %312 = arith.subf %310, %311 : vector<16x1xf32>
    %cst_183 = arith.constant 0.000000e+00 : f32
    %313 = vector.broadcast %cst_183 : f32 to vector<16x1xf32>
    %314 = arith.maximumf %312, %313 : vector<16x1xf32>
    %cst_184 = arith.constant 9.99999974E-6 : f32
    %315 = vector.broadcast %cst_184 : f32 to vector<16x1xf32>
    %316 = arith.addf %314, %315 : vector<16x1xf32>
    %317 = math.rsqrt %316 : vector<16x1xf32>
    %318 = vector.broadcast %308 : vector<16x1xf32> to vector<16x256xf32>
    %319 = arith.subf %301, %318 : vector<16x256xf32>
    %c0_185 = arith.constant 0 : index
    %c0_186 = arith.constant 0 : index
    %320 = vector.load %arg7[%c0_185, %c0_186] : memref<16x1xf32, #tpu.memory_space<vmem>>, vector<16x1xf32>
    %321 = arith.mulf %317, %320 : vector<16x1xf32>
    %322 = vector.broadcast %321 : vector<16x1xf32> to vector<16x256xf32>
    %323 = arith.mulf %319, %322 : vector<16x256xf32>
    %c0_187 = arith.constant 0 : index
    %c0_188 = arith.constant 0 : index
    %324 = vector.load %arg8[%c0_187, %c0_188] : memref<16x1xf32, #tpu.memory_space<vmem>>, vector<16x1xf32>
    %325 = vector.broadcast %324 : vector<16x1xf32> to vector<16x256xf32>
    %326 = arith.addf %323, %325 : vector<16x256xf32>
    %cst_189 = arith.constant 0.000000e+00 : f32
    %327 = vector.broadcast %cst_189 : f32 to vector<16x256xf32>
    %328 = arith.maximumf %326, %327 : vector<16x256xf32>
    %c0_190 = arith.constant 0 : index
    %c0_191 = arith.constant 0 : index
    %329 = vector.load %arg4[%c0_190, %c0_191] : memref<64x16xbf16, #tpu.memory_space<vmem>>, vector<64x16xbf16>
    %330 = arith.truncf %328 : vector<16x256xf32> to vector<16x256xbf16>
    %cst_192 = arith.constant dense<0.000000e+00> : vector<64x256xf32>
    %331 = tpu.matmul %329, %330, %cst_192 {dimension_numbers = #tpu.dot_dimension_numbers<[1], [0], [0], [1], [0, 0, 1, 1], [], []>} : vector<64x16xbf16>, vector<16x256xbf16>, vector<64x256xf32> -> vector<64x256xf32>
    %cst_193 = arith.constant dense<0.000000e+00> : vector<64xf32>
    %332 = vector.multi_reduction <add>, %331, %cst_193 [1] : vector<64x256xf32> to vector<64xf32>
    %333 = vector.shape_cast %332 : vector<64xf32> to vector<64x1xf32>
    %334 = arith.mulf %331, %331 : vector<64x256xf32>
    %cst_194 = arith.constant dense<0.000000e+00> : vector<64xf32>
    %335 = vector.multi_reduction <add>, %334, %cst_194 [1] : vector<64x256xf32> to vector<64xf32>
    %336 = vector.shape_cast %335 : vector<64xf32> to vector<64x1xf32>
    %c0_195 = arith.constant 0 : index
    %c0_196 = arith.constant 0 : index
    %337 = vector.load %arg12[%c0_195, %c0_196] : memref<64x64xf32, #tpu.memory_space<vmem>>, vector<64x64xf32>
    %cst_197 = arith.constant dense<0.000000e+00> : vector<64x1xf32>
    %338 = tpu.matmul %337, %333, %cst_197 {dimension_numbers = #tpu.dot_dimension_numbers<[1], [0], [0], [1], [0, 0, 1, 1], [], []>} : vector<64x64xf32>, vector<64x1xf32>, vector<64x1xf32> -> vector<64x1xf32>
    %cst_198 = arith.constant 9.765625E-4 : f32
    %339 = vector.broadcast %cst_198 : f32 to vector<64x1xf32>
    %340 = arith.mulf %338, %339 : vector<64x1xf32>
    %c0_199 = arith.constant 0 : index
    %c0_200 = arith.constant 0 : index
    %341 = vector.load %arg12[%c0_199, %c0_200] : memref<64x64xf32, #tpu.memory_space<vmem>>, vector<64x64xf32>
    %cst_201 = arith.constant dense<0.000000e+00> : vector<64x1xf32>
    %342 = tpu.matmul %341, %336, %cst_201 {dimension_numbers = #tpu.dot_dimension_numbers<[1], [0], [0], [1], [0, 0, 1, 1], [], []>} : vector<64x64xf32>, vector<64x1xf32>, vector<64x1xf32> -> vector<64x1xf32>
    %cst_202 = arith.constant 9.765625E-4 : f32
    %343 = vector.broadcast %cst_202 : f32 to vector<64x1xf32>
    %344 = arith.mulf %342, %343 : vector<64x1xf32>
    %345 = arith.mulf %340, %340 : vector<64x1xf32>
    %346 = arith.subf %344, %345 : vector<64x1xf32>
    %cst_203 = arith.constant 0.000000e+00 : f32
    %347 = vector.broadcast %cst_203 : f32 to vector<64x1xf32>
    %348 = arith.maximumf %346, %347 : vector<64x1xf32>
    %cst_204 = arith.constant 9.99999974E-6 : f32
    %349 = vector.broadcast %cst_204 : f32 to vector<64x1xf32>
    %350 = arith.addf %348, %349 : vector<64x1xf32>
    %351 = math.rsqrt %350 : vector<64x1xf32>
    %352 = vector.broadcast %340 : vector<64x1xf32> to vector<64x256xf32>
    %353 = arith.subf %331, %352 : vector<64x256xf32>
    %c0_205 = arith.constant 0 : index
    %c0_206 = arith.constant 0 : index
    %354 = vector.load %arg9[%c0_205, %c0_206] : memref<64x1xf32, #tpu.memory_space<vmem>>, vector<64x1xf32>
    %355 = arith.mulf %351, %354 : vector<64x1xf32>
    %356 = vector.broadcast %355 : vector<64x1xf32> to vector<64x256xf32>
    %357 = arith.mulf %353, %356 : vector<64x256xf32>
    %c0_207 = arith.constant 0 : index
    %c0_208 = arith.constant 0 : index
    %358 = vector.load %arg10[%c0_207, %c0_208] : memref<64x1xf32, #tpu.memory_space<vmem>>, vector<64x1xf32>
    %359 = vector.broadcast %358 : vector<64x1xf32> to vector<64x256xf32>
    %360 = arith.addf %357, %359 : vector<64x256xf32>
    %361 = arith.addf %360, %1 : vector<64x256xf32>
    %cst_209 = arith.constant 0.000000e+00 : f32
    %362 = vector.broadcast %cst_209 : f32 to vector<64x256xf32>
    %363 = arith.maximumf %361, %362 : vector<64x256xf32>
    %c0_210 = arith.constant 0 : index
    %c0_211 = arith.constant 0 : index
    %c0_212 = arith.constant 0 : index
    %364 = vector.load %arg14[%c0_210, %c0_211, %c0_212] : memref<1x64x256xf32, #tpu.memory_space<vmem>>, vector<1x64x256xf32>
    %365 = vector.shape_cast %364 : vector<1x64x256xf32> to vector<64x256xf32>
    %366 = vector.shape_cast %363 : vector<64x256xf32> to vector<1x64x256xf32>
    tpu.vector_store %arg14[%c0_210, %c0_211, %c0_212], %366 {strides = array<i32>} : memref<1x64x256xf32, #tpu.memory_space<vmem>>, vector<1x64x256xf32>,
    return
  }
  func.func @transform_0(%arg0: i32) -> (i32, i32, i32) {
    %c0_i32 = arith.constant 0 : i32
    %c0_i32_0 = arith.constant 0 : i32
    %c0_i32_1 = arith.constant 0 : i32
    return %arg0, %c0_i32, %c0_i32_0 : i32, i32, i32
  }
  func.func @transform_1(%arg0: i32) -> (i32, i32) {
    %c0_i32 = arith.constant 0 : i32
    %c0_i32_0 = arith.constant 0 : i32
    %c0_i32_1 = arith.constant 0 : i32
    return %c0_i32, %c0_i32_0 : i32, i32
  }
  func.func @transform_2(%arg0: i32) -> (i32, i32, i32) {
    %c0_i32 = arith.constant 0 : i32
    %c0_i32_0 = arith.constant 0 : i32
    %c0_i32_1 = arith.constant 0 : i32
    %c0_i32_2 = arith.constant 0 : i32
    return %c0_i32, %c0_i32_0, %c0_i32_1 : i32, i32, i32
  }
  func.func @transform_3(%arg0: i32) -> (i32, i32) {
    %c0_i32 = arith.constant 0 : i32
    %c0_i32_0 = arith.constant 0 : i32
    %c0_i32_1 = arith.constant 0 : i32
    return %c0_i32, %c0_i32_0 : i32, i32
  }
  func.func @transform_4(%arg0: i32) -> (i32, i32) {
    %c0_i32 = arith.constant 0 : i32
    %c0_i32_0 = arith.constant 0 : i32
    %c0_i32_1 = arith.constant 0 : i32
    return %c0_i32, %c0_i32_0 : i32, i32
  }
  func.func @transform_5(%arg0: i32) -> (i32, i32) {
    %c0_i32 = arith.constant 0 : i32
    %c0_i32_0 = arith.constant 0 : i32
    %c0_i32_1 = arith.constant 0 : i32
    return %c0_i32, %c0_i32_0 : i32, i32
  }
  func.func @transform_6(%arg0: i32) -> (i32, i32) {
    %c0_i32 = arith.constant 0 : i32
    %c0_i32_0 = arith.constant 0 : i32
    %c0_i32_1 = arith.constant 0 : i32
    return %c0_i32, %c0_i32_0 : i32, i32
  }
  func.func @transform_7(%arg0: i32) -> (i32, i32) {
    %c0_i32 = arith.constant 0 : i32
    %c0_i32_0 = arith.constant 0 : i32
    %c0_i32_1 = arith.constant 0 : i32
    return %c0_i32, %c0_i32_0 : i32, i32
  }
  func.func @transform_8(%arg0: i32) -> (i32, i32) {
    %c0_i32 = arith.constant 0 : i32
    %c0_i32_0 = arith.constant 0 : i32
    %c0_i32_1 = arith.constant 0 : i32
    return %c0_i32, %c0_i32_0 : i32, i32
  }
  func.func @transform_9(%arg0: i32) -> (i32, i32) {
    %c0_i32 = arith.constant 0 : i32
    %c0_i32_0 = arith.constant 0 : i32
    %c0_i32_1 = arith.constant 0 : i32
    return %c0_i32, %c0_i32_0 : i32, i32
  }
  func.func @transform_10(%arg0: i32) -> (i32, i32) {
    %c0_i32 = arith.constant 0 : i32
    %c0_i32_0 = arith.constant 0 : i32
    %c0_i32_1 = arith.constant 0 : i32
    return %c0_i32, %c0_i32_0 : i32, i32
  }
  func.func @transform_11(%arg0: i32) -> (i32, i32) {
    %c0_i32 = arith.constant 0 : i32
    %c0_i32_0 = arith.constant 0 : i32
    %c0_i32_1 = arith.constant 0 : i32
    return %c0_i32, %c0_i32_0 : i32, i32
  }
  func.func @transform_12(%arg0: i32) -> (i32, i32, i32) {
    %c0_i32 = arith.constant 0 : i32
    %c0_i32_0 = arith.constant 0 : i32
    %c0_i32_1 = arith.constant 0 : i32
    %c0_i32_2 = arith.constant 0 : i32
    return %c0_i32, %c0_i32_0, %c0_i32_1 : i32, i32, i32
  }
  func.func @transform_13(%arg0: i32) -> (i32, i32, i32) {
    %c0_i32 = arith.constant 0 : i32
    %c0_i32_0 = arith.constant 0 : i32
    %c0_i32_1 = arith.constant 0 : i32
    return %arg0, %c0_i32, %c0_i32_0 : i32, i32, i32
  }
}

</mosaic_0001>

<bundles_post_ra>
// kernel: tpu_custom_call.1
= control target key start
LH: loop header
LB: loop body
LE: loop exit
PB: predicated region body
PF: predicated region fallthrough
CT: control target
= control target key end

     0   :  { %s5574_s0 = inlined_call_operand.vmem [shape: f32[2,64,256], index: 0, kind: input, shape index: {}]   ;;  %s5575_s1 = inlined_call_operand.vmem [shape: bf16[16,64], index: 1, kind: input, shape index: {}]   ;;  %s5576_s2 = inlined_call_operand.vmem [shape: bf16[27,16,16], index: 2, kind: input, shape index: {}]   ;;  %s5577_s3 = inlined_call_operand.vmem [shape: bf16[64,16], index: 3, kind: input, shape index: {}]   ;;  %s5578_s4 = inlined_call_operand.vmem [shape: f32[16,1], index: 4, kind: input, shape index: {}]   ;;  %s5579_s5 = inlined_call_operand.vmem [shape: f32[16,1], index: 5, kind: input, shape index: {}]   ;;  %s5580_s6 = inlined_call_operand.vmem [shape: f32[16,1], index: 6, kind: input, shape index: {}]   ;;  %s5581_s7 = inlined_call_operand.vmem [shape: f32[16,1], index: 7, kind: input, shape index: {}]   ;;  %s5582_s8 = inlined_call_operand.vmem [shape: f32[64,1], index: 8, kind: input, shape index: {}]   ;;  %s5583_s9 = inlined_call_operand.vmem [shape: f32[64,1], index: 9, kind: input, shape index: {}]   ;;  %s5584_s10 = inlined_call_operand.vmem [shape: f32[16,16], index: 10, kind: input, shape index: {}]   ;;  %s5585_s11 = inlined_call_operand.vmem [shape: f32[64,64], index: 11, kind: input, shape index: {}]   ;;  %s5586_s12 = inlined_call_operand.vmem [shape: f32[27,1,256], index: 12, kind: input, shape index: {}]   ;;  %s5587_s13 = inlined_call_operand.hbm [shape: f32[2,64,256], index: 13, kind: output, shape index: {}]  }
   0x1   :  { %5588 = sst [smem:[#allocation5_spill]] %s5574_s0 }
   0x2   :  { %5589 = sst [smem:[#allocation6_spill]] %s5575_s1 }
   0x3   :  { %18 = vsyncpa [#allocation3], 0 }
   0x4   :  { %20 = vsyncpa [#allocation3 + $0x1], 0  ;;  %s4432_s25 = smov 0   ;;  %s4434_s26 = smov 0  }
   0x5   :  { %s4436_s27 = smov 0   ;;  %s4438_s28 = smov 0  }
   0x6 LB: > { %s4453_s10 = sadd.s32 4294967295, %s4339_s28   ;;  %s3748_s29 = sadd.s32 4294967294, %s4339_s28   ;;  %s4339_s28 = sphi %s4438_s28, %s5597_s28   ;;  %s4335_s27 = sphi %s4436_s27, %s5596_s27   ;;  %s4331_s26 = sphi %s4434_s26, %s5595_s26   ;;  %s4327_s25 = sphi %s4432_s25, %s5594_s25  }
   0x7   : > { %s4457_s30 = sadd.s32 1, %s4339_s28   ;;  %s311_s14 = sadd.s32 1, %s4335_s27 }
   0x8   : > { %s308_s15 = ssub.s32 %s4339_s28, %s4457_s30  ;;  %p321_p0 = scmp.ne.s32.totalorder %s4335_s27, %s4331_s26 }
   0x9   : > { %p309_p1 = scmp.eq.s32.totalorder %s308_s15, 0  ;;  %p322_p2 = scmp.eq.s32.totalorder %s4453_s10, 1 }
   0xa   : > { %p327_p3 = scmp.ne.s32.totalorder %s4331_s26, %s4327_s25  ;;  %p328_p4 = scmp.eq.s32.totalorder %s3748_s29, 1 }
   0xb   : > { %s4468_s16 = scalar_select %p309_p1, %s4335_s27, %s311_s14  }
   0xc   : > { %p4470_p5 = por %p322_p2, %p321_p0  ;;  %p4474_p6 = por %p328_p4, %p327_p3 }
   0xd   : > { %p3751_p7 = scmp.ge.s32.totalorder %s4339_s28, 1  ;;  %p390_p8 = scmp.lt.s32.totalorder %s4339_s28, 3 }
   0xf   : > { %p391_p9 = pnand %p3751_p7, %p390_p8 }
  0x10   : > { %p434_p10 = scmp.lt.s32.totalorder (!%p391_p9), %s4453_s10, 1  ;;  %v4341_v0 = vmov (!%p391_p9), 0   ;;  %s5592_s0 = sld [smem:[#allocation5_spill]] (!%p391_p9)  ;;  %vm471_vm0 = vcmask (!%p391_p9), 523264   ;;  %v570_v38 = vld [vmem:[%s5579_s5] sm:$0xff] (!%p391_p9)  ;;  %v553_v62 = vld [vmem:[%s5578_s4 + $0x8] sm:$0xff] (!%p391_p9) }
  0x11   : > { %394 = sbr.rel (%p391_p9) target bundleno = 2245 (0x8c5), region = 72  ;;  %507 = vmatprep.mubr.bf16.mxu0 (!%p391_p9), %v4341_v0  ;;  %4204 = vset.pattern.permute.xlu1 (!%p391_p9), %v4341_v0  ;;  %s5593_s1 = sld [smem:[#allocation6_spill]] (!%p391_p9)  ;;  %v552_v59 = vld [vmem:[%s5578_s4] sm:$0xff] (!%p391_p9)  ;;  %vm665_vm3 = vcmask (!%p391_p9), 130048  }
  0x12   : > { %4203 = vset.pattern.permute.xlu0 (!%p391_p9), %v4341_v0  ;;  %1378 = vmatprep.mubr.bf16.mxu1 (!%p391_p9), %v4341_v0  ;;  %s4342_s14 = smov (!%p391_p9), 55   ;;  %s4343_s15 = smov (!%p391_p9), 9  }
  0x13   : > { %s4346_s21 = smov (!%p391_p9), 1   ;;  %s4347_s22 = smov (!%p391_p9), 127  }
  0x14   : > { %s4348_s24 = smov (!%p391_p9), 121   ;;  %s4349_s29 = smov (!%p391_p9), 120  }
  0x17   : > { %v4205_v25 = vld [vmem:[%s5593_s1] sm:$0xff] (!%p391_p9)  }
  0x18   : > { %s435_s19 = scalar_select %p434_p10, %s4453_s10, 1 }
  0x1a   : > { %s3918_s20 = sshll.u32 %s435_s19, 7  ;;  %s4344_s19 = smov 8  }
  0x1b   : > { %s4489_s23 = scalar_lea.vmem %s5592_s0, %s3918_s20  ;;  %s4345_s20 = smov 7  }
  0x1c   : > { %v441_v1 = vld [vmem:[%s4489_s23 + $0x8] sm:$0xff]  ;;  %v443_v2 = vld [vmem:[%s4489_s23 + $0x18] sm:$0xff]  ;;  %v440_v3 = vld [vmem:[%s4489_s23] sm:$0xff] }
  0x1d   : > { %v459_v4 = vpack.c.bf16 %v443_v2, %v441_v1  ;;  %v442_v5 = vld [vmem:[%s4489_s23 + $0x10] sm:$0xff]  ;;  %v445_v6 = vld [vmem:[%s4489_s23 + $0x28] sm:$0xff]  ;;  %v447_v7 = vld [vmem:[%s4489_s23 + $0x38] sm:$0xff] }
  0x1e   : > { %v458_v8 = vpack.c.bf16 %v442_v5, %v440_v3  ;;  %v461_v9 = vpack.c.bf16 %v447_v7, %v445_v6  ;;  %v444_v10 = vld [vmem:[%s4489_s23 + $0x20] sm:$0xff]  ;;  %v446_v11 = vld [vmem:[%s4489_s23 + $0x30] sm:$0xff]  ;;  %v449_v12 = vld [vmem:[%s4489_s23 + $0x48] sm:$0xff] }
  0x1f   : > { %475 = vmatprep.subr.bf16.mxu0 %v459_v4  ;;  %v451_v13 = vld [vmem:[%s4489_s23 + $0x58] sm:$0xff]  ;;  %v460_v14 = vpack.c.bf16 %v446_v11, %v444_v10  ;;  %v448_v15 = vld [vmem:[%s4489_s23 + $0x40] sm:$0xff]  ;;  %v450_v16 = vld [vmem:[%s4489_s23 + $0x50] sm:$0xff] }
  0x20   : > { %476 = vmatpush1.bf16.msra.mxu0 %v458_v8  ;;  %v453_v17 = vld [vmem:[%s4489_s23 + $0x68] sm:$0xff]  ;;  %v463_v18 = vpack.c.bf16 %v451_v13, %v449_v12  ;;  %v455_v19 = vld [vmem:[%s4489_s23 + $0x78] sm:$0xff]  ;;  %v452_v20 = vld [vmem:[%s4489_s23 + $0x60] sm:$0xff]  ;;  %v462_v22 = vpack.c.bf16 %v450_v16, %v448_v15 }
  0x21   : > { %477 = vmatprep.subr.bf16.mxu0 %v461_v9  ;;  %v454_v21 = vld [vmem:[%s4489_s23 + $0x70] sm:$0xff]  ;;  %v465_v23 = vpack.c.bf16 %v455_v19, %v453_v17  ;;  %v571_v2 = vld [vmem:[%s5579_s5 + $0x8] sm:$0xff]  ;;  %v598_v19 = vlaneseq }
  0x22   : > { %v464_v24 = vpack.c.bf16 %v454_v21, %v452_v20 }
  0x23   : > { %v4590_v21 = vand.u32 127, %v598_v19 }
  0x24   : > { %478 = vmatpush1.bf16.msra.mxu0 %v460_v14 }
  0x25   : > { %479 = vmatprep.subr.bf16.mxu0 %v463_v18  ;;  %vm1311_vm1 = vcmp.lt.s32.totalorder %v4590_v21, 55  ;;  %vm1401_vm2 = vcmp.lt.s32.totalorder %v4590_v21, 9  ;;  %vm1491_vm4 = vcmp.lt.s32.totalorder %v4590_v21, 8  ;;  %vm1581_vm5 = vcmp.lt.s32.totalorder %v4590_v21, 7 }
  0x26   : > { %vm1671_vm6 = vcmp.lt.s32.totalorder %v4590_v21, 1  ;;  %vm1838_vm7 = vcmp.lt.s32.totalorder %v4590_v21, 127  ;;  %vm1928_vm8 = vcmp.lt.s32.totalorder %v4590_v21, 121  ;;  %vm2018_vm9 = vcmp.lt.s32.totalorder %v4590_v21, 120 }
  0x27   : > { %vm633_vm10 = vcmp.lt.s32.totalorder %v4590_v21, 72  ;;  %vm600_vm11 = vcmp.lt.s32.totalorder %v4590_v21, 73  ;;  %vm771_vm12 = vcmp.lt.s32.totalorder %v4590_v21, 71  ;;  %vm2108_vm13 = vcmp.lt.s32.totalorder %v4590_v21, 119 }
  0x28   : > { %480 = vmatpush1.bf16.msra.mxu0 %v462_v22  ;;  %v608_v22 = vshrl.u32 %v598_v19, 7  ;;  %vm861_vm14 = vcmp.lt.s32.totalorder %v4590_v21, 65  ;;  %vm951_vm15 = vcmp.lt.s32.totalorder %v4590_v21, 64 }
  0x29   : > { %481 = vmatprep.subr.bf16.mxu0 %v465_v23 }
  0x2c   : > { %482 = vmatpush1.bf16.msra.mxu0 %v464_v24  ;;  %v3884_v24 = vld [vmem:[%s5586_s12 + $0x34] sm:$0x3] }
  0x2f   : > { %3756 = vmatmul.mubr.msk.bf16.vlgmr.msra.gmra.mrb[0].mxu0 %vm471_vm0, %v4205_v25  ;;  %v3794_v25 = vld [vmem:[%s5586_s12 + $0x10] sm:$0x3] }
  0x30   : > { %701 = vmatprep.mubr.bf16.mxu0 %v4341_v0 }
 0x102   : > { %v509_v26 = vpop.f32.mrb[0].mxu0 }
 0x103   : > { %v511_v27 = vpop.f32.mrb[1].mxu0  ;;  %v524_v28 = vmul.f32 %v509_v26, %v509_v26 }
 0x104   : > { %v513_v29 = vpop.f32.mrb[2].mxu0  ;;  %v518_v30 = vadd.f32 %v511_v27, %v509_v26  ;;  %v525_v31 = vmul.f32 %v511_v27, %v511_v27 }
 0x105   : > { %v515_v32 = vpop.f32.mrb[3].mxu0  ;;  %v526_v33 = vmul.f32 %v513_v29, %v513_v29 }
 0x106   : > { %519 = vadd.xlane.f32.xlu0 %v518_v30  ;;  %v528_v34 = vadd.f32 %v525_v31, %v524_v28  ;;  %v521_v35 = vadd.f32 %v515_v32, %v513_v29  ;;  %v527_v36 = vmul.f32 %v515_v32, %v515_v32  ;;  %v4604_v28 = vsub.s32 0, %v608_v22 }
 0x108   : > { %529 = vadd.xlane.f32.xlu1 %v528_v34  ;;  %v531_v37 = vadd.f32 %v527_v36, %v526_v33  ;;  %v2812_v34 = vrot.slane %v3884_v24, %v4604_v28 }
 0x10a   : > { %522 = vadd.xlane.f32.xlu0 %v521_v35  ;;  %v1322_v35 = vrot.slane %v3794_v25, %v4604_v28 }
 0x10c   : > { %532 = vadd.xlane.f32.xlu1 %v531_v37 }
 0x11d   : > { %574 = vperm.xlu1 %4204, %v570_v38  }
 0x193   : > { %v520_v39 = vpop.xlane.xlu0 %519 }
 0x194   : > { %v534_v40 = vmul.f32 0.00390625, %v520_v39 }
 0x195   : > { %v530_v41 = vpop.xlane.xlu1 %529 }
 0x196   : > { %v536_v42 = vmul.f32 0.00390625, %v530_v41  ;;  %v538_v43 = vmul.f32 %v534_v40, %v534_v40  ;;  %v548_v44 = vsub.f32 %v509_v26, %v534_v40  ;;  %v549_v45 = vsub.f32 %v511_v27, %v534_v40 }
 0x197   : > { %v523_v46 = vpop.xlane.xlu0 %522  ;;  %v4600_v26 = vsub.s32 1, %v608_v22 }
 0x198   : > { %v540_v47 = vsub.f32 %v536_v42, %v538_v43  ;;  %v535_v48 = vmul.f32 0.00390625, %v523_v46 }
 0x199   : > { %v533_v49 = vpop.xlane.xlu1 %532  ;;  %v1326_v31 = vrot.slane %v3794_v25, %v4600_v26 }
 0x19a   : > { %v542_v50 = vmax.f32 %v540_v47, 0.0  ;;  %v537_v51 = vmul.f32 0.00390625, %v533_v49  ;;  %v539_v52 = vmul.f32 %v535_v48, %v535_v48  ;;  %v550_v53 = vsub.f32 %v513_v29, %v535_v48 }
 0x19b   : > { %v551_v54 = vsub.f32 %v515_v32, %v535_v48  ;;  %v2816_v29 = vrot.slane %v3884_v24, %v4600_v26 }
 0x19c   : > { %v544_v55 = vadd.f32 1e-05, %v542_v50  ;;  %v541_v56 = vsub.f32 %v537_v51, %v539_v52 }
 0x19d   : > { %v575_v3 = vpop.permute.xlu1 %574 }
 0x19e   : > { %4237 = vrsqrt.f32 %v544_v55  ;;  %v543_v57 = vmax.f32 %v541_v56, 0.0 }
 0x1a0   : > { %v545_v58 = vadd.f32 1e-05, %v543_v57 }
 0x1a2   : > { %4239 = vrsqrt.f32 %v545_v58 }
 0x1a8   : > { %v4238_v60 = vpop.eup %4237 }
 0x1a9   : > { %v554_v61 = vmul.f32 %v4238_v60, %v552_v59  ;;  %v4206_v59 = vld [vmem:[%s5576_s2 + $0x40] sm:$0xff]  }
 0x1ab   : > { %558 = vperm.xlu0 %4203, %v554_v61  }
 0x1ac   : > { %v4240_v63 = vpop.eup %4239 }
 0x1ad   : > { %v555_v1 = vmul.f32 %v4240_v63, %v553_v62 }
 0x1af   : > { %563 = vperm.xlu1 %4204, %v555_v1  }
 0x1b3   : > { %579 = vperm.xlu1 %4204, %v571_v2  }
 0x22a   : > { %v559_v4 = vpop.permute.xlu0 %558 }
 0x22b   : > { %v566_v5 = vmul.f32 %v559_v4, %v548_v44  ;;  %v567_v6 = vmul.f32 %v559_v4, %v549_v45  ;;  %v3799_v44 = vld [vmem:[%s5586_s12 + $0x12] sm:$0x3] }
 0x22c   : > { %v1412_v55 = vrot.slane %v3799_v44, %v4604_v28  ;;  %v1416_v56 = vrot.slane %v3799_v44, %v4600_v26 }
 0x22d   : > { %v582_v7 = vadd.f32 %v575_v3, %v566_v5  ;;  %v583_v9 = vadd.f32 %v575_v3, %v567_v6  ;;  %v3804_v6 = vld [vmem:[%s5586_s12 + $0x14] sm:$0x3] }
 0x22e   : > { %v564_v8 = vpop.permute.xlu1 %563 }
 0x22f   : > { %v4524_v10 = vmax.f32 %v582_v7, 0.0  ;;  %v568_v11 = vmul.f32 %v564_v8, %v550_v53  ;;  %v4527_v13 = vmax.f32 %v583_v9, 0.0  ;;  %v569_v14 = vmul.f32 %v564_v8, %v551_v54 }
 0x231   : > { %1303 = vrot.lane.b32.xlu1 %v4524_v10, %s4342_s14 }
 0x232   : > { %v580_v12 = vpop.permute.xlu1 %579 }
 0x233   : > { %v584_v15 = vadd.f32 %v580_v12, %v568_v11  ;;  %v585_v16 = vadd.f32 %v580_v12, %v569_v14  ;;  %v1502_v11 = vrot.slane %v3804_v6, %v4604_v28  ;;  %v1506_v12 = vrot.slane %v3804_v6, %v4600_v26  ;;  %v3819_v6 = vld [vmem:[%s5586_s12 + $0x1a] sm:$0x3] }
 0x235   : > { %v4529_v17 = vmax.f32 %v584_v15, 0.0  ;;  %1307 = vrot.lane.b32.xlu1 %v4527_v13, %s4342_s14  ;;  %v4533_v18 = vmax.f32 %v585_v16, 0.0 }
 0x237   : > { %1395 = vrot.lane.b32.xlu0 %v4529_v17, %s4343_s15 }
 0x239   : > { %1305 = vrot.lane.b32.xlu1 %v4529_v17, %s4342_s14 }
 0x23b   : > { %1399 = vrot.lane.b32.xlu0 %v4533_v18, %s4343_s15 }
 0x23d   : > { %1309 = vrot.lane.b32.xlu1 %v4533_v18, %s4342_s14  ;;  %s4350_s14 = smov 119  }
 0x23f   : > { %1485 = vrot.lane.b32.xlu0 %v4529_v17, %s4344_s19 }
 0x241   : > { %1393 = vrot.lane.b32.xlu1 %v4524_v10, %s4343_s15 }
 0x243   : > { %1489 = vrot.lane.b32.xlu0 %v4533_v18, %s4344_s19 }
 0x245   : > { %1397 = vrot.lane.b32.xlu1 %v4527_v13, %s4343_s15  ;;  %s4351_s15 = smov 73  }
 0x247   : > { %1575 = vrot.lane.b32.xlu0 %v4529_v17, %s4345_s20 }
 0x249   : > { %1483 = vrot.lane.b32.xlu1 %v4524_v10, %s4344_s19 }
 0x24b   : > { %1579 = vrot.lane.b32.xlu0 %v4533_v18, %s4345_s20 }
 0x24d   : > { %1487 = vrot.lane.b32.xlu1 %v4527_v13, %s4344_s19  ;;  %s4352_s19 = smov 72  }
 0x24f   : > { %1665 = vrot.lane.b32.xlu0 %v4529_v17, %s4346_s21 }
 0x251   : > { %1573 = vrot.lane.b32.xlu1 %v4524_v10, %s4345_s20 }
 0x253   : > { %1669 = vrot.lane.b32.xlu0 %v4533_v18, %s4346_s21 }
 0x255   : > { %1577 = vrot.lane.b32.xlu1 %v4527_v13, %s4345_s20  ;;  %s4353_s20 = smov 71  }
 0x257   : > { %1832 = vrot.lane.b32.xlu0 %v4529_v17, %s4347_s22 }
 0x259   : > { %1663 = vrot.lane.b32.xlu1 %v4524_v10, %s4346_s21 }
 0x25b   : > { %1836 = vrot.lane.b32.xlu0 %v4533_v18, %s4347_s22 }
 0x25d   : > { %1667 = vrot.lane.b32.xlu1 %v4527_v13, %s4346_s21  ;;  %s4354_s21 = smov 65  }
 0x25f   : > { %1922 = vrot.lane.b32.xlu0 %v4529_v17, %s4348_s24 }
 0x261   : > { %1830 = vrot.lane.b32.xlu1 %v4524_v10, %s4347_s22 }
 0x263   : > { %1926 = vrot.lane.b32.xlu0 %v4533_v18, %s4348_s24 }
 0x265   : > { %1834 = vrot.lane.b32.xlu1 %v4527_v13, %s4347_s22  ;;  %s4355_s22 = smov 64  }
 0x267   : > { %2012 = vrot.lane.b32.xlu0 %v4529_v17, %s4349_s29 }
 0x269   : > { %1920 = vrot.lane.b32.xlu1 %v4524_v10, %s4348_s24 }
 0x26b   : > { %2016 = vrot.lane.b32.xlu0 %v4533_v18, %s4349_s29 }
 0x26d   : > { %1924 = vrot.lane.b32.xlu1 %v4527_v13, %s4348_s24  ;;  %s4356_s24 = smov 63  }
 0x26f   : > { %2102 = vrot.lane.b32.xlu0 %v4529_v17, %s4350_s14 }
 0x271   : > { %2010 = vrot.lane.b32.xlu1 %v4524_v10, %s4349_s29 }
 0x273   : > { %2106 = vrot.lane.b32.xlu0 %v4533_v18, %s4350_s14 }
 0x275   : > { %2014 = vrot.lane.b32.xlu1 %v4527_v13, %s4349_s29  ;;  %s4357_s29 = smov 57  }
 0x277   : > { %592 = vrot.lane.b32.xlu0 %v4529_v17, %s4351_s15 }
 0x279   : > { %2100 = vrot.lane.b32.xlu1 %v4524_v10, %s4350_s14 }
 0x27b   : > { %596 = vrot.lane.b32.xlu0 %v4533_v18, %s4351_s15 }
 0x27d   : > { %2104 = vrot.lane.b32.xlu1 %v4527_v13, %s4350_s14  ;;  %s3919_s14 = sshll.u32 %s4453_s10, 11 }
 0x27e   : > { %s5523_s10 = scalar_lea.hbm %s5587_s13, %s3919_s14 }
 0x27f   : > { %627 = vrot.lane.b32.xlu0 %v4529_v17, %s4352_s19 }
 0x281   : > { %590 = vrot.lane.b32.xlu1 %v4524_v10, %s4351_s15 }
 0x283   : > { %631 = vrot.lane.b32.xlu0 %v4533_v18, %s4352_s19 }
 0x285   : > { %594 = vrot.lane.b32.xlu1 %v4527_v13, %s4351_s15 }
 0x287   : > { %765 = vrot.lane.b32.xlu0 %v4529_v17, %s4353_s20 }
 0x289   : > { %625 = vrot.lane.b32.xlu1 %v4524_v10, %s4352_s19 }
 0x28b   : > { %769 = vrot.lane.b32.xlu0 %v4533_v18, %s4353_s20 }
 0x28d   : > { %629 = vrot.lane.b32.xlu1 %v4527_v13, %s4352_s19 }
 0x28f   : > { %855 = vrot.lane.b32.xlu0 %v4529_v17, %s4354_s21 }
 0x291   : > { %763 = vrot.lane.b32.xlu1 %v4524_v10, %s4353_s20 }
 0x293   : > { %859 = vrot.lane.b32.xlu0 %v4533_v18, %s4354_s21 }
 0x295   : > { %767 = vrot.lane.b32.xlu1 %v4527_v13, %s4353_s20  ;;  %s431_s20 = sand.u32 1, %s4331_s26  }
 0x297   : > { %945 = vrot.lane.b32.xlu0 %v4529_v17, %s4355_s22 }
 0x299   : > { %853 = vrot.lane.b32.xlu1 %v4524_v10, %s4354_s21 }
 0x29b   : > { %949 = vrot.lane.b32.xlu0 %v4533_v18, %s4355_s22 }
 0x29d   : > { %857 = vrot.lane.b32.xlu1 %v4527_v13, %s4354_s21  ;;  %s4358_s21 = smov 56  }
 0x29f   : > { %1035 = vrot.lane.b32.xlu0 %v4529_v17, %s4356_s24 }
 0x2a1   : > { %943 = vrot.lane.b32.xlu1 %v4524_v10, %s4355_s22 }
 0x2a3   : > { %1039 = vrot.lane.b32.xlu0 %v4533_v18, %s4356_s24  ;;  %v1304_v20 = vpop.permute.xlu1 %1303 }
 0x2a5   : > { %947 = vrot.lane.b32.xlu1 %v4527_v13, %s4355_s22  ;;  %s3752_s22 = sshll.u32 %s431_s20, 7 }
 0x2a7   : > { %1125 = vrot.lane.b32.xlu0 %v4529_v17, %s4357_s29  ;;  %v1308_v23 = vpop.permute.xlu1 %1307 }
 0x2a8   : > { %v1314_v32 = vsel %vm1311_vm1, %v1308_v23, %v1304_v20  ;;  %v1312_v33 = vsel %vm1311_vm1, %v1304_v20, %v1308_v23 }
 0x2a9   : > { %1033 = vrot.lane.b32.xlu1 %v4524_v10, %s4356_s24  ;;  %v1396_v27 = vpop.permute.xlu0 %1395  ;;  %v4617_v37 = vmul.f32 %v2816_v29, %v1314_v32  ;;  %v1330_v39 = vmul.f32 %v1326_v31, %v1312_v33  ;;  %v4625_v42 = vmul.f32 %v2812_v34, %v1312_v33  ;;  %v1329_v43 = vmul.f32 %v1322_v35, %v1314_v32 }
 0x2ab   : > { %1129 = vrot.lane.b32.xlu0 %v4533_v18, %s4357_s29  ;;  %v1306_v30 = vpop.permute.xlu1 %1305 }
 0x2ad   : > { %1037 = vrot.lane.b32.xlu1 %v4527_v13, %s4356_s24  ;;  %v1400_v36 = vpop.permute.xlu0 %1399  ;;  %s5480_s24 = scalar_lea.vmem [#allocation2], %s3752_s22 }
 0x2ae   : > { %v1405_v57 = vsel %vm1401_vm2, %v1400_v36, %v1396_v27  ;;  %v1403_v60 = vsel %vm1401_vm2, %v1396_v27, %v1400_v36 }
 0x2af   : > { %1215 = vrot.lane.b32.xlu0 %v4529_v17, %s4358_s21  ;;  %v1310_v38 = vpop.permute.xlu1 %1309  ;;  %v1421_v62 = vmul.f32 %v1412_v55, %v1405_v57  ;;  %v1422_v2 = vmul.f32 %v1416_v56, %v1403_v60 }
 0x2b0   : > { %v1315_v40 = vsel %vm1311_vm1, %v1310_v38, %v1306_v30  ;;  %v1313_v41 = vsel %vm1311_vm1, %v1306_v30, %v1310_v38  ;;  %v4207_v30 = vld [vmem:[%s5576_s2 + $0x48] sm:$0xff]   ;;  %vm1041_vm1 = vcmp.lt.s32.totalorder %v4590_v21, 63 }
 0x2b1   : > { %v4630_v45 = vmul.f32 %v2816_v29, %v1315_v40  ;;  %1123 = vrot.lane.b32.xlu1 %v4524_v10, %s4357_s29  ;;  %v1486_v46 = vpop.permute.xlu0 %1485  ;;  %v1332_v47 = vmul.f32 %v1326_v31, %v1313_v41  ;;  %v4634_v48 = vmul.f32 %v2812_v34, %v1313_v41  ;;  %v1331_v49 = vmul.f32 %v1322_v35, %v1315_v40  ;;  %v3809_v31 = vld [vmem:[%s5586_s12 + $0x16] sm:$0x3] }
 0x2b2   : > { %v1596_v35 = vrot.slane %v3809_v31, %v4600_v26 }
 0x2b3   : > { %1219 = vrot.lane.b32.xlu0 %v4533_v18, %s4358_s21  ;;  %v1394_v50 = vpop.permute.xlu1 %1393  ;;  %v1334_v51 = vpack.c.bf16 %v1332_v47, %v1330_v39  ;;  %v2823_v52 = vpack.c.bf16 %v4634_v48, %v4625_v42  ;;  %v1333_v53 = vpack.c.bf16 %v1331_v49, %v1329_v43  ;;  %v2824_v54 = vpack.c.bf16 %v4630_v45, %v4617_v37  ;;  %v3814_v49 = vld [vmem:[%s5586_s12 + $0x18] sm:$0x3] }
 0x2b4   : > { %v1592_v47 = vrot.slane %v3809_v31, %v4604_v28  ;;  %v3824_v31 = vld [vmem:[%s5586_s12 + $0x1c] sm:$0x3] }
 0x2b5   : > { %1127 = vrot.lane.b32.xlu1 %v4527_v13, %s4357_s29  ;;  %1346 = vmatprep.subr.bf16.mxu1 %v1334_v51  ;;  %v1490_v58 = vpop.permute.xlu0 %1489  ;;  %s4359_s29 = smov [#allocation2]  }
 0x2b6   : > { %1347 = vmatpush1.bf16.msra.mxu1 %v1333_v53  ;;  %v1493_v15 = vsel %vm1491_vm4, %v1486_v46, %v1490_v58  ;;  %v1495_v16 = vsel %vm1491_vm4, %v1490_v58, %v1486_v46  ;;  %v4208_v58 = vld [vmem:[%s5576_s2 + $0x50] sm:$0xff]   ;;  %s4281_s19 = sshll.u32 %s4359_s29, 4  ;;  %s4282_s19 = int_to_ptr.vmem [resolvable:$false] %s4281_s19 }
 0x2b7   : > { %v1398_v61 = vpop.permute.xlu1 %1397  ;;  %v1511_v23 = vmul.f32 %v1502_v11, %v1495_v16  ;;  %v1512_v24 = vmul.f32 %v1506_v12, %v1493_v15  ;;  %s4283_s22 = scalar_lea.vmem %s4282_s19, 4096 }
 0x2b8   : > { %v1402_v63 = vsel %vm1401_vm2, %v1394_v50, %v1398_v61  ;;  %v1404_v1 = vsel %vm1401_vm2, %v1398_v61, %v1394_v50  ;;  %vm1131_vm2 = vcmp.lt.s32.totalorder %v4590_v21, 57 }
 0x2b9   : > { %v1419_v3 = vmul.f32 %v1412_v55, %v1404_v1  ;;  %v1420_v4 = vmul.f32 %v1416_v56, %v1402_v63  ;;  %1213 = vrot.lane.b32.xlu1 %v4524_v10, %s4358_s21  ;;  %3798 = vmatmul.mubr.msk.bf16.vlgmr.msra.gmra.mrb[0].mxu1 %vm665_vm3, %v4206_v59  ;;  %v1576_v5 = vpop.permute.xlu0 %1575  ;;  %v1686_v56 = vrot.slane %v3814_v49, %v4600_v26 }
 0x2ba   : > { %1468 = vmatprep.mubr.bf16.mxu1 %v4341_v0 }
 0x2bb   : > { %v1423_v7 = vpack.c.bf16 %v1421_v62, %v1419_v3  ;;  %v1484_v8 = vpop.permute.xlu1 %1483  ;;  %v1424_v9 = vpack.c.bf16 %v1422_v2, %v1420_v4 }
 0x2bd   : > { %1217 = vrot.lane.b32.xlu1 %v4527_v13, %s4358_s21  ;;  %1436 = vmatprep.subr.bf16.mxu1 %v1424_v9  ;;  %v1580_v14 = vpop.permute.xlu0 %1579  ;;  %v1682_v9 = vrot.slane %v3814_v49, %v4604_v28  ;;  %s3686_s21 = sshll.u32 %s5480_s24, 4  ;;  %s5525_s21 = int_to_ptr.vmem [resolvable:$true] %s3686_s21 }
 0x2be   : > { %1437 = vmatpush1.bf16.msra.mxu1 %v1423_v7  ;;  %v1583_v38 = vsel %vm1581_vm5, %v1576_v5, %v1580_v14  ;;  %v1585_v50 = vsel %vm1581_vm5, %v1580_v14, %v1576_v5  ;;  %v1763_v14 = vrot.slane %v3819_v6, %v4600_v26  ;;  %s4277_s1 = scalar_lea.vmem %s5525_s21, 2048  ;;  %p4284_p0 = scmp.lt.s32.totalorder %s5525_s21, %s4282_s19 }
 0x2bf   : > { %v1488_v19 = vpop.permute.xlu1 %1487  ;;  %v1602_v41 = vmul.f32 %v1596_v35, %v1583_v38  ;;  %v1601_v59 = vmul.f32 %v1592_v47, %v1585_v50  ;;  %p4278_p11 = scmp.ne.s32.totalorder %s5525_s21, %s4277_s1  ;;  %p4285_p1 = scmp.lt.s32.totalorder %s4283_s22, %s4277_s1 }
 0x2c0   : > { %v1492_v20 = vsel %vm1491_vm4, %v1484_v8, %v1488_v19  ;;  %v1494_v22 = vsel %vm1491_vm4, %v1488_v19, %v1484_v8  ;;  %v4209_v19 = vld [vmem:[%s5576_s2 + $0x58] sm:$0xff]   ;;  %vm1221_vm4 = vcmp.lt.s32.totalorder %v4590_v21, 56 }
 0x2c1   : > { %v1509_v25 = vmul.f32 %v1502_v11, %v1494_v22  ;;  %v1510_v27 = vmul.f32 %v1506_v12, %v1492_v20  ;;  %v1666_v29 = vpop.permute.xlu0 %1665  ;;  %v1769_v20 = vmul.f32 %v1763_v14, %v4533_v18  ;;  %p4279_p12 = pnand %p4278_p11, %p4470_p5  ;;  %p4286_p2 = por %p4285_p1, %p4284_p0 }
 0x2c3   : > { %v1513_v32 = vpack.c.bf16 %v1511_v23, %v1509_v25  ;;  %v1574_v33 = vpop.permute.xlu1 %1573  ;;  %v1514_v34 = vpack.c.bf16 %v1512_v24, %v1510_v27  ;;  %v1767_v24 = vmul.f32 %v1763_v14, %v4527_v13  ;;  %p4280_p13 = pneg %p4279_p12 }
 0x2c5   : > { %3803 = vmatmul.mubr.msk.bf16.vlgmr.msra.gmra.mrb[0].mxu1 %vm665_vm3, %v4207_v30  ;;  %1526 = vmatprep.subr.bf16.mxu1 %v1514_v34  ;;  %v1670_v36 = vpop.permute.xlu0 %1669  ;;  %p4287_p3 = pnand %p4286_p2, %p4280_p13 }
 0x2c6   : > { %1527 = vmatpush1.bf16.msra.mxu1 %v1513_v32  ;;  %1558 = vmatprep.mubr.bf16.mxu1 %v4341_v0  ;;  %v1673_v60 = vsel %vm1671_vm6, %v1666_v29, %v1670_v36  ;;  %v1675_v11 = vsel %vm1671_vm6, %v1670_v36, %v1666_v29  ;;  %v1771_v29 = vpack.c.bf16 %v1769_v20, %v1767_v24  ;;  %v3757_v20 = vld [vmem:[%s5586_s12 + $0x2] sm:$0x3] }
 0x2c7   : > { %v1578_v39 = vpop.permute.xlu1 %1577  ;;  %v1692_v1 = vmul.f32 %v1686_v56, %v1673_v60  ;;  %v1691_v22 = vmul.f32 %v1682_v9, %v1675_v11  ;;  %v1759_v32 = vrot.slane %v3819_v6, %v4604_v28 }
 0x2c8   : > { %v1582_v40 = vsel %vm1581_vm5, %v1574_v33, %v1578_v39  ;;  %v1584_v43 = vsel %vm1581_vm5, %v1578_v39, %v1574_v33  ;;  %v1853_v33 = vrot.slane %v3824_v31, %v4600_v26 }
 0x2c9   : > { %v1600_v44 = vmul.f32 %v1596_v35, %v1582_v40  ;;  %v4686_v46 = vpop.permute.xlu0 %1832  ;;  %v1599_v55 = vmul.f32 %v1592_v47, %v1584_v43  ;;  %v1768_v36 = vmul.f32 %v1759_v32, %v4529_v17  ;;  %v4210_v40 = vld [vmem:[%s5576_s2 + $0x60] sm:$0xff]  }
 0x2cb   : > { %v1664_v51 = vpop.permute.xlu1 %1663  ;;  %v1604_v53 = vpack.c.bf16 %v1602_v41, %v1600_v44  ;;  %v1603_v62 = vpack.c.bf16 %v1601_v59, %v1599_v55  ;;  %v1766_v41 = vmul.f32 %v1759_v32, %v4524_v10  ;;  %v1849_v55 = vrot.slane %v3824_v31, %v4604_v28  ;;  %v605_v31 = vld [vmem:[%s5586_s12] sm:$0x3] }
 0x2cd   : > { %1616 = vmatprep.subr.bf16.mxu1 %v1604_v53  ;;  %v4696_v57 = vpop.permute.xlu0 %1836  ;;  %v1770_v47 = vpack.c.bf16 %v1768_v36, %v1766_v41  ;;  %v4212_v36 = vld [vmem:[%s5576_s2 + $0x70] sm:$0xff]   ;;  %v614_v41 = vrot.slane %v605_v31, %v4600_v26 }
 0x2ce   : > { %v1842_v35 = vsel %vm1838_vm7, %v4696_v57, %v4686_v46 }
 0x2cf   : > { %v1668_v61 = vpop.permute.xlu1 %1667  ;;  %v1859_v43 = vmul.f32 %v1853_v33, %v1842_v35 }
 0x2d0   : > { %v1672_v63 = vsel %vm1671_vm6, %v1664_v51, %v1668_v61  ;;  %v1674_v7 = vsel %vm1671_vm6, %v1668_v61, %v1664_v51  ;;  %v3829_v51 = vld [vmem:[%s5586_s12 + $0x1e] sm:$0x3] }
 0x2d1   : > { %v1690_v2 = vmul.f32 %v1686_v56, %v1672_v63  ;;  %3808 = vmatmul.mubr.msk.bf16.vlgmr.msra.gmra.mrb[0].mxu1 %vm665_vm3, %v4208_v58  ;;  %v4706_v3 = vpop.permute.xlu0 %1922  ;;  %v1689_v15 = vmul.f32 %v1682_v9, %v1674_v7  ;;  %v1840_v58 = vsel %vm1838_vm7, %v4686_v46, %v4696_v57  ;;  %v1943_v59 = vrot.slane %v3829_v51, %v4600_v26  ;;  %v4791_v9 = vld [vmem:[%s5586_s12 + $0x20] sm:$0x3] }
 0x2d2   : > { %1617 = vmatpush1.bf16.msra.mxu1 %v1603_v62  ;;  %1648 = vmatprep.mubr.bf16.mxu1 %v4341_v0 }
 0x2d3   : > { %v1831_v4 = vpop.permute.xlu1 %1830  ;;  %v1694_v5 = vpack.c.bf16 %v1692_v1, %v1690_v2  ;;  %v1693_v25 = vpack.c.bf16 %v1691_v22, %v1689_v15  ;;  %v4211_v2 = vld [vmem:[%s5576_s2 + $0x68] sm:$0xff]   ;;  %v1939_v15 = vrot.slane %v3829_v51, %v4604_v28 }
 0x2d5   : > { %1706 = vmatprep.subr.bf16.mxu1 %v1694_v5  ;;  %v4714_v8 = vpop.permute.xlu0 %1926 }
 0x2d6   : > { %v1932_v61 = vsel %vm1928_vm8, %v4714_v8, %v4706_v3 }
 0x2d7   : > { %v1835_v12 = vpop.permute.xlu1 %1834  ;;  %v1949_v5 = vmul.f32 %v1943_v59, %v1932_v61 }
 0x2d8   : > { %v1841_v13 = vsel %vm1838_vm7, %v1835_v12, %v1831_v4  ;;  %v1839_v10 = vsel %vm1838_vm7, %v1831_v4, %v1835_v12  ;;  %v1858_v4 = vmul.f32 %v1849_v55, %v1840_v58 }
 0x2d9   : > { %v4720_v16 = vpop.permute.xlu0 %2012  ;;  %v1857_v38 = vmul.f32 %v1853_v33, %v1841_v13  ;;  %v1856_v62 = vmul.f32 %v1849_v55, %v1839_v10  ;;  %v644_v13 = vrot.slane %v3757_v20, %v4604_v28 }
 0x2db   : > { %v1921_v23 = vpop.permute.xlu1 %1920  ;;  %v1861_v50 = vpack.c.bf16 %v1859_v43, %v1857_v38  ;;  %v1860_v46 = vpack.c.bf16 %v1858_v4, %v1856_v62 }
 0x2dd   : > { %3813 = vmatmul.mubr.msk.bf16.vlgmr.msra.gmra.mrb[0].mxu1 %vm665_vm3, %v4209_v19  ;;  %v4728_v27 = vpop.permute.xlu0 %2016  ;;  %v2033_v19 = vrot.slane %v4791_v9, %v4600_v26 }
 0x2de   : > { %1707 = vmatpush1.bf16.msra.mxu1 %v1693_v25  ;;  %1738 = vmatprep.mubr.bf16.mxu1 %v4341_v0  ;;  %v2022_v24 = vsel %vm2018_vm9, %v4728_v27, %v4720_v16 }
 0x2df   : > { %1783 = vmatprep.subr.bf16.mxu1 %v1771_v29  ;;  %v1925_v30 = vpop.permute.xlu1 %1924  ;;  %v2039_v32 = vmul.f32 %v2033_v19, %v2022_v24 }
 0x2e0   : > { %v1931_v56 = vsel %vm1928_vm8, %v1925_v30, %v1921_v23  ;;  %v1929_v12 = vsel %vm1928_vm8, %v1921_v23, %v1925_v30  ;;  %v1930_v23 = vsel %vm1928_vm8, %v4706_v3, %v4714_v8  ;;  %v648_v3 = vrot.slane %v3757_v20, %v4600_v26 }
 0x2e1   : > { %v4735_v18 = vpop.permute.xlu0 %2102  ;;  %v1947_v63 = vmul.f32 %v1943_v59, %v1931_v56  ;;  %v1946_v25 = vmul.f32 %v1939_v15, %v1929_v12  ;;  %v1948_v8 = vmul.f32 %v1939_v15, %v1930_v23  ;;  %v4213_v15 = vld [vmem:[%s5576_s2 + $0x8] sm:$0xff]   ;;  %v2020_v23 = vsel %vm2018_vm9, %v4720_v16, %v4728_v27  ;;  %v4214_v27 = vld [vmem:[%s5576_s2 + $0x78] sm:$0xff]  }
 0x2e3   : > { %v4741_v34 = vpop.permute.xlu1 %2010  ;;  %v1951_v7 = vpack.c.bf16 %v1949_v5, %v1947_v63 }
 0x2e5   : > { %v4748_v39 = vpop.permute.xlu0 %2106 }
 0x2e7   : > { %v4754_v44 = vpop.permute.xlu1 %2014 }
 0x2e8   : > { %v2021_v14 = vsel %vm2018_vm9, %v4754_v44, %v4741_v34 }
 0x2e9   : > { %3818 = vmatmul.mubr.msk.bf16.vlgmr.msra.gmra.mrb[0].mxu1 %vm665_vm3, %v4210_v40  ;;  %v4757_v49 = vpop.permute.xlu0 %592  ;;  %v2037_v29 = vmul.f32 %v2033_v19, %v2021_v14  ;;  %v1950_v40 = vpack.c.bf16 %v1948_v8, %v1946_v25  ;;  %v2029_v19 = vrot.slane %v4791_v9, %v4604_v28  ;;  %v2112_v25 = vsel %vm2108_vm13, %v4748_v39, %v4735_v18 }
 0x2ea   : > { %1784 = vmatpush1.bf16.msra.mxu1 %v1770_v47  ;;  %1815 = vmatprep.mubr.bf16.mxu1 %v4341_v0 }
 0x2eb   : > { %1873 = vmatprep.subr.bf16.mxu1 %v1861_v50  ;;  %v4760_v17 = vpop.permute.xlu1 %2100  ;;  %v2041_v51 = vpack.c.bf16 %v2039_v32, %v2037_v29  ;;  %v2038_v8 = vmul.f32 %v2029_v19, %v2020_v23  ;;  %v3769_v32 = vld [vmem:[%s5586_s12 + $0x6] sm:$0x3] }
 0x2ed   : > { %v4768_v53 = vpop.permute.xlu0 %596 }
 0x2ee   : > { %v4844_v43 = vsel %vm600_vm11, %v4757_v49, %v4768_v53  ;;  %v4876_v4 = vsel %vm600_vm11, %v4768_v53, %v4757_v49  ;;  %v2019_v49 = vsel %vm2018_vm9, %v4741_v34, %v4754_v44 }
 0x2ef   : > { %v4778_v60 = vpop.permute.xlu1 %2104  ;;  %v620_v5 = vmul.f32 %v614_v41, %v4844_v43  ;;  %v2036_v29 = vmul.f32 %v2029_v19, %v2019_v49 }
 0x2f0   : > { %v2111_v34 = vsel %vm2108_vm13, %v4778_v60, %v4760_v17 }
 0x2f1   : > { %v628_v1 = vpop.permute.xlu0 %627 }
 0x2f3   : > { %v591_v6 = vpop.permute.xlu1 %590 }
 0x2f5   : > { %3823 = vmatmul.mubr.msk.bf16.vlgmr.msra.gmra.mrb[0].mxu1 %vm665_vm3, %v4211_v2  ;;  %v632_v57 = vpop.permute.xlu0 %631  ;;  %v3764_v2 = vld [vmem:[%s5586_s12 + $0x4] sm:$0x3] }
 0x2f6   : > { %1874 = vmatpush1.bf16.msra.mxu1 %v1860_v46  ;;  %1905 = vmatprep.mubr.bf16.mxu1 %v4341_v0  ;;  %v4826_v33 = vsel %vm633_vm10, %v628_v1, %v632_v57  ;;  %v4830_v35 = vsel %vm633_vm10, %v632_v57, %v628_v1  ;;  %v610_v1 = vrot.slane %v605_v31, %v4604_v28 }
 0x2f7   : > { %1963 = vmatprep.subr.bf16.mxu1 %v1951_v7  ;;  %v595_v11 = vpop.permute.xlu1 %594  ;;  %v653_v10 = vmul.f32 %v644_v13, %v4830_v35  ;;  %v654_v55 = vmul.f32 %v648_v3, %v4826_v33  ;;  %v3839_v7 = vld [vmem:[%s5586_s12 + $0x22] sm:$0x3]  ;;  %v786_v53 = vrot.slane %v3764_v2, %v4600_v26 }
 0x2f8   : > { %v4837_v38 = vsel %vm600_vm11, %v591_v6, %v595_v11  ;;  %v4860_v59 = vsel %vm600_vm11, %v595_v11, %v591_v6  ;;  %v619_v20 = vmul.f32 %v610_v1, %v4876_v4  ;;  %v2123_v9 = vrot.slane %v3839_v7, %v4600_v26 }
 0x2f9   : > { %v4807_v22 = vpop.permute.xlu0 %765  ;;  %v618_v61 = vmul.f32 %v614_v41, %v4837_v38  ;;  %v617_v11 = vmul.f32 %v610_v1, %v4860_v59  ;;  %v2119_v49 = vrot.slane %v3839_v7, %v4604_v28  ;;  %v4216_v7 = vld [vmem:[%s5576_s2 + $0x80] sm:$0xff]  }
 0x2fb   : > { %v626_v30 = vpop.permute.xlu1 %625  ;;  %v622_v14 = vpack.c.bf16 %v620_v5, %v618_v61 }
 0x2fd   : > { %v4846_v47 = vpop.permute.xlu0 %769 }
 0x2fe   : > { %v4905_v44 = vsel %vm771_vm12, %v4807_v22, %v4846_v47  ;;  %v4948_v1 = vsel %vm771_vm12, %v4846_v47, %v4807_v22 }
 0x2ff   : > { %v630_v50 = vpop.permute.xlu1 %629 }
 0x300   : > { %v4852_v56 = vsel %vm633_vm10, %v626_v30, %v630_v50  ;;  %v4856_v58 = vsel %vm633_vm10, %v630_v50, %v626_v30  ;;  %v621_v30 = vpack.c.bf16 %v619_v20, %v617_v11  ;;  %v4215_v11 = vld [vmem:[%s5576_s2] sm:$0xff]  }
 0x301   : > { %v651_v62 = vmul.f32 %v644_v13, %v4856_v58  ;;  %v652_v63 = vmul.f32 %v648_v3, %v4852_v56  ;;  %3828 = vmatmul.mubr.msk.bf16.vlgmr.msra.gmra.mrb[0].mxu1 %vm665_vm3, %v4212_v36  ;;  %v4889_v12 = vpop.permute.xlu0 %855  ;;  %v2127_v13 = vmul.f32 %v2123_v9, %v2111_v34  ;;  %v792_v3 = vmul.f32 %v786_v53, %v4905_v44 }
 0x302   : > { %1964 = vmatpush1.bf16.msra.mxu1 %v1950_v40  ;;  %1995 = vmatprep.mubr.bf16.mxu1 %v4341_v0  ;;  %v2129_v36 = vmul.f32 %v2123_v9, %v2112_v25  ;;  %v3774_v25 = vld [vmem:[%s5586_s12 + $0x8] sm:$0x3] }
 0x303   : > { %v655_v6 = vpack.c.bf16 %v653_v10, %v651_v62  ;;  %2053 = vmatprep.subr.bf16.mxu1 %v2041_v51  ;;  %v764_v46 = vpop.permute.xlu1 %763  ;;  %v656_v57 = vpack.c.bf16 %v654_v55, %v652_v63  ;;  %v2040_v51 = vpack.c.bf16 %v2038_v8, %v2036_v29  ;;  %v876_v10 = vrot.slane %v3769_v32, %v4600_v26 }
 0x304   : > { %v2131_v61 = vpack.c.bf16 %v2129_v36, %v2127_v13  ;;  %v782_v62 = vrot.slane %v3764_v2, %v4604_v28  ;;  %v3844_v2 = vld [vmem:[%s5586_s12 + $0x24] sm:$0x3]  ;;  %v872_v13 = vrot.slane %v3769_v32, %v4604_v28 }
 0x305   : > { %669 = vmatprep.subr.bf16.mxu0 %v656_v57  ;;  %v860_v40 = vpop.permute.xlu0 %859  ;;  %v2109_v57 = vsel %vm2108_vm13, %v4760_v17, %v4778_v60 }
 0x306   : > { %670 = vmatpush1.bf16.msra.mxu0 %v655_v6  ;;  %v4941_v63 = vsel %vm861_vm14, %v4889_v12, %v860_v40  ;;  %v2126_v20 = vmul.f32 %v2119_v49, %v2109_v57 }
 0x307   : > { %v768_v24 = vpop.permute.xlu1 %767  ;;  %720 = vmatprep.subr.bf16.mxu0 %v622_v14  ;;  %v882_v22 = vmul.f32 %v876_v10, %v4941_v63  ;;  %v2110_v14 = vsel %vm2108_vm13, %v4735_v18, %v4748_v39 }
 0x308   : > { %v4918_v31 = vsel %vm771_vm12, %v764_v46, %v768_v24  ;;  %v4934_v55 = vsel %vm771_vm12, %v768_v24, %v764_v46  ;;  %v2128_v9 = vmul.f32 %v2119_v49, %v2110_v14  ;;  %v962_v14 = vrot.slane %v3774_v25, %v4604_v28 }
 0x309   : > { %v790_v16 = vmul.f32 %v786_v53, %v4918_v31  ;;  %3761 = vmatmul.mubr.msk.bf16.vlgmr.msra.gmra.mrb[4].mxu0 %vm665_vm3, %v4213_v15  ;;  %v789_v6 = vmul.f32 %v782_v62, %v4934_v55  ;;  %v791_v53 = vmul.f32 %v782_v62, %v4948_v1  ;;  %v2200_v15 = vrot.slane %v3844_v2, %v4600_v26  ;;  %v4974_v17 = vpop.permute.xlu0 %945 }
 0x30a   : > { %721 = vmatpush1.bf16.msra.mxu0 %v621_v30  ;;  %752 = vmatprep.mubr.bf16.mxu0 %v4341_v0  ;;  %v2130_v24 = vpack.c.bf16 %v2128_v9, %v2126_v20 }
 0x30b   : > { %v854_v41 = vpop.permute.xlu1 %853  ;;  %v794_v50 = vpack.c.bf16 %v792_v3, %v790_v16  ;;  %v793_v34 = vpack.c.bf16 %v791_v53, %v789_v6  ;;  %v2204_v23 = vmul.f32 %v2200_v15, %v4860_v59  ;;  %v2206_v18 = vmul.f32 %v2200_v15, %v4876_v4 }
 0x30c   : > { %v5001_v3 = vsel %vm861_vm14, %v860_v40, %v4889_v12  ;;  %v966_v16 = vrot.slane %v3774_v25, %v4600_v26  ;;  %v4217_v12 = vld [vmem:[%s5576_s2 + $0x10] sm:$0xff]   ;;  %v2196_v40 = vrot.slane %v3844_v2, %v4604_v28 }
 0x30d   : > { %806 = vmatprep.subr.bf16.mxu0 %v794_v50  ;;  %3833 = vmatmul.mubr.msk.bf16.vlgmr.msra.gmra.mrb[0].mxu1 %vm665_vm3, %v4214_v27  ;;  %v950_v59 = vpop.permute.xlu0 %949  ;;  %v2208_v30 = vpack.c.bf16 %v2206_v18, %v2204_v23  ;;  %v3849_v27 = vld [vmem:[%s5586_s12 + $0x26] sm:$0x3]  ;;  %v881_v50 = vmul.f32 %v872_v13, %v5001_v3 }
 0x30e   : > { %2054 = vmatpush1.bf16.msra.mxu1 %v2040_v51  ;;  %2085 = vmatprep.mubr.bf16.mxu1 %v4341_v0  ;;  %v5010_v8 = vsel %vm951_vm15, %v4974_v17, %v950_v59  ;;  %v2277_v51 = vrot.slane %v3849_v27, %v4600_v26  ;;  %v2203_v62 = vmul.f32 %v2196_v40, %v4837_v38 }
 0x30f   : > { %2143 = vmatprep.subr.bf16.mxu1 %v2131_v61  ;;  %v858_v5 = vpop.permute.xlu1 %857  ;;  %v2205_v2 = vmul.f32 %v2196_v40, %v4844_v43  ;;  %v5048_v15 = vsel %vm951_vm15, %v950_v59, %v4974_v17  ;;  %v4219_v17 = vld [vmem:[%s5576_s2 + $0x18] sm:$0xff]   ;;  %v2273_v9 = vrot.slane %v3849_v27, %v4604_v28 }
 0x310   : > { %v4956_v46 = vsel %vm861_vm14, %v854_v41, %v858_v5  ;;  %v4989_v29 = vsel %vm861_vm14, %v858_v5, %v854_v41  ;;  %v2281_v6 = vmul.f32 %v2277_v51, %v4856_v58  ;;  %v3779_v58 = vld [vmem:[%s5586_s12 + $0xa] sm:$0x3]  ;;  %v971_v18 = vmul.f32 %v962_v14, %v5048_v15 }
 0x311   : > { %v880_v47 = vmul.f32 %v876_v10, %v4956_v46  ;;  %v879_v32 = vmul.f32 %v872_v13, %v4989_v29  ;;  %v972_v10 = vmul.f32 %v966_v16, %v5010_v8  ;;  %v1036_v61 = vpop.permute.xlu0 %1035  ;;  %v2207_v38 = vpack.c.bf16 %v2205_v2, %v2203_v62 }
 0x312   : > { %v2280_v59 = vmul.f32 %v2273_v9, %v4852_v56  ;;  %v2282_v27 = vmul.f32 %v2273_v9, %v4826_v33 }
 0x313   : > { %v944_v60 = vpop.permute.xlu1 %943  ;;  %v884_v19 = vpack.c.bf16 %v882_v22, %v880_v47  ;;  %v883_v5 = vpack.c.bf16 %v881_v50, %v879_v32  ;;  %v4218_v22 = vld [vmem:[%s5576_s2 + $0x88] sm:$0xff]   ;;  %v2283_v47 = vmul.f32 %v2277_v51, %v4830_v35  ;;  %v4220_v32 = vld [vmem:[%s5576_s2 + $0x90] sm:$0xff]   ;;  %v1052_v51 = vrot.slane %v3779_v58, %v4604_v28 }
 0x314   : > { %v2284_v56 = vpack.c.bf16 %v2282_v27, %v2280_v59 }
 0x315   : > { %3763 = vmatmul.mubr.msk.bf16.vlgmr.msra.gmra.mrb[4].mxu0 %vm665_vm3, %v4215_v11  ;;  %v1040_v49 = vpop.permute.xlu0 %1039  ;;  %v2285_v43 = vpack.c.bf16 %v2283_v47, %v2281_v6 }
 0x316   : > { %807 = vmatpush1.bf16.msra.mxu0 %v793_v34  ;;  %838 = vmatprep.mubr.bf16.mxu0 %v4341_v0  ;;  %v5056_v20 = vsel %vm1041_vm1, %v1036_v61, %v1040_v49 }
 0x317   : > { %896 = vmatprep.subr.bf16.mxu0 %v884_v19  ;;  %v948_v39 = vpop.permute.xlu1 %947  ;;  %v3854_v19 = vld [vmem:[%s5586_s12 + $0x28] sm:$0x3] }
 0x318   : > { %v4995_v4 = vsel %vm951_vm15, %v944_v60, %v948_v39  ;;  %v5036_v53 = vsel %vm951_vm15, %v948_v39, %v944_v60  ;;  %v1056_v60 = vrot.slane %v3779_v58, %v4600_v26  ;;  %v2354_v39 = vrot.slane %v3854_v19, %v4600_v26 }
 0x319   : > { %3838 = vmatmul.mubr.msk.bf16.vlgmr.msra.gmra.mrb[0].mxu1 %vm665_vm3, %v4216_v7  ;;  %v970_v36 = vmul.f32 %v966_v16, %v4995_v4  ;;  %v969_v34 = vmul.f32 %v962_v14, %v5036_v53  ;;  %v1126_v25 = vpop.permute.xlu0 %1125  ;;  %v2350_v2 = vrot.slane %v3854_v19, %v4604_v28 }
 0x31a   : > { %2144 = vmatpush1.bf16.msra.mxu1 %v2130_v24  ;;  %2175 = vmatprep.mubr.bf16.mxu1 %v4341_v0  ;;  %v1062_v24 = vmul.f32 %v1056_v60, %v5056_v20  ;;  %v2358_v13 = vmul.f32 %v2354_v39, %v4934_v55  ;;  %v3784_v55 = vld [vmem:[%s5586_s12 + $0xc] sm:$0x3] }
 0x31b   : > { %2220 = vmatprep.subr.bf16.mxu1 %v2208_v30  ;;  %v1034_v41 = vpop.permute.xlu1 %1033  ;;  %v974_v57 = vpack.c.bf16 %v972_v10, %v970_v36  ;;  %v973_v30 = vpack.c.bf16 %v971_v18, %v969_v34  ;;  %v2360_v36 = vmul.f32 %v2354_v39, %v4948_v1  ;;  %v5093_v10 = vsel %vm1041_vm1, %v1040_v49, %v1036_v61  ;;  %v4221_v61 = vld [vmem:[%s5576_s2 + $0x20] sm:$0xff]   ;;  %v4222_v34 = vld [vmem:[%s5576_s2 + $0x98] sm:$0xff]  }
 0x31c   : > { %v1146_v62 = vrot.slane %v3784_v55, %v4600_v26  ;;  %v1061_v47 = vmul.f32 %v1052_v51, %v5093_v10  ;;  %v2357_v49 = vmul.f32 %v2350_v2, %v4918_v31  ;;  %v2359_v19 = vmul.f32 %v2350_v2, %v4905_v44 }
 0x31d   : > { %v1130_v40 = vpop.permute.xlu0 %1129  ;;  %v2362_v33 = vpack.c.bf16 %v2360_v36, %v2358_v13  ;;  %v1142_v39 = vrot.slane %v3784_v55, %v4604_v28 }
 0x31e   : > { %v2361_v31 = vpack.c.bf16 %v2359_v19, %v2357_v49 }
 0x31f   : > { %v1038_v11 = vpop.permute.xlu1 %1037 }
 0x320   : > { %v5042_v35 = vsel %vm1041_vm1, %v1034_v41, %v1038_v11  ;;  %v5082_v50 = vsel %vm1041_vm1, %v1038_v11, %v1034_v41  ;;  %v3859_v41 = vld [vmem:[%s5586_s12 + $0x2a] sm:$0x3] }
 0x321   : > { %3768 = vmatmul.mubr.msk.bf16.vlgmr.msra.gmra.mrb[4].mxu0 %vm665_vm3, %v4217_v12  ;;  %v1060_v23 = vmul.f32 %v1056_v60, %v5042_v35  ;;  %v1059_v6 = vmul.f32 %v1052_v51, %v5082_v50  ;;  %v2431_v11 = vrot.slane %v3859_v41, %v4600_v26  ;;  %v1216_v58 = vpop.permute.xlu0 %1215  ;;  %v4224_v51 = vld [vmem:[%s5576_s2 + $0xa0] sm:$0xff]  }
 0x322   : > { %897 = vmatpush1.bf16.msra.mxu0 %v883_v5  ;;  %928 = vmatprep.mubr.bf16.mxu0 %v4341_v0  ;;  %v5101_v5 = vsel %vm1131_vm2, %v1126_v25, %v1130_v40 }
 0x323   : > { %986 = vmatprep.subr.bf16.mxu0 %v974_v57  ;;  %v1124_v7 = vpop.permute.xlu1 %1123  ;;  %v1064_v16 = vpack.c.bf16 %v1062_v24, %v1060_v23  ;;  %v2435_v14 = vmul.f32 %v2431_v11, %v4989_v29  ;;  %v2437_v23 = vmul.f32 %v2431_v11, %v5001_v3  ;;  %v3789_v29 = vld [vmem:[%s5586_s12 + $0xe] sm:$0x3]  ;;  %v5138_v24 = vsel %vm1131_vm2, %v1130_v40, %v1126_v25 }
 0x324   : > { %v1236_v59 = vrot.slane %v3789_v29, %v4600_v26  ;;  %v4223_v25 = vld [vmem:[%s5576_s2 + $0x28] sm:$0xff]   ;;  %v1151_v27 = vmul.f32 %v1142_v39, %v5138_v24 }
 0x325   : > { %3843 = vmatmul.mubr.msk.bf16.vlgmr.msra.gmra.mrb[0].mxu1 %vm665_vm3, %v4218_v22  ;;  %v1220_v9 = vpop.permute.xlu0 %1219  ;;  %v2439_v44 = vpack.c.bf16 %v2437_v23, %v2435_v14 }
 0x326   : > { %2221 = vmatpush1.bf16.msra.mxu1 %v2207_v38  ;;  %2252 = vmatprep.mubr.bf16.mxu1 %v4341_v0  ;;  %v1152_v38 = vmul.f32 %v1146_v62, %v5101_v5 }
 0x327   : > { %2297 = vmatprep.subr.bf16.mxu1 %v2285_v43  ;;  %v1128_v12 = vpop.permute.xlu1 %1127  ;;  %v1063_v43 = vpack.c.bf16 %v1061_v47, %v1059_v6 }
 0x328   : > { %v5088_v1 = vsel %vm1131_vm2, %v1124_v7, %v1128_v12  ;;  %v5127_v18 = vsel %vm1131_vm2, %v1128_v12, %v1124_v7  ;;  %v3864_v7 = vld [vmem:[%s5586_s12 + $0x2c] sm:$0x3] }
 0x329   : > { %v1150_v57 = vmul.f32 %v1146_v62, %v5088_v1  ;;  %v1149_v13 = vmul.f32 %v1142_v39, %v5127_v18  ;;  %v2508_v36 = vrot.slane %v3864_v7, %v4600_v26  ;;  %v2504_v2 = vrot.slane %v3864_v7, %v4604_v28 }
 0x32b   : > { %v1214_v22 = vpop.permute.xlu1 %1213  ;;  %v1154_v60 = vpack.c.bf16 %v1152_v38, %v1150_v57  ;;  %v1153_v55 = vpack.c.bf16 %v1151_v27, %v1149_v13  ;;  %v2512_v40 = vmul.f32 %v2508_v36, %v5036_v53  ;;  %v1232_v57 = vrot.slane %v3789_v29, %v4604_v28 }
 0x32c   : > { %v2511_v38 = vmul.f32 %v2504_v2, %v4995_v4 }
 0x32d   : > { %3773 = vmatmul.mubr.msk.bf16.vlgmr.msra.gmra.mrb[4].mxu0 %vm665_vm3, %v4219_v17 }
 0x32e   : > { %987 = vmatpush1.bf16.msra.mxu0 %v973_v30  ;;  %1018 = vmatprep.mubr.bf16.mxu0 %v4341_v0  ;;  %v5146_v30 = vsel %vm1221_vm4, %v1216_v58, %v1220_v9 }
 0x32f   : > { %1076 = vmatprep.subr.bf16.mxu0 %v1064_v16  ;;  %v1218_v17 = vpop.permute.xlu1 %1217  ;;  %v1242_v12 = vmul.f32 %v1236_v59, %v5146_v30 }
 0x330   : > { %v5133_v3 = vsel %vm1221_vm4, %v1214_v22, %v1218_v17 }
 0x331   : > { %3848 = vmatmul.mubr.msk.bf16.vlgmr.msra.gmra.mrb[0].mxu1 %vm665_vm3, %v4220_v32  ;;  %v1240_v16 = vmul.f32 %v1236_v59, %v5133_v3  ;;  %v2427_v32 = vrot.slane %v3859_v41, %v4604_v28  ;;  %v2514_v41 = vmul.f32 %v2508_v36, %v5048_v15  ;;  %v3869_v15 = vld [vmem:[%s5586_s12 + $0x2e] sm:$0x3] }
 0x332   : > { %2298 = vmatpush1.bf16.msra.mxu1 %v2284_v56  ;;  %2329 = vmatprep.mubr.bf16.mxu1 %v4341_v0  ;;  %v2585_v11 = vrot.slane %v3869_v15, %v4600_v26 }
 0x333   : > { %2374 = vmatprep.subr.bf16.mxu1 %v2362_v33  ;;  %v2434_v56 = vmul.f32 %v2427_v32, %v4956_v46  ;;  %v1244_v33 = vpack.c.bf16 %v1242_v12, %v1240_v16  ;;  %v2436_v62 = vmul.f32 %v2427_v32, %v4941_v63  ;;  %v1224_v46 = vsel %vm1221_vm4, %v1218_v17, %v1214_v22  ;;  %v4225_v22 = vld [vmem:[%s5576_s2 + $0x30] sm:$0xff]   ;;  %v4230_v32 = vld [vmem:[%s5576_s2 + $0xc0] sm:$0xff]  }
 0x334   : > { %v2516_v53 = vpack.c.bf16 %v2514_v41, %v2512_v40  ;;  %v1225_v63 = vsel %vm1221_vm4, %v1220_v9, %v1216_v58  ;;  %v2589_v21 = vmul.f32 %v2585_v11, %v5082_v50  ;;  %v4226_v58 = vld [vmem:[%s5576_s2 + $0xa8] sm:$0xff]   ;;  %v2591_v14 = vmul.f32 %v2585_v11, %v5093_v10  ;;  %v3874_v50 = vld [vmem:[%s5586_s12 + $0x30] sm:$0x3] }
 0x335   : > { %v2438_v6 = vpack.c.bf16 %v2436_v62, %v2434_v56  ;;  %v1241_v47 = vmul.f32 %v1232_v57, %v1225_v63  ;;  %v2662_v10 = vrot.slane %v3874_v50, %v4600_v26  ;;  %v4228_v17 = vld [vmem:[%s5576_s2 + $0xb0] sm:$0xff]  }
 0x336   : > { %v2593_v4 = vpack.c.bf16 %v2591_v14, %v2589_v21 }
 0x337   : > { %v2666_v23 = vmul.f32 %v2662_v10, %v5127_v18  ;;  %v2668_v29 = vmul.f32 %v2662_v10, %v5138_v24  ;;  %v2658_v18 = vrot.slane %v3874_v50, %v4604_v28  ;;  %v4229_v24 = vld [vmem:[%s5576_s2 + $0xb8] sm:$0xff]   ;;  %v2917_v10 = vld [vmem:[%s5580_s6] sm:$0xff] }
 0x339   : > { %3778 = vmatmul.mubr.msk.bf16.vlgmr.msra.gmra.mrb[4].mxu0 %vm665_vm3, %v4221_v61  ;;  %v1239_v61 = vmul.f32 %v1232_v57, %v1224_v46  ;;  %v2665_v39 = vmul.f32 %v2658_v18, %v5088_v1  ;;  %v2667_v7 = vmul.f32 %v2658_v18, %v5101_v5 }
 0x33a   : > { %1077 = vmatpush1.bf16.msra.mxu0 %v1063_v43  ;;  %1108 = vmatprep.mubr.bf16.mxu0 %v4341_v0  ;;  %v2513_v43 = vmul.f32 %v2504_v2, %v5010_v8  ;;  %v4227_v8 = vld [vmem:[%s5576_s2 + $0x38] sm:$0xff]  }
 0x33b   : > { %1166 = vmatprep.subr.bf16.mxu0 %v1154_v60  ;;  %v1243_v49 = vpack.c.bf16 %v1241_v47, %v1239_v61  ;;  %v2669_v16 = vpack.c.bf16 %v2667_v7, %v2665_v39 }
 0x33c   : > { %v2515_v60 = vpack.c.bf16 %v2513_v43, %v2511_v38 }
 0x33d   : > { %3853 = vmatmul.mubr.msk.bf16.vlgmr.msra.gmra.mrb[0].mxu1 %vm665_vm3, %v4222_v34  ;;  %v2581_v34 = vrot.slane %v3869_v15, %v4604_v28 }
 0x33e   : > { %2375 = vmatpush1.bf16.msra.mxu1 %v2361_v31  ;;  %2406 = vmatprep.mubr.bf16.mxu1 %v4341_v0 }
 0x33f   : > { %2451 = vmatprep.subr.bf16.mxu1 %v2439_v44  ;;  %v2588_v19 = vmul.f32 %v2581_v34, %v5042_v35  ;;  %v2590_v31 = vmul.f32 %v2581_v34, %v5056_v20  ;;  %v2670_v44 = vpack.c.bf16 %v2668_v29, %v2666_v23  ;;  %v3879_v35 = vld [vmem:[%s5586_s12 + $0x32] sm:$0x3]  ;;  %v2936_v29 = vld [vmem:[%s5581_s7 + $0x8] sm:$0xff] }
 0x340   : > { %v2739_v20 = vrot.slane %v3879_v35, %v4600_v26  ;;  %v2735_v26 = vrot.slane %v3879_v35, %v4604_v28  ;;  %v4231_v28 = vld [vmem:[%s5576_s2 + $0xc8] sm:$0xff]  }
 0x341   : > { %v2592_v9 = vpack.c.bf16 %v2590_v31, %v2588_v19  ;;  %v2935_v31 = vld [vmem:[%s5581_s7] sm:$0xff] }
 0x342   : > { %v2743_v59 = vmul.f32 %v2739_v20, %v1224_v46  ;;  %v2745_v13 = vmul.f32 %v2739_v20, %v1225_v63  ;;  %v2742_v1 = vmul.f32 %v2735_v26, %v5133_v3  ;;  %v2744_v27 = vmul.f32 %v2735_v26, %v5146_v30  ;;  %v4232_v3 = vld [vmem:[%s5576_s2 + $0xd0] sm:$0xff]  }
 0x344   : > { %v2746_v5 = vpack.c.bf16 %v2744_v27, %v2742_v1 }
 0x345   : > { %3783 = vmatmul.mubr.msk.bf16.vlgmr.msra.gmra.mrb[4].mxu0 %vm665_vm3, %v4223_v25  ;;  %v2747_v25 = vpack.c.bf16 %v2745_v13, %v2743_v59 }
 0x346   : > { %1167 = vmatpush1.bf16.msra.mxu0 %v1153_v55  ;;  %1198 = vmatprep.mubr.bf16.mxu0 %v4341_v0 }
 0x347   : > { %1256 = vmatprep.subr.bf16.mxu0 %v1244_v33 }
 0x349   : > { %3858 = vmatmul.mubr.msk.bf16.vlgmr.msra.gmra.mrb[0].mxu1 %vm665_vm3, %v4224_v51 }
 0x34a   : > { %2452 = vmatpush1.bf16.msra.mxu1 %v2438_v6  ;;  %2483 = vmatprep.mubr.bf16.mxu1 %v4341_v0 }
 0x34b   : > { %2528 = vmatprep.subr.bf16.mxu1 %v2516_v53 }
 0x351   : > { %3788 = vmatmul.mubr.msk.bf16.vlgmr.msra.gmra.mrb[4].mxu0 %vm665_vm3, %v4225_v22 }
 0x352   : > { %1257 = vmatpush1.bf16.msra.mxu0 %v1243_v49  ;;  %1288 = vmatprep.mubr.bf16.mxu0 %v4341_v0 }
 0x355   : > { %3863 = vmatmul.mubr.msk.bf16.vlgmr.msra.gmra.mrb[0].mxu1 %vm665_vm3, %v4226_v58 }
 0x356   : > { %2529 = vmatpush1.bf16.msra.mxu1 %v2515_v60  ;;  %2560 = vmatprep.mubr.bf16.mxu1 %v4341_v0 }
 0x357   : > { %2605 = vmatprep.subr.bf16.mxu1 %v2593_v4 }
 0x35d   : > { %3793 = vmatmul.mubr.msk.bf16.vlgmr.msra.gmra.mrb[4].mxu0 %vm665_vm3, %v4227_v8  ;;  %v2918_v8 = vld [vmem:[%s5580_s6 + $0x8] sm:$0xff] }
 0x35e   : > { %3029 = vmatprep.mubr.bf16.mxu0 %v4341_v0 }
 0x361   : > { %3868 = vmatmul.mubr.msk.bf16.vlgmr.msra.gmra.mrb[0].mxu1 %vm665_vm3, %v4228_v17 }
 0x362   : > { %2606 = vmatpush1.bf16.msra.mxu1 %v2592_v9  ;;  %2637 = vmatprep.mubr.bf16.mxu1 %v4341_v0 }
 0x363   : > { %2682 = vmatprep.subr.bf16.mxu1 %v2670_v44 }
 0x36d   : > { %3873 = vmatmul.mubr.msk.bf16.vlgmr.msra.gmra.mrb[0].mxu1 %vm665_vm3, %v4229_v24 }
 0x36e   : > { %2683 = vmatpush1.bf16.msra.mxu1 %v2669_v16  ;;  %2714 = vmatprep.mubr.bf16.mxu1 %v4341_v0 }
 0x36f   : > { %2759 = vmatprep.subr.bf16.mxu1 %v2747_v25 }
 0x379   : > { %3878 = vmatmul.mubr.msk.bf16.vlgmr.msra.gmra.mrb[0].mxu1 %vm665_vm3, %v4230_v32 }
 0x37a   : > { %2760 = vmatpush1.bf16.msra.mxu1 %v2746_v5  ;;  %2791 = vmatprep.mubr.bf16.mxu1 %v4341_v0 }
 0x37b   : > { %2836 = vmatprep.subr.bf16.mxu1 %v2824_v54 }
 0x385   : > { %3883 = vmatmul.mubr.msk.bf16.vlgmr.msra.gmra.mrb[0].mxu1 %vm665_vm3, %v4231_v28 }
 0x386   : > { %2837 = vmatpush1.bf16.msra.mxu1 %v2823_v52  ;;  %2868 = vmatprep.mubr.bf16.mxu1 %v4341_v0 }
 0x391   : > { %3888 = vmatmul.mubr.msk.bf16.vlgmr.msra.gmra.mrb[0].mxu1 %vm665_vm3, %v4232_v3 }
 0x430   : > { %v1290_v37 = vpop.f32.mrb[4].mxu0 }
 0x431   : > { %v1292_v45 = vpop.f32.mrb[5].mxu0 }
 0x432   : > { %v1294_v54 = vpop.f32.mrb[6].mxu0 }
 0x433   : > { %v1296_v30 = vpop.f32.mrb[7].mxu0 }
 0x464   : > { %v2870_v36 = vpop.f32.mrb[0].mxu1 }
 0x465   : > { %v4040_v12 = vadd.f32 %v2870_v36, %v1290_v37  ;;  %v2872_v56 = vpop.f32.mrb[1].mxu1  ;;  %v4234_v36 = vld [vmem:[%s5577_s3 + $0x8] sm:$0xff]  }
 0x466   : > { %v4041_v55 = vadd.f32 %v2872_v56, %v1292_v45  ;;  %v2874_v40 = vpop.f32.mrb[2].mxu1  ;;  %v4236_v56 = vld [vmem:[%s5577_s3 + $0x18] sm:$0xff]  }
 0x467   : > { %v4042_v33 = vadd.f32 %v2874_v40, %v1294_v54  ;;  %v2876_v42 = vpop.f32.mrb[3].mxu1  ;;  %v2889_v6 = vmul.f32 %v4040_v12, %v4040_v12 }
 0x468   : > { %v4043_v48 = vadd.f32 %v2876_v42, %v1296_v30  ;;  %v2883_v52 = vadd.f32 %v4041_v55, %v4040_v12  ;;  %v2890_v46 = vmul.f32 %v4041_v55, %v4041_v55  ;;  %v4233_v30 = vld [vmem:[%s5577_s3] sm:$0xff]  }
 0x469   : > { %v2891_v51 = vmul.f32 %v4042_v33, %v4042_v33 }
 0x46a   : > { %2884 = vadd.xlane.f32.xlu1 %v2883_v52  ;;  %v2886_v62 = vadd.f32 %v4043_v48, %v4042_v33  ;;  %v2892_v41 = vmul.f32 %v4043_v48, %v4043_v48  ;;  %v2893_v57 = vadd.f32 %v2890_v46, %v2889_v6 }
 0x46c   : > { %2887 = vadd.xlane.f32.xlu0 %v2886_v62  ;;  %v2896_v53 = vadd.f32 %v2892_v41, %v2891_v51 }
 0x46e   : > { %2897 = vadd.xlane.f32.xlu1 %v2896_v53 }
 0x470   : > { %2894 = vadd.xlane.f32.xlu0 %v2893_v57 }
 0x4f7   : > { %v2885_v63 = vpop.xlane.xlu1 %2884 }
 0x4f8   : > { %v2899_v61 = vmul.f32 0.00390625, %v2885_v63 }
 0x4f9   : > { %v2888_v15 = vpop.xlane.xlu0 %2887 }
 0x4fa   : > { %v2900_v22 = vmul.f32 0.00390625, %v2888_v15  ;;  %v2903_v21 = vmul.f32 %v2899_v61, %v2899_v61  ;;  %v2913_v44 = vsub.f32 %v4040_v12, %v2899_v61  ;;  %v2914_v35 = vsub.f32 %v4041_v55, %v2899_v61  ;;  %v4235_v12 = vld [vmem:[%s5577_s3 + $0x10] sm:$0xff]  }
 0x4fb   : > { %v2898_v2 = vpop.xlane.xlu1 %2897 }
 0x4fc   : > { %v2902_v47 = vmul.f32 0.00390625, %v2898_v2  ;;  %v2904_v11 = vmul.f32 %v2900_v22, %v2900_v22  ;;  %v2915_v20 = vsub.f32 %v4042_v33, %v2900_v22  ;;  %v2916_v39 = vsub.f32 %v4043_v48, %v2900_v22 }
 0x4fd   : > { %v2895_v38 = vpop.xlane.xlu0 %2894 }
 0x4fe   : > { %v2906_v49 = vsub.f32 %v2902_v47, %v2904_v11  ;;  %v2901_v58 = vmul.f32 0.00390625, %v2895_v38 }
 0x500   : > { %v2908_v43 = vmax.f32 %v2906_v49, 0.0  ;;  %v2905_v14 = vsub.f32 %v2901_v58, %v2903_v21 }
 0x502   : > { %v2910_v60 = vadd.f32 1e-05, %v2908_v43  ;;  %v2907_v4 = vmax.f32 %v2905_v14, 0.0 }
 0x504   : > { %4241 = vrsqrt.f32 %v2910_v60  ;;  %v2909_v50 = vadd.f32 1e-05, %v2907_v4 }
 0x506   : > { %4243 = vrsqrt.f32 %v2909_v50 }
 0x50e   : > { %v4242_v34 = vpop.eup %4241 }
 0x50f   : > { %v2920_v19 = vmul.f32 %v4242_v34, %v2918_v8 }
 0x510   : > { %v4244_v23 = vpop.eup %4243 }
 0x511   : > { %2928 = vperm.xlu1 %4204, %v2920_v19   ;;  %v2919_v17 = vmul.f32 %v4244_v23, %v2917_v10 }
 0x513   : > { %2923 = vperm.xlu0 %4203, %v2919_v17  }
 0x515   : > { %2939 = vperm.xlu1 %4204, %v2935_v31  }
 0x517   : > { %2944 = vperm.xlu0 %4203, %v2936_v29  }
 0x590   : > { %v2929_v9 = vpop.permute.xlu1 %2928 }
 0x591   : > { %v2933_v13 = vmul.f32 %v2929_v9, %v2915_v20  ;;  %v2934_v16 = vmul.f32 %v2929_v9, %v2916_v39 }
 0x592   : > { %v2924_v18 = vpop.permute.xlu0 %2923 }
 0x593   : > { %v2931_v59 = vmul.f32 %v2924_v18, %v2913_v44  ;;  %v2932_v24 = vmul.f32 %v2924_v18, %v2914_v35 }
 0x594   : > { %v2940_v7 = vpop.permute.xlu1 %2939 }
 0x595   : > { %v2947_v25 = vadd.f32 %v2940_v7, %v2931_v59  ;;  %v2948_v26 = vadd.f32 %v2940_v7, %v2932_v24 }
 0x596   : > { %v2945_v1 = vpop.permute.xlu0 %2944 }
 0x597   : > { %v2949_v32 = vadd.f32 %v2945_v1, %v2933_v13  ;;  %v2950_v27 = vadd.f32 %v2945_v1, %v2934_v16  ;;  %v2951_v5 = vmax.f32 %v2947_v25, 0.0  ;;  %v2952_v28 = vmax.f32 %v2948_v26, 0.0  ;;  %v5360_v16 = vld [vmem:[%s5585_s11] sm:$0xff]  ;;  %v3561_v26 = vld [vmem:[%s5583_s9 + $0x8] sm:$0xff]  ;;  %v3562_v1 = vld [vmem:[%s5583_s9 + $0x10] sm:$0xff] }
 0x598   : > { %v3560_v25 = vld [vmem:[%s5583_s9] sm:$0xff] }
 0x599   : > { %v2953_v3 = vmax.f32 %v2949_v32, 0.0  ;;  %v2954_v37 = vmax.f32 %v2950_v27, 0.0  ;;  %v3563_v32 = vld [vmem:[%s5583_s9 + $0x18] sm:$0xff]  ;;  %v3564_v27 = vld [vmem:[%s5583_s9 + $0x20] sm:$0xff] }
 0x59b   : > { %v2963_v45 = vpack.c.bf16 %v2953_v3, %v2951_v5  ;;  %v2964_v54 = vpack.c.bf16 %v2954_v37, %v2952_v28  ;;  %v3565_v5 = vld [vmem:[%s5583_s9 + $0x28] sm:$0xff] }
 0x59d   : > { %2997 = vmatprep.subr.bf16.mxu0 %v2964_v54 }
 0x59e   : > { %2998 = vmatpush1.bf16.msra.mxu0 %v2963_v45 }
 0x5a1   : > { %3893 = vmatmul.mubr.msk.bf16.vlgmr.msra.gmra.mrb[8].mxu0 %vm665_vm3, %v4233_v30 }
 0x5a2   : > { %3039 = vmatprep.mubr.bf16.mxu0 %v4341_v0 }
 0x5a9   : > { %3894 = vmatmul.mubr.msk.bf16.gmra.mrb[12].mxu0 %vm665_vm3, %v4234_v36 }
 0x5aa   : > { %3049 = vmatprep.mubr.bf16.mxu0 %v4341_v0 }
 0x5b1   : > { %3895 = vmatmul.mubr.msk.bf16.gmra.mrb[16].mxu0 %vm665_vm3, %v4235_v12 }
 0x5b2   : > { %3059 = vmatprep.mubr.bf16.mxu0 %v4341_v0 }
 0x5b9   : > { %3896 = vmatmul.mubr.msk.bf16.gmra.mrb[20].mxu0 %vm665_vm3, %v4236_v56 }
 0x5ba   : > { %3968 = vmatprep.mubr.msk.f32.mxu0 %vm471_vm0, %v5360_v16 }
 0x674   : > { %v5277_v55 = vpop.f32.mrb[8].mxu0 }
 0x675   : > { %v5279_v40 = vpop.f32.mrb[9].mxu0  ;;  %v3094_v33 = vmul.f32 %v5277_v55, %v5277_v55 }
 0x676   : > { %v5283_v42 = vpop.f32.mrb[10].mxu0  ;;  %v3070_v48 = vadd.f32 %v5279_v40, %v5277_v55  ;;  %v3095_v0 = vmul.f32 %v5279_v40, %v5279_v40 }
 0x677   : > { %v3096_v52 = vmul.f32 %v5283_v42, %v5283_v42  ;;  %v5291_v51 = vpop.f32.mrb[11].mxu0 }
 0x678   : > { %v3097_v62 = vmul.f32 %v5291_v51, %v5291_v51  ;;  %3071 = vadd.xlane.f32.xlu1 %v3070_v48  ;;  %v3073_v41 = vadd.f32 %v5291_v51, %v5283_v42  ;;  %v3110_v6 = vadd.f32 %v3095_v0, %v3094_v33 }
 0x67a   : > { %3074 = vadd.xlane.f32.xlu0 %v3073_v41  ;;  %v3113_v46 = vadd.f32 %v3097_v62, %v3096_v52  ;;  %v3135_v41 = vld [vmem:[%s5585_s11 + $0x8] sm:$0xff] }
 0x67c   : > { %v5297_v53 = vpop.f32.mrb[12].mxu0 }
 0x67d   : > { %v5299_v57 = vpop.f32.mrb[13].mxu0  ;;  %v3098_v63 = vmul.f32 %v5297_v53, %v5297_v53 }
 0x67e   : > { %v5303_v15 = vpop.f32.mrb[14].mxu0  ;;  %v3076_v61 = vadd.f32 %v5299_v57, %v5297_v53  ;;  %v3099_v22 = vmul.f32 %v5299_v57, %v5299_v57 }
 0x67f   : > { %v3100_v2 = vmul.f32 %v5303_v15, %v5303_v15  ;;  %v5311_v47 = vpop.f32.mrb[15].mxu0 }
 0x680   : > { %v3101_v11 = vmul.f32 %v5311_v47, %v5311_v47  ;;  %3077 = vadd.xlane.f32.xlu0 %v3076_v61  ;;  %v3079_v38 = vadd.f32 %v5311_v47, %v5303_v15  ;;  %v3116_v49 = vadd.f32 %v3099_v22, %v3098_v63  ;;  %v3137_v22 = vld [vmem:[%s5585_s11 + $0x18] sm:$0xff] }
 0x682   : > { %3080 = vadd.xlane.f32.xlu1 %v3079_v38  ;;  %v3119_v21 = vadd.f32 %v3101_v11, %v3100_v2  ;;  %v3138_v11 = vld [vmem:[%s5585_s11 + $0x20] sm:$0xff] }
 0x684   : > { %v5317_v58 = vpop.f32.mrb[16].mxu0 }
 0x685   : > { %v5319_v43 = vpop.f32.mrb[17].mxu0  ;;  %v3102_v14 = vmul.f32 %v5317_v58, %v5317_v58 }
 0x686   : > { %v5323_v60 = vpop.f32.mrb[18].mxu0  ;;  %v3082_v4 = vadd.f32 %v5319_v43, %v5317_v58  ;;  %v3103_v50 = vmul.f32 %v5319_v43, %v5319_v43 }
 0x687   : > { %v3104_v8 = vmul.f32 %v5323_v60, %v5323_v60  ;;  %v5331_v34 = vpop.f32.mrb[19].mxu0 }
 0x688   : > { %v3105_v10 = vmul.f32 %v5331_v34, %v5331_v34  ;;  %3083 = vadd.xlane.f32.xlu0 %v3082_v4  ;;  %v3085_v19 = vadd.f32 %v5331_v34, %v5323_v60  ;;  %v3122_v23 = vadd.f32 %v3103_v50, %v3102_v14  ;;  %v3140_v4 = vld [vmem:[%s5585_s11 + $0x30] sm:$0xff] }
 0x68a   : > { %3086 = vadd.xlane.f32.xlu1 %v3085_v19  ;;  %v3125_v17 = vadd.f32 %v3105_v10, %v3104_v8  ;;  %v3141_v10 = vld [vmem:[%s5585_s11 + $0x38] sm:$0xff] }
 0x68c   : > { %v5337_v31 = vpop.f32.mrb[20].mxu0 }
 0x68d   : > { %v5339_v29 = vpop.f32.mrb[21].mxu0  ;;  %v3106_v9 = vmul.f32 %v5337_v31, %v5337_v31 }
 0x68e   : > { %v5343_v44 = vpop.f32.mrb[22].mxu0  ;;  %v3088_v35 = vadd.f32 %v5339_v29, %v5337_v31  ;;  %v3107_v18 = vmul.f32 %v5339_v29, %v5339_v29 }
 0x68f   : > { %v3108_v20 = vmul.f32 %v5343_v44, %v5343_v44  ;;  %v5351_v39 = vpop.f32.mrb[23].mxu0 }
 0x690   : > { %v3109_v59 = vmul.f32 %v5351_v39, %v5351_v39  ;;  %3089 = vadd.xlane.f32.xlu0 %v3088_v35  ;;  %v3091_v24 = vadd.f32 %v5351_v39, %v5343_v44  ;;  %v3128_v7 = vadd.f32 %v3107_v18, %v3106_v9 }
 0x692   : > { %3092 = vadd.xlane.f32.xlu1 %v3091_v24  ;;  %v3131_v13 = vadd.f32 %v3109_v59, %v3108_v20 }
 0x694   : > { %3111 = vadd.xlane.f32.xlu0 %v3110_v6 }
 0x696   : > { %3114 = vadd.xlane.f32.xlu1 %v3113_v46  ;;  %v3136_v46 = vld [vmem:[%s5585_s11 + $0x10] sm:$0xff] }
 0x698   : > { %3117 = vadd.xlane.f32.xlu0 %v3116_v49 }
 0x69a   : > { %3120 = vadd.xlane.f32.xlu1 %v3119_v21  ;;  %v3139_v21 = vld [vmem:[%s5585_s11 + $0x28] sm:$0xff] }
 0x69c   : > { %3123 = vadd.xlane.f32.xlu0 %v3122_v23 }
 0x69e   : > { %3126 = vadd.xlane.f32.xlu1 %v3125_v17 }
 0x6a0   : > { %3129 = vadd.xlane.f32.xlu0 %v3128_v7 }
 0x6a2   : > { %3132 = vadd.xlane.f32.xlu1 %v3131_v13 }
 0x6b3   : > { %3570 = vperm.xlu1 %4204, %v3560_v25  }
 0x6b6   : > { %3575 = vperm.xlu0 %4203, %v3561_v26  }
 0x6b7   : > { %3580 = vperm.xlu1 %4204, %v3562_v1  }
 0x6ba   : > { %3585 = vperm.xlu0 %4203, %v3563_v32  }
 0x6bb   : > { %3590 = vperm.xlu1 %4204, %v3564_v27  }
 0x6be   : > { %3595 = vperm.xlu0 %4203, %v3565_v5  }
 0x705   : > { %v3072_v28 = vpop.xlane.xlu1 %3071 }
 0x707   : > { %v3075_v3 = vpop.xlane.xlu0 %3074 }
 0x708   : > { %v4008_v37 = vpack.c.bf16 %v3075_v3, %v3072_v28 }
 0x70a   : > { %4009 = vmatprep.subr.bf16.mxu0 %v4008_v37 }
 0x70b   : > { %4011 = vmatpush3.bf16.msra.mxu0 %v4008_v37 }
 0x70d   : > { %v3078_v45 = vpop.xlane.xlu0 %3077 }
 0x70f   : > { %v3081_v54 = vpop.xlane.xlu1 %3080 }
 0x710   : > { %v4012_v30 = vpack.c.bf16 %v3081_v54, %v3078_v45 }
 0x712   : > { %4013 = vmatprep.subr.bf16.mxu0 %v4012_v30 }
 0x713   : > { %4015 = vmatpush3.bf16.msra.mxu0 %v4012_v30 }
 0x715   : > { %v3084_v36 = vpop.xlane.xlu0 %3083 }
 0x717   : > { %v3087_v12 = vpop.xlane.xlu1 %3086 }
 0x718   : > { %v4016_v56 = vpack.c.bf16 %v3087_v12, %v3084_v36 }
 0x71a   : > { %4017 = vmatprep.subr.bf16.mxu0 %v4016_v56 }
 0x71b   : > { %4019 = vmatpush3.bf16.msra.mxu0 %v4016_v56 }
 0x71d   : > { %v3090_v33 = vpop.xlane.xlu0 %3089 }
 0x71f   : > { %v3093_v48 = vpop.xlane.xlu1 %3092 }
 0x720   : > { %v4020_v0 = vpack.c.bf16 %v3093_v48, %v3090_v33 }
 0x721   : > { %v3112_v52 = vpop.xlane.xlu0 %3111 }
 0x722   : > { %4021 = vmatprep.subr.bf16.mxu0 %v4020_v0 }
 0x723   : > { %4023 = vmatpush3.bf16.msra.mxu0 %v4020_v0  ;;  %v3115_v62 = vpop.xlane.xlu1 %3114 }
 0x724   : > { %v4024_v6 = vpack.c.bf16 %v3115_v62, %v3112_v52 }
 0x725   : > { %v3118_v63 = vpop.xlane.xlu0 %3117 }
 0x726   : > { %3969 = vmatmul.mubr.msk.f32.vlgmr.msra.gmra.mrb[24].mxu0 %vm471_vm0, %v3135_v41  ;;  %4025 = vmatprep.subr.bf16.mxu0 %v4024_v6 }
 0x727   : > { %4027 = vmatpush3.bf16.msra.mxu0 %v4024_v6  ;;  %v3121_v61 = vpop.xlane.xlu1 %3120  ;;  %3971 = vmatprep.mubr.msk.f32.mxu0 %vm471_vm0, %v3136_v46 }
 0x728   : > { %v4028_v2 = vpack.c.bf16 %v3121_v61, %v3118_v63 }
 0x729   : > { %v3124_v38 = vpop.xlane.xlu0 %3123 }
 0x72a   : > { %3972 = vmatmul.mubr.msk.f32.gmra.mrb[26].mxu0 %vm471_vm0, %v3137_v22  ;;  %4029 = vmatprep.subr.bf16.mxu0 %v4028_v2 }
 0x72b   : > { %4031 = vmatpush3.bf16.msra.mxu0 %v4028_v2  ;;  %v3127_v49 = vpop.xlane.xlu1 %3126  ;;  %3974 = vmatprep.mubr.msk.f32.mxu0 %vm471_vm0, %v3138_v11 }
 0x72c   : > { %v4032_v14 = vpack.c.bf16 %v3127_v49, %v3124_v38 }
 0x72d   : > { %v3130_v50 = vpop.xlane.xlu0 %3129 }
 0x72e   : > { %3975 = vmatmul.mubr.msk.f32.gmra.mrb[28].mxu0 %vm471_vm0, %v3139_v21  ;;  %4033 = vmatprep.subr.bf16.mxu0 %v4032_v14 }
 0x72f   : > { %4035 = vmatpush3.bf16.msra.mxu0 %v4032_v14  ;;  %v3133_v8 = vpop.xlane.xlu1 %3132  ;;  %3977 = vmatprep.mubr.msk.f32.mxu0 %vm471_vm0, %v3140_v4 }
 0x730   : > { %v4036_v19 = vpack.c.bf16 %v3133_v8, %v3130_v50 }
 0x732   : > { %3978 = vmatmul.mubr.msk.f32.gmra.mrb[30].mxu0 %vm471_vm0, %v3141_v10  ;;  %4037 = vmatprep.subr.bf16.mxu0 %v4036_v19 }
 0x733   : > { %4039 = vmatpush3.bf16.msra.mxu0 %v4036_v19  ;;  %3996 = vmatprep.mubr.msk.f32.mxu0 %vm471_vm0, %v5360_v16 }
 0x736   : > { %3997 = vmatmul.mubr.msk.f32.vlgmr.msra.gmra.mrb[32].mxu0 %vm471_vm0, %v3135_v41 }
 0x737   : > { %3999 = vmatprep.mubr.msk.f32.mxu0 %vm471_vm0, %v3136_v46 }
 0x73a   : > { %4000 = vmatmul.mubr.msk.f32.gmra.mrb[34].mxu0 %vm471_vm0, %v3137_v22 }
 0x73b   : > { %4002 = vmatprep.mubr.msk.f32.mxu0 %vm471_vm0, %v3138_v11 }
 0x73e   : > { %4003 = vmatmul.mubr.msk.f32.gmra.mrb[36].mxu0 %vm471_vm0, %v3139_v21 }
 0x73f   : > { %4005 = vmatprep.mubr.msk.f32.mxu0 %vm471_vm0, %v3140_v4 }
 0x742   : > { %4006 = vmatmul.mubr.msk.f32.gmra.mrb[38].mxu0 %vm471_vm0, %v3141_v10 }
 0x7f9   : > { %v3970_v23 = vpop.f32.mrb[24].mxu0 }
 0x7fa   : > { %v3272_v17 = vmul.f32 0.0009765625, %v3970_v23  ;;  %v3232_v9 = vpop.f32.mrb[25].mxu0 }
 0x7fb   : > { %v3271_v35 = vmul.f32 0.0009765625, %v3232_v9 }
 0x7fc   : > { %3439 = vperm.xlu1 %4204, %v3272_v17   ;;  %v3393_v28 = vmul.f32 %v3272_v17, %v3272_v17 }
 0x7fd   : > { %3434 = vperm.xlu0 %4203, %v3271_v35   ;;  %v3973_v18 = vpop.f32.mrb[26].mxu0  ;;  %v3392_v45 = vmul.f32 %v3271_v35, %v3271_v35 }
 0x7fe   : > { %v3274_v20 = vmul.f32 0.0009765625, %v3973_v18  ;;  %v3242_v59 = vpop.f32.mrb[27].mxu0 }
 0x7ff   : > { %v3273_v24 = vmul.f32 0.0009765625, %v3242_v59 }
 0x800   : > { %v3395_v56 = vmul.f32 %v3274_v20, %v3274_v20 }
 0x801   : > { %3449 = vperm.xlu0 %4203, %v3274_v20   ;;  %3444 = vperm.xlu1 %4204, %v3273_v24   ;;  %v3976_v7 = vpop.f32.mrb[28].mxu0  ;;  %v3394_v52 = vmul.f32 %v3273_v24, %v3273_v24 }
 0x802   : > { %v3276_v13 = vmul.f32 0.0009765625, %v3976_v7  ;;  %v3252_v16 = vpop.f32.mrb[29].mxu0 }
 0x803   : > { %v3275_v25 = vmul.f32 0.0009765625, %v3252_v16 }
 0x804   : > { %v3397_v2 = vmul.f32 %v3276_v13, %v3276_v13 }
 0x805   : > { %3459 = vperm.xlu0 %4203, %v3276_v13   ;;  %3454 = vperm.xlu1 %4204, %v3275_v25   ;;  %v3979_v26 = vpop.f32.mrb[30].mxu0  ;;  %v3396_v21 = vmul.f32 %v3275_v25, %v3275_v25 }
 0x806   : > { %v3278_v1 = vmul.f32 0.0009765625, %v3979_v26  ;;  %v3262_v32 = vpop.f32.mrb[31].mxu0 }
 0x807   : > { %v3277_v27 = vmul.f32 0.0009765625, %v3262_v32  ;;  %v3489_v32 = vld [vmem:[%s5582_s8 + $0x8] sm:$0xff] }
 0x808   : > { %v3399_v17 = vmul.f32 %v3278_v1, %v3278_v1 }
 0x809   : > { %3469 = vperm.xlu0 %4203, %v3278_v1   ;;  %3464 = vperm.xlu1 %4204, %v3277_v27   ;;  %v3998_v5 = vpop.f32.mrb[32].mxu0  ;;  %v3398_v20 = vmul.f32 %v3277_v27, %v3277_v27 }
 0x80a   : > { %v3385_v3 = vmul.f32 0.0009765625, %v3998_v5  ;;  %v3345_v37 = vpop.f32.mrb[33].mxu0  ;;  %v3488_v5 = vld [vmem:[%s5582_s8] sm:$0xff] }
 0x80b   : > { %v3384_v54 = vmul.f32 0.0009765625, %v3345_v37 }
 0x80c   : > { %v3401_v30 = vsub.f32 %v3385_v3, %v3393_v28 }
 0x80d   : > { %v3400_v36 = vsub.f32 %v3384_v54, %v3392_v45  ;;  %v4001_v12 = vpop.f32.mrb[34].mxu0 }
 0x80e   : > { %v3409_v33 = vmax.f32 %v3401_v30, 0.0  ;;  %v3387_v48 = vmul.f32 0.0009765625, %v4001_v12  ;;  %v3355_v0 = vpop.f32.mrb[35].mxu0  ;;  %v3491_v30 = vld [vmem:[%s5582_s8 + $0x18] sm:$0xff] }
 0x80f   : > { %v3408_v62 = vmax.f32 %v3400_v36, 0.0  ;;  %v3386_v41 = vmul.f32 0.0009765625, %v3355_v0  ;;  %v3490_v36 = vld [vmem:[%s5582_s8 + $0x10] sm:$0xff]  ;;  %v3493_v0 = vld [vmem:[%s5582_s8 + $0x28] sm:$0xff] }
 0x810   : > { %v3417_v6 = vadd.f32 1e-05, %v3409_v33  ;;  %v3403_v46 = vsub.f32 %v3387_v48, %v3395_v56 }
 0x811   : > { %v3416_v63 = vadd.f32 1e-05, %v3408_v62  ;;  %v3402_v61 = vsub.f32 %v3386_v41, %v3394_v52  ;;  %v4004_v22 = vpop.f32.mrb[36].mxu0  ;;  %v3492_v52 = vld [vmem:[%s5582_s8 + $0x20] sm:$0xff] }
 0x812   : > { %4245 = vrsqrt.f32 %v3417_v6  ;;  %v3411_v11 = vmax.f32 %v3403_v46, 0.0  ;;  %v3389_v38 = vmul.f32 0.0009765625, %v4004_v22  ;;  %v3365_v49 = vpop.f32.mrb[37].mxu0 }
 0x813   : > { %4247 = vrsqrt.f32 %v3416_v63  ;;  %v3410_v14 = vmax.f32 %v3402_v61, 0.0  ;;  %v3388_v4 = vmul.f32 0.0009765625, %v3365_v49  ;;  %v3495_v63 = vld [vmem:[%s5582_s8 + $0x38] sm:$0xff]  ;;  %v3494_v61 = vld [vmem:[%s5582_s8 + $0x30] sm:$0xff] }
 0x814   : > { %v3419_v50 = vadd.f32 1e-05, %v3411_v11  ;;  %v3405_v8 = vsub.f32 %v3389_v38, %v3397_v2  ;;  %v3567_v49 = vld [vmem:[%s5583_s9 + $0x38] sm:$0xff] }
 0x815   : > { %v3418_v10 = vadd.f32 1e-05, %v3410_v14  ;;  %v3404_v19 = vsub.f32 %v3388_v4, %v3396_v21  ;;  %v4007_v23 = vpop.f32.mrb[38].mxu0  ;;  %v3566_v21 = vld [vmem:[%s5583_s9 + $0x30] sm:$0xff]  ;;  %v3576_v14 = vpop.permute.xlu0 %3575 }
 0x816   : > { %4249 = vrsqrt.f32 %v3419_v50  ;;  %v3413_v9 = vmax.f32 %v3405_v8, 0.0  ;;  %v3391_v35 = vmul.f32 0.0009765625, %v4007_v23  ;;  %v3375_v18 = vpop.f32.mrb[39].mxu0  ;;  %v3571_v4 = vpop.permute.xlu1 %3570 }
 0x817   : > { %4251 = vrsqrt.f32 %v3418_v10  ;;  %v3412_v59 = vmax.f32 %v3404_v19, 0.0  ;;  %v3390_v24 = vmul.f32 0.0009765625, %v3375_v18 }
 0x818   : > { %v3421_v7 = vadd.f32 1e-05, %v3413_v9  ;;  %v3407_v13 = vsub.f32 %v3391_v35, %v3399_v17 }
 0x819   : > { %v3420_v16 = vadd.f32 1e-05, %v3412_v59  ;;  %v3406_v25 = vsub.f32 %v3390_v24, %v3398_v20  ;;  %v3586_v50 = vpop.permute.xlu0 %3585 }
 0x81a   : > { %4253 = vrsqrt.f32 %v3421_v7  ;;  %v3415_v26 = vmax.f32 %v3407_v13, 0.0  ;;  %v3581_v8 = vpop.permute.xlu1 %3580 }
 0x81b   : > { %4255 = vrsqrt.f32 %v3420_v16  ;;  %v3414_v1 = vmax.f32 %v3406_v25, 0.0 }
 0x81c   : > { %v4246_v27 = vpop.eup %4245  ;;  %v3423_v28 = vadd.f32 1e-05, %v3415_v26 }
 0x81d   : > { %v4248_v3 = vpop.eup %4247  ;;  %v3422_v37 = vadd.f32 1e-05, %v3414_v1  ;;  %v3497_v45 = vmul.f32 %v4246_v27, %v3489_v32  ;;  %v5449_v10 = vpop.permute.xlu0 %3595 }
 0x81e   : > { %4257 = vrsqrt.f32 %v3423_v28  ;;  %v3496_v54 = vmul.f32 %v4248_v3, %v3488_v5  ;;  %v5451_v19 = vpop.permute.xlu1 %3590 }
 0x81f   : > { %4259 = vrsqrt.f32 %v3422_v37  ;;  %3511 = vperm.xlu0 %4203, %v3497_v45  }
 0x820   : > { %v4250_v12 = vpop.eup %4249  ;;  %3506 = vperm.xlu1 %4204, %v3496_v54  }
 0x821   : > { %v4252_v56 = vpop.eup %4251  ;;  %v3499_v33 = vmul.f32 %v4250_v12, %v3491_v30 }
 0x822   : > { %v3498_v48 = vmul.f32 %v4252_v56, %v3490_v36  ;;  %v4261_v36 = vld [vmem:[%s4489_s23 + $0x10] sm:$0xff] }
 0x823   : > { %3521 = vperm.xlu0 %4203, %v3499_v33  }
 0x824   : > { %v4254_v62 = vpop.eup %4253  ;;  %3516 = vperm.xlu1 %4204, %v3498_v48  }
 0x825   : > { %v4256_v41 = vpop.eup %4255  ;;  %v3501_v6 = vmul.f32 %v4254_v62, %v3493_v0  ;;  %v4263_v0 = vld [vmem:[%s4489_s23] sm:$0xff]  ;;  %v4264_v62 = vld [vmem:[%s4489_s23 + $0x8] sm:$0xff] }
 0x826   : > { %v3500_v46 = vmul.f32 %v4256_v41, %v3492_v52 }
 0x827   : > { %3531 = vperm.xlu0 %4203, %v3501_v6  }
 0x828   : > { %v4258_v22 = vpop.eup %4257  ;;  %3526 = vperm.xlu1 %4204, %v3500_v46  }
 0x829   : > { %v4260_v2 = vpop.eup %4259  ;;  %v3503_v11 = vmul.f32 %v4258_v22, %v3495_v63 }
 0x82a   : > { %v3502_v38 = vmul.f32 %v4260_v2, %v3494_v61 }
 0x82b   : > { %3541 = vperm.xlu0 %4203, %v3503_v11  }
 0x82c   : > { %3536 = vperm.xlu1 %4204, %v3502_v38  }
 0x82f   : > { %3605 = vperm.xlu0 %4203, %v3567_v49  }
 0x830   : > { %3600 = vperm.xlu1 %4204, %v3566_v21   ;;  %v4265_v21 = vld [vmem:[%s4489_s23 + $0x30] sm:$0xff] }
 0x87b   : > { %v3440_v17 = vpop.permute.xlu1 %3439 }
 0x87c   : > { %v3435_v23 = vpop.permute.xlu0 %3434  ;;  %v3474_v7 = vsub.f32 %v5283_v42, %v3440_v17  ;;  %v3475_v13 = vsub.f32 %v5291_v51, %v3440_v17 }
 0x87d   : > { %v3472_v16 = vsub.f32 %v5277_v55, %v3435_v23  ;;  %v3473_v25 = vsub.f32 %v5279_v40, %v3435_v23 }
 0x880   : > { %v3450_v9 = vpop.permute.xlu0 %3449  ;;  %v3445_v35 = vpop.permute.xlu1 %3444 }
 0x881   : > { %v3478_v32 = vsub.f32 %v5303_v15, %v3450_v9  ;;  %v3479_v1 = vsub.f32 %v5311_v47, %v3450_v9  ;;  %v3476_v3 = vsub.f32 %v5297_v53, %v3445_v35  ;;  %v3477_v42 = vsub.f32 %v5299_v57, %v3445_v35 }
 0x884   : > { %v3460_v18 = vpop.permute.xlu0 %3459  ;;  %v5453_v20 = vpop.permute.xlu1 %3454 }
 0x885   : > { %v3482_v55 = vsub.f32 %v5323_v60, %v3460_v18  ;;  %v3483_v40 = vsub.f32 %v5331_v34, %v3460_v18  ;;  %v3480_v45 = vsub.f32 %v5317_v58, %v5453_v20  ;;  %v3481_v53 = vsub.f32 %v5319_v43, %v5453_v20  ;;  %v4262_v60 = vld [vmem:[%s4489_s23 + $0x18] sm:$0xff]  ;;  %v4268_v18 = vld [vmem:[%s4489_s23 + $0x28] sm:$0xff] }
 0x888   : > { %v5455_v59 = vpop.permute.xlu0 %3469  ;;  %v5457_v24 = vpop.permute.xlu1 %3464 }
 0x89e   : > { %v3512_v26 = vpop.permute.xlu0 %3511 }
 0x89f   : > { %v3546_v5 = vmul.f32 %v3512_v26, %v3474_v7  ;;  %v3547_v27 = vmul.f32 %v3512_v26, %v3475_v13  ;;  %v3507_v28 = vpop.permute.xlu1 %3506 }
 0x8a0   : > { %v3544_v51 = vmul.f32 %v3507_v28, %v3472_v16  ;;  %v3545_v37 = vmul.f32 %v3507_v28, %v3473_v25 }
 0x8a1   : > { %v3610_v15 = vadd.f32 %v3576_v14, %v3546_v5  ;;  %v3611_v47 = vadd.f32 %v3576_v14, %v3547_v27 }
 0x8a2   : > { %v3608_v54 = vadd.f32 %v3571_v4, %v3544_v51  ;;  %v3609_v57 = vadd.f32 %v3571_v4, %v3545_v37  ;;  %v3522_v30 = vpop.permute.xlu0 %3521  ;;  %v4266_v4 = vld [vmem:[%s4489_s23 + $0x38] sm:$0xff]  ;;  %v3487_v51 = vsub.f32 %v5351_v39, %v5455_v59  ;;  %v4272_v39 = vld [vmem:[%s4489_s23 + $0x48] sm:$0xff] }
 0x8a3   : > { %v3626_v12 = vadd.f32 %v4261_v36, %v3610_v15  ;;  %v3627_v56 = vadd.f32 %v4262_v60, %v3611_v47  ;;  %v3550_v34 = vmul.f32 %v3522_v30, %v3478_v32  ;;  %v3551_v33 = vmul.f32 %v3522_v30, %v3479_v1  ;;  %v3517_v48 = vpop.permute.xlu1 %3516 }
 0x8a4   : > { %v3624_v52 = vadd.f32 %v4263_v0, %v3608_v54  ;;  %v3625_v41 = vadd.f32 %v4264_v62, %v3609_v57  ;;  %v3548_v6 = vmul.f32 %v3517_v48, %v3476_v3  ;;  %v3549_v58 = vmul.f32 %v3517_v48, %v3477_v42  ;;  %v4273_v0 = vld [vmem:[%s4489_s23 + $0x70] sm:$0xff]  ;;  %v4274_v62 = vld [vmem:[%s4489_s23 + $0x78] sm:$0xff] }
 0x8a5   : > { %v3642_v46 = vmax.f32 %v3626_v12, 0.0  ;;  %v3643_v43 = vmax.f32 %v3627_v56, 0.0  ;;  %v3614_v63 = vadd.f32 %v3586_v50, %v3550_v34  ;;  %v3615_v61 = vadd.f32 %v3586_v50, %v3551_v33 }
 0x8a6   : > { %v3640_v22 = vmax.f32 %v3624_v52, 0.0  ;;  %v3641_v2 = vmax.f32 %v3625_v41, 0.0  ;;  %v3612_v11 = vadd.f32 %v3581_v8, %v3548_v6  ;;  %v3613_v38 = vadd.f32 %v3581_v8, %v3549_v58  ;;  %v3532_v49 = vpop.permute.xlu0 %3531  ;;  %v4267_v8 = vld [vmem:[%s4489_s23 + $0x20] sm:$0xff] }
 0x8a7   : > { %3658 = vst [vmem:[%s5480_s24 + $0x10] sm:$0xff] %v3642_v46  ;;  %3659 = vst [vmem:[%s5480_s24 + $0x18] sm:$0xff] %v3643_v43  ;;  %v3630_v14 = vadd.f32 %v4265_v21, %v3614_v63  ;;  %v3631_v23 = vadd.f32 %v4266_v4, %v3615_v61  ;;  %v3554_v50 = vmul.f32 %v3532_v49, %v3482_v55  ;;  %v3527_v9 = vpop.permute.xlu1 %3526  ;;  %v4270_v55 = vld [vmem:[%s4489_s23 + $0x58] sm:$0xff]  ;;  %v4275_v6 = vld [vmem:[%s4489_s23 + $0x60] sm:$0xff] }
 0x8a8   : > { %v3555_v17 = vmul.f32 %v3532_v49, %v3483_v40  ;;  %3656 = vst [vmem:[%s5480_s24] sm:$0xff] %v3640_v22  ;;  %3657 = vst [vmem:[%s5480_s24 + $0x8] sm:$0xff] %v3641_v2  ;;  %v3628_v35 = vadd.f32 %v4267_v8, %v3612_v11  ;;  %v3629_v20 = vadd.f32 %v4268_v18, %v3613_v38  ;;  %v4276_v46 = vld [vmem:[%s4489_s23 + $0x68] sm:$0xff] }
 0x8a9   : > { %v3552_v7 = vmul.f32 %v3527_v9, %v3480_v45  ;;  %v3553_v13 = vmul.f32 %v3527_v9, %v3481_v53  ;;  %v3646_v16 = vmax.f32 %v3630_v14, 0.0  ;;  %v3647_v25 = vmax.f32 %v3631_v23, 0.0 }
 0x8aa   : > { %v3618_v26 = vadd.f32 %v5449_v10, %v3554_v50  ;;  %v3619_v32 = vadd.f32 %v5449_v10, %v3555_v17  ;;  %v3644_v1 = vmax.f32 %v3628_v35, 0.0  ;;  %v3645_v5 = vmax.f32 %v3629_v20, 0.0  ;;  %v3542_v3 = vpop.permute.xlu0 %3541  ;;  %v4269_v10 = vld [vmem:[%s4489_s23 + $0x50] sm:$0xff] }
 0x8ab   : > { %v3616_v27 = vadd.f32 %v5451_v19, %v3552_v7  ;;  %v3617_v28 = vadd.f32 %v5451_v19, %v3553_v13  ;;  %v3486_v42 = vsub.f32 %v5343_v44, %v5455_v59  ;;  %3662 = vst [vmem:[%s5480_s24 + $0x30] sm:$0xff] %v3646_v16  ;;  %3663 = vst [vmem:[%s5480_s24 + $0x38] sm:$0xff] %v3647_v25  ;;  %v3537_v15 = vpop.permute.xlu1 %3536  ;;  %v4271_v44 = vld [vmem:[%s4489_s23 + $0x40] sm:$0xff]  ;;  %s5533_s23 = scalar_lea.sflag [#allocation3], %s431_s20 }
 0x8ac   : > { %v3634_v37 = vadd.f32 %v4269_v10, %v3618_v26  ;;  %v3635_v40 = vadd.f32 %v4270_v55, %v3619_v32  ;;  %v3484_v47 = vsub.f32 %v5337_v31, %v5457_v24  ;;  %v3485_v19 = vsub.f32 %v5339_v29, %v5457_v24  ;;  %3660 = vst [vmem:[%s5480_s24 + $0x20] sm:$0xff] %v3644_v1 }
 0x8ad   : > { %3661 = vst [vmem:[%s5480_s24 + $0x28] sm:$0xff] %v3645_v5  ;;  %v3632_v45 = vadd.f32 %v4271_v44, %v3616_v27  ;;  %v3633_v59 = vadd.f32 %v4272_v39, %v3617_v28  ;;  %v3558_v57 = vmul.f32 %v3542_v3, %v3486_v42  ;;  %v3559_v30 = vmul.f32 %v3542_v3, %v3487_v51 }
 0x8ae   : > { %v3650_v53 = vmax.f32 %v3634_v37, 0.0  ;;  %v3651_v54 = vmax.f32 %v3635_v40, 0.0  ;;  %v3556_v29 = vmul.f32 %v3537_v15, %v3484_v47  ;;  %v3557_v24 = vmul.f32 %v3537_v15, %v3485_v19  ;;  %v3606_v12 = vpop.permute.xlu0 %3605 }
 0x8af   : > { %v3648_v31 = vmax.f32 %v3632_v45, 0.0  ;;  %v3649_v36 = vmax.f32 %v3633_v59, 0.0  ;;  %v3622_v60 = vadd.f32 %v3606_v12, %v3558_v57  ;;  %v3623_v56 = vadd.f32 %v3606_v12, %v3559_v30  ;;  %v3601_v34 = vpop.permute.xlu1 %3600 }
 0x8b0   : > { %3666 = vst [vmem:[%s5480_s24 + $0x50] sm:$0xff] %v3650_v53  ;;  %3667 = vst [vmem:[%s5480_s24 + $0x58] sm:$0xff] %v3651_v54  ;;  %v3620_v33 = vadd.f32 %v3601_v34, %v3556_v29  ;;  %v3621_v48 = vadd.f32 %v3601_v34, %v3557_v24 }
 0x8b1   : > { %3664 = vst [vmem:[%s5480_s24 + $0x40] sm:$0xff] %v3648_v31  ;;  %3665 = vst [vmem:[%s5480_s24 + $0x48] sm:$0xff] %v3649_v36  ;;  %v3638_v52 = vadd.f32 %v4273_v0, %v3622_v60  ;;  %v3639_v41 = vadd.f32 %v4274_v62, %v3623_v56 }
 0x8b2   : > { %v3636_v58 = vadd.f32 %v4275_v6, %v3620_v33  ;;  %v3637_v43 = vadd.f32 %v4276_v46, %v3621_v48 }
 0x8b3   : > { %v3654_v63 = vmax.f32 %v3638_v52, 0.0  ;;  %v3655_v61 = vmax.f32 %v3639_v41, 0.0 }
 0x8b4   : > { %v3652_v22 = vmax.f32 %v3636_v58, 0.0  ;;  %v3653_v2 = vmax.f32 %v3637_v43, 0.0 }
 0x8b5   : > { %3670 = vst [vmem:[%s5480_s24 + $0x70] sm:$0xff] %v3654_v63  ;;  %3671 = vst [vmem:[%s5480_s24 + $0x78] sm:$0xff] %v3655_v61 }
 0x8b6   : > { %3668 = vst [vmem:[%s5480_s24 + $0x60] sm:$0xff] %v3652_v22  ;;  %3669 = vst [vmem:[%s5480_s24 + $0x68] sm:$0xff] %v3653_v2 }
 0x8b7   : > { %4290 = shalt.err (!%p4287_p3)
}
 0x8b8   : > { %s4291_s20 = scalar_lea.hbm %s5523_s10, 2048  ;;  %s4295_s15 = scalar_lea.hbm %s5587_s13, 4096 }
 0x8b9   : > { %p4292_p4 = scmp.ne.s32.totalorder %s5523_s10, %s4291_s20  ;;  %p4296_p9 = scmp.lt.u32.totalorder %s5523_s10, %s5587_s13 }
 0x8ba   : > { %p4297_p10 = scmp.lt.u32.totalorder %s4295_s15, %s4291_s20  ;;  %p4299_p12 = scmp.lt.u32.totalorder %s4291_s20, %s5523_s10 }
 0x8bb   : > { %p4293_p7 = pnand %p4292_p4, %p4470_p5 }
 0x8bc   : > { %p4298_p11 = por %p4297_p10, %p4296_p9 }
 0x8bd   : > { %p4294_p8 = pneg %p4293_p7 }
 0x8be   : > { %p4300_p13 = por %p4299_p12, %p4298_p11 }
 0x8c0   : > { %p4301_p0 = pnand %p4300_p13, %p4294_p8 }
 0x8c2   : > { %4304 = shalt.err (!%p4301_p0)
}
 0x8c3   : > { %s4360_s1 = smov 256   ;;  %s4361_s19 = smov 16  }
 0x8c4   : > { %4144 = dma.vmem_to_hbm [thread:$0]  (%p4470_p5), %s5525_s21, 2048, %s5523_s10, %s5533_s23, %s4360_s1, %s4360_s1, %s4361_s19  }
 0x8c5 PF: > { %p4150_p1 = scmp.ge.s32.totalorder %s4339_s28, 2  ;;  %s3701_s22 = sand.u32 1, %s4327_s25  }
 0x8c6   : > { %s3702_s20 = scalar_lea.sflag [#allocation3], %s3701_s22 }
 0x8c7   : > { %p4147_p2 = pnand %p4150_p1, %p4474_p6 }
 0x8c9   : > { %4322 = dma.done.wait (!%p4147_p2), %s3702_s20, 2048  }
 0x8ca   : > { %4324 = vsyncadd (!%p4147_p2), %s3702_s20, 4294965248  ;;  %p23_p3 = scmp.ge.s32.totalorder %s4457_s30, 4   ;;  %s5594_s25 = smov %s4331_s26 }
 0x8cb   : > { %s5595_s26 = smov %s4335_s27  ;;  %s5596_s27 = smov %s4468_s16 }
 0x8cc   : > { %s5597_s28 = smov %s4457_s30  ;;  %25 = sbr.rel (!%p23_p3) target bundleno = 6 (0x6), region = 159 }
 0x8d3   :  { %3707 = vsyncpa [#allocation3], 1 }
 0x8d4   :  { %3709 = vsyncpa [#allocation3 + $0x1], 1 }

</bundles_post_ra>
